<compile_context>
chip_gen: v7x
topology: tpu7x:2x2x1
jax: 0.10.0
libtpu: 0.0.40
codegen_flags: <defaults>
</compile_context>

<pallas_src>
import functools

import jax
import jax.numpy as jnp
from jax.experimental import pallas as pl
from jax.experimental.pallas import tpu as pltpu


# The single halo column sits at sublane index _PAD_LEFT (= 7); the interior
# (real image) columns therefore start at sublane index 8, which makes the
# interior store into the padded VMEM scratch fully (8,128)-tile aligned.
_PAD_LEFT = 7
_INTERIOR_COL = _PAD_LEFT + 1          # == 8
_EXTRA_COLS = _INTERIOR_COL + 1        # left dead/halo cols + right halo col == 9


def _fused_unet_conv2_kernel(x_ref, w1_ref, b1_ref, w2_ref, b2_ref, o_ref,
                             xpad_ref, hpad_ref):
    """Fused y = ReLU(conv3x3(ReLU(conv3x3(x)+b1))+b2) for one batch element.

    Shapes (NHWC, channels on the lane axis):
      x_ref    : (1, H, W, Cin)
      w1_ref   : (3, 3, Cin, C1)      HWIO
      b1_ref   : (1, C1)              float32
      w2_ref   : (3, 3, C1, C1)       HWIO
      b2_ref   : (1, C1)              float32
      o_ref    : (1, H, W, C1)
      xpad_ref : VMEM (H+2, W+9, Cin) zero-padded input (halo built in-kernel)
      hpad_ref : VMEM (H+2, W+9, C1)  zero-padded intermediate activation
    """
    H = o_ref.shape[1]
    W = o_ref.shape[2]
    c1 = o_ref.shape[3]

    def conv3x3_bias_relu(pad_ref, w_ref, b_ref):
        cin = pad_ref.shape[-1]
        cout = w_ref.shape[-1]
        mm_dtype = w_ref.dtype
        acc = jnp.zeros((H * W, cout), jnp.float32)
        # Direct conv: 9 taps, each an (H*W, Cin) @ (Cin, Cout) MXU matmul,
        # accumulated in f32 registers.  Kept as 9 small dots (rather than one
        # im2col matmul) because with channels-minor layout and C < 128 the
        # im2col repack needs lane-shuffling reshapes/concats; the MXU is not
        # the bottleneck at these channel counts.
        for dy in range(3):
            for dx in range(3):
                patch = pad_ref[dy:dy + H,
                                _PAD_LEFT + dx:_PAD_LEFT + dx + W,
                                :].reshape(H * W, cin)
                acc = acc + jnp.dot(patch.astype(mm_dtype), w_ref[dy, dx],
                                    preferred_element_type=jnp.float32)
        acc = acc + b_ref[...]                     # (1, Cout) broadcast, f32
        return jnp.maximum(acc, 0.0)               # fused ReLU, f32

    # ---- stage 1: zero-pad x inside VMEM (no HBM-side jnp.pad copy) --------
    # Scratch persists across grid steps, so re-zero the halo every step.
    xpad_ref[...] = jnp.zeros_like(xpad_ref)
    xpad_ref[1:H + 1, _INTERIOR_COL:_INTERIOR_COL + W, :] = (
        x_ref[0].astype(xpad_ref.dtype))

    h = conv3x3_bias_relu(xpad_ref, w1_ref, b1_ref)           # (H*W, C1) f32

    # ---- stage 2: intermediate activation never leaves VMEM ----------------
    hpad_ref[...] = jnp.zeros_like(hpad_ref)
    hpad_ref[1:H + 1, _INTERIOR_COL:_INTERIOR_COL + W, :] = h.reshape(H, W, c1)

    y = conv3x3_bias_relu(hpad_ref, w2_ref, b2_ref)           # (H*W, C1) f32

    o_ref[0] = y.reshape(H, W, c1).astype(o_ref.dtype)


def _fused_forward_nhwc(x_nhwc, w1, b1, w2, b2, matmul_dtype):
    """One pallas_call for both conv+bias+ReLU stages, grid over batch."""
    N, H, W, Cin = x_nhwc.shape
    C1 = w1.shape[-1]

    w1_mm = w1.astype(matmul_dtype)
    w2_mm = w2.astype(matmul_dtype)
    b1_2d = b1.reshape(1, C1).astype(jnp.float32)
    b2_2d = b2.reshape(1, C1).astype(jnp.float32)

    return pl.pallas_call(
        _fused_unet_conv2_kernel,
        out_shape=jax.ShapeDtypeStruct((N, H, W, C1), jnp.float32),
        grid=(N,),
        in_specs=[
            pl.BlockSpec((1, H, W, Cin), lambda n: (n, 0, 0, 0)),
            pl.BlockSpec((3, 3, Cin, C1), lambda n: (0, 0, 0, 0)),
            pl.BlockSpec((1, C1), lambda n: (0, 0)),
            pl.BlockSpec((3, 3, C1, C1), lambda n: (0, 0, 0, 0)),
            pl.BlockSpec((1, C1), lambda n: (0, 0)),
        ],
        out_specs=pl.BlockSpec((1, H, W, C1), lambda n: (n, 0, 0, 0)),
        scratch_shapes=[
            pltpu.VMEM((H + 2, W + _EXTRA_COLS, Cin), jnp.float32),
            pltpu.VMEM((H + 2, W + _EXTRA_COLS, C1), jnp.float32),
        ],
        compiler_params=pltpu.CompilerParams(
            dimension_semantics=("parallel",),
            # Tiny working set here (~1 MiB); raised explicitly so real UNet
            # layer sizes (bigger H/W/C tiles) are not rejected by the
            # default scoped-VMEM limit.
            vmem_limit_bytes=32 * 1024 * 1024,
        ),
    )(x_nhwc, w1_mm, b1_2d, w2_mm, b2_2d)


@functools.partial(jax.jit, static_argnames=("matmul_dtype",))
def unet_conv2_forward(x_nchw, w1, b1, w2, b2, matmul_dtype=jnp.float32):
    """unetConv2.forward: two fused (conv3x3 + bias + ReLU) blocks. NCHW in/out.

    matmul_dtype=jnp.bfloat16 enables bf16 MXU inputs (f32 accumulate) on
    v6e/v7x; default f32 keeps bit-tight accuracy.
    """
    x_nhwc = jnp.transpose(x_nchw, (0, 2, 3, 1))
    y_nhwc = _fused_forward_nhwc(x_nhwc, w1, b1, w2, b2, matmul_dtype)
    return jnp.transpose(y_nhwc, (0, 3, 1, 2))


def _reference_forward(x_nchw, w1, b1, w2, b2):
    """Pure-JAX reference (lax conv) for the correctness check."""
    def block(x, w, b):
        y = jax.lax.conv_general_dilated(
            x, w, window_strides=(1, 1), padding="SAME",
            dimension_numbers=("NCHW", "HWIO", "NCHW"),
        )
        y = y + b[None, :, None, None]
        return jnp.maximum(y, 0.0)
    return block(block(x_nchw, w1, b1), w2, b2)


if __name__ == "__main__":
    # Small shapes consistent with the module: N=2, in_size=4, out_size=8, 16x16.
    N, C_IN, C_OUT, H, W = 2, 4, 8, 16, 16
    K = 3

    key = jax.random.PRNGKey(0)
    kx, kw1, kb1, kw2, kb2 = jax.random.split(key, 5)

    x = jax.random.normal(kx, (N, C_IN, H, W), dtype=jnp.float32)

    # Deterministic synthetic parameters (conv weights in HWIO layout).
    w1 = jax.random.normal(kw1, (K, K, C_IN, C_OUT), jnp.float32) * 0.1
    b1 = jax.random.normal(kb1, (C_OUT,), jnp.float32) * 0.1
    w2 = jax.random.normal(kw2, (K, K, C_OUT, C_OUT), jnp.float32) * 0.1
    b2 = jax.random.normal(kb2, (C_OUT,), jnp.float32) * 0.1

    out = unet_conv2_forward(x, w1, b1, w2, b2, matmul_dtype=jnp.float32)
    out = jax.block_until_ready(out)

    ref = _reference_forward(x, w1, b1, w2, b2)
    assert out.shape == (N, C_OUT, H, W)
    assert out.dtype == jnp.float32
    assert jnp.allclose(out, ref, atol=1e-4, rtol=1e-4)

    print("KERNEL_OK")
</pallas_src>

<mosaic_0001>
module attributes {stable_mosaic.version = 11 : i64} {
  func.func @_fused_unet_conv2_kernel(%arg0: i32, %arg1: memref<1x16x16x4xf32, #tpu.memory_space<vmem>>, %arg2: memref<3x3x4x8xf32, #tpu.memory_space<vmem>>, %arg3: memref<1x8xf32, #tpu.memory_space<vmem>>, %arg4: memref<3x3x8x8xf32, #tpu.memory_space<vmem>>, %arg5: memref<1x8xf32, #tpu.memory_space<vmem>>, %arg6: memref<1x16x16x8xf32, #tpu.memory_space<vmem>>, %arg7: memref<18x25x4xf32, #tpu.memory_space<vmem>>, %arg8: memref<18x25x8xf32, #tpu.memory_space<vmem>>) attributes {dimension_semantics = [#tpu.dimension_semantics<parallel>], iteration_bounds = array<i64: 2>, scalar_prefetch = 0 : i64, scratch_operands = 2 : i64, tpu.core_type = #tpu.core_type<tc>, window_params = [{transform_indices = @transform_0, window_bounds = array<i64: 1, 16, 16, 4>}, {pipeline_mode = #tpu.pipeline_mode<synchronous>, transform_indices = @transform_1, window_bounds = array<i64: 3, 3, 4, 8>}, {pipeline_mode = #tpu.pipeline_mode<synchronous>, transform_indices = @transform_2, window_bounds = array<i64: 1, 8>}, {pipeline_mode = #tpu.pipeline_mode<synchronous>, transform_indices = @transform_3, window_bounds = array<i64: 3, 3, 8, 8>}, {pipeline_mode = #tpu.pipeline_mode<synchronous>, transform_indices = @transform_4, window_bounds = array<i64: 1, 8>}, {transform_indices = @transform_5, window_bounds = array<i64: 1, 16, 16, 8>}]} {
    %cst = arith.constant 0.000000e+00 : f32
    %0 = vector.broadcast %cst : f32 to vector<18x25x4xf32>
    %c0 = arith.constant 0 : index
    %c0_0 = arith.constant 0 : index
    %c0_1 = arith.constant 0 : index
    %1 = vector.load %arg7[%c0, %c0_0, %c0_1] : memref<18x25x4xf32, #tpu.memory_space<vmem>>, vector<18x25x4xf32>
    tpu.vector_store %arg7[%c0, %c0_0, %c0_1], %0 {strides = array<i32>} : memref<18x25x4xf32, #tpu.memory_space<vmem>>, vector<18x25x4xf32>,
    %c0_2 = arith.constant 0 : index
    %c0_3 = arith.constant 0 : index
    %c0_4 = arith.constant 0 : index
    %c0_5 = arith.constant 0 : index
    %2 = vector.load %arg1[%c0_2, %c0_3, %c0_4, %c0_5] : memref<1x16x16x4xf32, #tpu.memory_space<vmem>>, vector<1x16x16x4xf32>
    %3 = vector.shape_cast %2 : vector<1x16x16x4xf32> to vector<16x16x4xf32>
    %c1 = arith.constant 1 : index
    %c8 = arith.constant 8 : index
    %c0_6 = arith.constant 0 : index
    %4 = vector.load %arg7[%c1, %c8, %c0_6] : memref<18x25x4xf32, #tpu.memory_space<vmem>>, vector<16x16x4xf32>
    tpu.vector_store %arg7[%c1, %c8, %c0_6], %3 {strides = array<i32>} : memref<18x25x4xf32, #tpu.memory_space<vmem>>, vector<16x16x4xf32>,
    %cst_7 = arith.constant 0.000000e+00 : f32
    %5 = vector.broadcast %cst_7 : f32 to vector<256x8xf32>
    %c0_8 = arith.constant 0 : index
    %c7 = arith.constant 7 : index
    %c0_9 = arith.constant 0 : index
    %6 = vector.load %arg7[%c0_8, %c7, %c0_9] : memref<18x25x4xf32, #tpu.memory_space<vmem>>, vector<16x16x4xf32>
    %7 = vector.shape_cast %6 : vector<16x16x4xf32> to vector<256x4xf32>
    %c0_10 = arith.constant 0 : index
    %c0_11 = arith.constant 0 : index
    %c0_12 = arith.constant 0 : index
    %c0_13 = arith.constant 0 : index
    %8 = vector.load %arg2[%c0_10, %c0_11, %c0_12, %c0_13] : memref<3x3x4x8xf32, #tpu.memory_space<vmem>>, vector<1x1x4x8xf32>
    %9 = vector.shape_cast %8 : vector<1x1x4x8xf32> to vector<4x8xf32>
    %cst_14 = arith.constant dense<0.000000e+00> : vector<256x8xf32>
    %10 = tpu.matmul %7, %9, %cst_14 {dimension_numbers = #tpu.dot_dimension_numbers<[1], [0], [0], [1], [0, 0, 1, 1], [], []>} : vector<256x4xf32>, vector<4x8xf32>, vector<256x8xf32> -> vector<256x8xf32>
    %11 = arith.addf %5, %10 : vector<256x8xf32>
    %c0_15 = arith.constant 0 : index
    %c8_16 = arith.constant 8 : index
    %c0_17 = arith.constant 0 : index
    %12 = vector.load %arg7[%c0_15, %c8_16, %c0_17] : memref<18x25x4xf32, #tpu.memory_space<vmem>>, vector<16x16x4xf32>
    %13 = vector.shape_cast %12 : vector<16x16x4xf32> to vector<256x4xf32>
    %c0_18 = arith.constant 0 : index
    %c1_19 = arith.constant 1 : index
    %c0_20 = arith.constant 0 : index
    %c0_21 = arith.constant 0 : index
    %14 = vector.load %arg2[%c0_18, %c1_19, %c0_20, %c0_21] : memref<3x3x4x8xf32, #tpu.memory_space<vmem>>, vector<1x1x4x8xf32>
    %15 = vector.shape_cast %14 : vector<1x1x4x8xf32> to vector<4x8xf32>
    %cst_22 = arith.constant dense<0.000000e+00> : vector<256x8xf32>
    %16 = tpu.matmul %13, %15, %cst_22 {dimension_numbers = #tpu.dot_dimension_numbers<[1], [0], [0], [1], [0, 0, 1, 1], [], []>} : vector<256x4xf32>, vector<4x8xf32>, vector<256x8xf32> -> vector<256x8xf32>
    %17 = arith.addf %11, %16 : vector<256x8xf32>
    %c0_23 = arith.constant 0 : index
    %c9 = arith.constant 9 : index
    %c0_24 = arith.constant 0 : index
    %18 = vector.load %arg7[%c0_23, %c9, %c0_24] : memref<18x25x4xf32, #tpu.memory_space<vmem>>, vector<16x16x4xf32>
    %19 = vector.shape_cast %18 : vector<16x16x4xf32> to vector<256x4xf32>
    %c0_25 = arith.constant 0 : index
    %c2 = arith.constant 2 : index
    %c0_26 = arith.constant 0 : index
    %c0_27 = arith.constant 0 : index
    %20 = vector.load %arg2[%c0_25, %c2, %c0_26, %c0_27] : memref<3x3x4x8xf32, #tpu.memory_space<vmem>>, vector<1x1x4x8xf32>
    %21 = vector.shape_cast %20 : vector<1x1x4x8xf32> to vector<4x8xf32>
    %cst_28 = arith.constant dense<0.000000e+00> : vector<256x8xf32>
    %22 = tpu.matmul %19, %21, %cst_28 {dimension_numbers = #tpu.dot_dimension_numbers<[1], [0], [0], [1], [0, 0, 1, 1], [], []>} : vector<256x4xf32>, vector<4x8xf32>, vector<256x8xf32> -> vector<256x8xf32>
    %23 = arith.addf %17, %22 : vector<256x8xf32>
    %c1_29 = arith.constant 1 : index
    %c7_30 = arith.constant 7 : index
    %c0_31 = arith.constant 0 : index
    %24 = vector.load %arg7[%c1_29, %c7_30, %c0_31] : memref<18x25x4xf32, #tpu.memory_space<vmem>>, vector<16x16x4xf32>
    %25 = vector.shape_cast %24 : vector<16x16x4xf32> to vector<256x4xf32>
    %c1_32 = arith.constant 1 : index
    %c0_33 = arith.constant 0 : index
    %c0_34 = arith.constant 0 : index
    %c0_35 = arith.constant 0 : index
    %26 = vector.load %arg2[%c1_32, %c0_33, %c0_34, %c0_35] : memref<3x3x4x8xf32, #tpu.memory_space<vmem>>, vector<1x1x4x8xf32>
    %27 = vector.shape_cast %26 : vector<1x1x4x8xf32> to vector<4x8xf32>
    %cst_36 = arith.constant dense<0.000000e+00> : vector<256x8xf32>
    %28 = tpu.matmul %25, %27, %cst_36 {dimension_numbers = #tpu.dot_dimension_numbers<[1], [0], [0], [1], [0, 0, 1, 1], [], []>} : vector<256x4xf32>, vector<4x8xf32>, vector<256x8xf32> -> vector<256x8xf32>
    %29 = arith.addf %23, %28 : vector<256x8xf32>
    %c1_37 = arith.constant 1 : index
    %c8_38 = arith.constant 8 : index
    %c0_39 = arith.constant 0 : index
    %30 = vector.load %arg7[%c1_37, %c8_38, %c0_39] : memref<18x25x4xf32, #tpu.memory_space<vmem>>, vector<16x16x4xf32>
    %31 = vector.shape_cast %30 : vector<16x16x4xf32> to vector<256x4xf32>
    %c1_40 = arith.constant 1 : index
    %c1_41 = arith.constant 1 : index
    %c0_42 = arith.constant 0 : index
    %c0_43 = arith.constant 0 : index
    %32 = vector.load %arg2[%c1_40, %c1_41, %c0_42, %c0_43] : memref<3x3x4x8xf32, #tpu.memory_space<vmem>>, vector<1x1x4x8xf32>
    %33 = vector.shape_cast %32 : vector<1x1x4x8xf32> to vector<4x8xf32>
    %cst_44 = arith.constant dense<0.000000e+00> : vector<256x8xf32>
    %34 = tpu.matmul %31, %33, %cst_44 {dimension_numbers = #tpu.dot_dimension_numbers<[1], [0], [0], [1], [0, 0, 1, 1], [], []>} : vector<256x4xf32>, vector<4x8xf32>, vector<256x8xf32> -> vector<256x8xf32>
    %35 = arith.addf %29, %34 : vector<256x8xf32>
    %c1_45 = arith.constant 1 : index
    %c9_46 = arith.constant 9 : index
    %c0_47 = arith.constant 0 : index
    %36 = vector.load %arg7[%c1_45, %c9_46, %c0_47] : memref<18x25x4xf32, #tpu.memory_space<vmem>>, vector<16x16x4xf32>
    %37 = vector.shape_cast %36 : vector<16x16x4xf32> to vector<256x4xf32>
    %c1_48 = arith.constant 1 : index
    %c2_49 = arith.constant 2 : index
    %c0_50 = arith.constant 0 : index
    %c0_51 = arith.constant 0 : index
    %38 = vector.load %arg2[%c1_48, %c2_49, %c0_50, %c0_51] : memref<3x3x4x8xf32, #tpu.memory_space<vmem>>, vector<1x1x4x8xf32>
    %39 = vector.shape_cast %38 : vector<1x1x4x8xf32> to vector<4x8xf32>
    %cst_52 = arith.constant dense<0.000000e+00> : vector<256x8xf32>
    %40 = tpu.matmul %37, %39, %cst_52 {dimension_numbers = #tpu.dot_dimension_numbers<[1], [0], [0], [1], [0, 0, 1, 1], [], []>} : vector<256x4xf32>, vector<4x8xf32>, vector<256x8xf32> -> vector<256x8xf32>
    %41 = arith.addf %35, %40 : vector<256x8xf32>
    %c2_53 = arith.constant 2 : index
    %c7_54 = arith.constant 7 : index
    %c0_55 = arith.constant 0 : index
    %42 = vector.load %arg7[%c2_53, %c7_54, %c0_55] : memref<18x25x4xf32, #tpu.memory_space<vmem>>, vector<16x16x4xf32>
    %43 = vector.shape_cast %42 : vector<16x16x4xf32> to vector<256x4xf32>
    %c2_56 = arith.constant 2 : index
    %c0_57 = arith.constant 0 : index
    %c0_58 = arith.constant 0 : index
    %c0_59 = arith.constant 0 : index
    %44 = vector.load %arg2[%c2_56, %c0_57, %c0_58, %c0_59] : memref<3x3x4x8xf32, #tpu.memory_space<vmem>>, vector<1x1x4x8xf32>
    %45 = vector.shape_cast %44 : vector<1x1x4x8xf32> to vector<4x8xf32>
    %cst_60 = arith.constant dense<0.000000e+00> : vector<256x8xf32>
    %46 = tpu.matmul %43, %45, %cst_60 {dimension_numbers = #tpu.dot_dimension_numbers<[1], [0], [0], [1], [0, 0, 1, 1], [], []>} : vector<256x4xf32>, vector<4x8xf32>, vector<256x8xf32> -> vector<256x8xf32>
    %47 = arith.addf %41, %46 : vector<256x8xf32>
    %c2_61 = arith.constant 2 : index
    %c8_62 = arith.constant 8 : index
    %c0_63 = arith.constant 0 : index
    %48 = vector.load %arg7[%c2_61, %c8_62, %c0_63] : memref<18x25x4xf32, #tpu.memory_space<vmem>>, vector<16x16x4xf32>
    %49 = vector.shape_cast %48 : vector<16x16x4xf32> to vector<256x4xf32>
    %c2_64 = arith.constant 2 : index
    %c1_65 = arith.constant 1 : index
    %c0_66 = arith.constant 0 : index
    %c0_67 = arith.constant 0 : index
    %50 = vector.load %arg2[%c2_64, %c1_65, %c0_66, %c0_67] : memref<3x3x4x8xf32, #tpu.memory_space<vmem>>, vector<1x1x4x8xf32>
    %51 = vector.shape_cast %50 : vector<1x1x4x8xf32> to vector<4x8xf32>
    %cst_68 = arith.constant dense<0.000000e+00> : vector<256x8xf32>
    %52 = tpu.matmul %49, %51, %cst_68 {dimension_numbers = #tpu.dot_dimension_numbers<[1], [0], [0], [1], [0, 0, 1, 1], [], []>} : vector<256x4xf32>, vector<4x8xf32>, vector<256x8xf32> -> vector<256x8xf32>
    %53 = arith.addf %47, %52 : vector<256x8xf32>
    %c2_69 = arith.constant 2 : index
    %c9_70 = arith.constant 9 : index
    %c0_71 = arith.constant 0 : index
    %54 = vector.load %arg7[%c2_69, %c9_70, %c0_71] : memref<18x25x4xf32, #tpu.memory_space<vmem>>, vector<16x16x4xf32>
    %55 = vector.shape_cast %54 : vector<16x16x4xf32> to vector<256x4xf32>
    %c2_72 = arith.constant 2 : index
    %c2_73 = arith.constant 2 : index
    %c0_74 = arith.constant 0 : index
    %c0_75 = arith.constant 0 : index
    %56 = vector.load %arg2[%c2_72, %c2_73, %c0_74, %c0_75] : memref<3x3x4x8xf32, #tpu.memory_space<vmem>>, vector<1x1x4x8xf32>
    %57 = vector.shape_cast %56 : vector<1x1x4x8xf32> to vector<4x8xf32>
    %cst_76 = arith.constant dense<0.000000e+00> : vector<256x8xf32>
    %58 = tpu.matmul %55, %57, %cst_76 {dimension_numbers = #tpu.dot_dimension_numbers<[1], [0], [0], [1], [0, 0, 1, 1], [], []>} : vector<256x4xf32>, vector<4x8xf32>, vector<256x8xf32> -> vector<256x8xf32>
    %59 = arith.addf %53, %58 : vector<256x8xf32>
    %c0_77 = arith.constant 0 : index
    %c0_78 = arith.constant 0 : index
    %60 = vector.load %arg3[%c0_77, %c0_78] : memref<1x8xf32, #tpu.memory_space<vmem>>, vector<1x8xf32>
    %61 = vector.broadcast %60 : vector<1x8xf32> to vector<256x8xf32>
    %62 = arith.addf %59, %61 : vector<256x8xf32>
    %cst_79 = arith.constant 0.000000e+00 : f32
    %63 = vector.broadcast %cst_79 : f32 to vector<256x8xf32>
    %64 = arith.maximumf %62, %63 : vector<256x8xf32>
    %cst_80 = arith.constant 0.000000e+00 : f32
    %65 = vector.broadcast %cst_80 : f32 to vector<18x25x8xf32>
    %c0_81 = arith.constant 0 : index
    %c0_82 = arith.constant 0 : index
    %c0_83 = arith.constant 0 : index
    %66 = vector.load %arg8[%c0_81, %c0_82, %c0_83] : memref<18x25x8xf32, #tpu.memory_space<vmem>>, vector<18x25x8xf32>
    tpu.vector_store %arg8[%c0_81, %c0_82, %c0_83], %65 {strides = array<i32>} : memref<18x25x8xf32, #tpu.memory_space<vmem>>, vector<18x25x8xf32>,
    %67 = vector.shape_cast %64 : vector<256x8xf32> to vector<16x16x8xf32>
    %c1_84 = arith.constant 1 : index
    %c8_85 = arith.constant 8 : index
    %c0_86 = arith.constant 0 : index
    %68 = vector.load %arg8[%c1_84, %c8_85, %c0_86] : memref<18x25x8xf32, #tpu.memory_space<vmem>>, vector<16x16x8xf32>
    tpu.vector_store %arg8[%c1_84, %c8_85, %c0_86], %67 {strides = array<i32>} : memref<18x25x8xf32, #tpu.memory_space<vmem>>, vector<16x16x8xf32>,
    %cst_87 = arith.constant 0.000000e+00 : f32
    %69 = vector.broadcast %cst_87 : f32 to vector<256x8xf32>
    %c0_88 = arith.constant 0 : index
    %c7_89 = arith.constant 7 : index
    %c0_90 = arith.constant 0 : index
    %70 = vector.load %arg8[%c0_88, %c7_89, %c0_90] : memref<18x25x8xf32, #tpu.memory_space<vmem>>, vector<16x16x8xf32>
    %71 = vector.shape_cast %70 : vector<16x16x8xf32> to vector<256x8xf32>
    %c0_91 = arith.constant 0 : index
    %c0_92 = arith.constant 0 : index
    %c0_93 = arith.constant 0 : index
    %c0_94 = arith.constant 0 : index
    %72 = vector.load %arg4[%c0_91, %c0_92, %c0_93, %c0_94] : memref<3x3x8x8xf32, #tpu.memory_space<vmem>>, vector<1x1x8x8xf32>
    %73 = vector.shape_cast %72 : vector<1x1x8x8xf32> to vector<8x8xf32>
    %cst_95 = arith.constant dense<0.000000e+00> : vector<256x8xf32>
    %74 = tpu.matmul %71, %73, %cst_95 {dimension_numbers = #tpu.dot_dimension_numbers<[1], [0], [0], [1], [0, 0, 1, 1], [], []>} : vector<256x8xf32>, vector<8x8xf32>, vector<256x8xf32> -> vector<256x8xf32>
    %75 = arith.addf %69, %74 : vector<256x8xf32>
    %c0_96 = arith.constant 0 : index
    %c8_97 = arith.constant 8 : index
    %c0_98 = arith.constant 0 : index
    %76 = vector.load %arg8[%c0_96, %c8_97, %c0_98] : memref<18x25x8xf32, #tpu.memory_space<vmem>>, vector<16x16x8xf32>
    %77 = vector.shape_cast %76 : vector<16x16x8xf32> to vector<256x8xf32>
    %c0_99 = arith.constant 0 : index
    %c1_100 = arith.constant 1 : index
    %c0_101 = arith.constant 0 : index
    %c0_102 = arith.constant 0 : index
    %78 = vector.load %arg4[%c0_99, %c1_100, %c0_101, %c0_102] : memref<3x3x8x8xf32, #tpu.memory_space<vmem>>, vector<1x1x8x8xf32>
    %79 = vector.shape_cast %78 : vector<1x1x8x8xf32> to vector<8x8xf32>
    %cst_103 = arith.constant dense<0.000000e+00> : vector<256x8xf32>
    %80 = tpu.matmul %77, %79, %cst_103 {dimension_numbers = #tpu.dot_dimension_numbers<[1], [0], [0], [1], [0, 0, 1, 1], [], []>} : vector<256x8xf32>, vector<8x8xf32>, vector<256x8xf32> -> vector<256x8xf32>
    %81 = arith.addf %75, %80 : vector<256x8xf32>
    %c0_104 = arith.constant 0 : index
    %c9_105 = arith.constant 9 : index
    %c0_106 = arith.constant 0 : index
    %82 = vector.load %arg8[%c0_104, %c9_105, %c0_106] : memref<18x25x8xf32, #tpu.memory_space<vmem>>, vector<16x16x8xf32>
    %83 = vector.shape_cast %82 : vector<16x16x8xf32> to vector<256x8xf32>
    %c0_107 = arith.constant 0 : index
    %c2_108 = arith.constant 2 : index
    %c0_109 = arith.constant 0 : index
    %c0_110 = arith.constant 0 : index
    %84 = vector.load %arg4[%c0_107, %c2_108, %c0_109, %c0_110] : memref<3x3x8x8xf32, #tpu.memory_space<vmem>>, vector<1x1x8x8xf32>
    %85 = vector.shape_cast %84 : vector<1x1x8x8xf32> to vector<8x8xf32>
    %cst_111 = arith.constant dense<0.000000e+00> : vector<256x8xf32>
    %86 = tpu.matmul %83, %85, %cst_111 {dimension_numbers = #tpu.dot_dimension_numbers<[1], [0], [0], [1], [0, 0, 1, 1], [], []>} : vector<256x8xf32>, vector<8x8xf32>, vector<256x8xf32> -> vector<256x8xf32>
    %87 = arith.addf %81, %86 : vector<256x8xf32>
    %c1_112 = arith.constant 1 : index
    %c7_113 = arith.constant 7 : index
    %c0_114 = arith.constant 0 : index
    %88 = vector.load %arg8[%c1_112, %c7_113, %c0_114] : memref<18x25x8xf32, #tpu.memory_space<vmem>>, vector<16x16x8xf32>
    %89 = vector.shape_cast %88 : vector<16x16x8xf32> to vector<256x8xf32>
    %c1_115 = arith.constant 1 : index
    %c0_116 = arith.constant 0 : index
    %c0_117 = arith.constant 0 : index
    %c0_118 = arith.constant 0 : index
    %90 = vector.load %arg4[%c1_115, %c0_116, %c0_117, %c0_118] : memref<3x3x8x8xf32, #tpu.memory_space<vmem>>, vector<1x1x8x8xf32>
    %91 = vector.shape_cast %90 : vector<1x1x8x8xf32> to vector<8x8xf32>
    %cst_119 = arith.constant dense<0.000000e+00> : vector<256x8xf32>
    %92 = tpu.matmul %89, %91, %cst_119 {dimension_numbers = #tpu.dot_dimension_numbers<[1], [0], [0], [1], [0, 0, 1, 1], [], []>} : vector<256x8xf32>, vector<8x8xf32>, vector<256x8xf32> -> vector<256x8xf32>
    %93 = arith.addf %87, %92 : vector<256x8xf32>
    %c1_120 = arith.constant 1 : index
    %c8_121 = arith.constant 8 : index
    %c0_122 = arith.constant 0 : index
    %94 = vector.load %arg8[%c1_120, %c8_121, %c0_122] : memref<18x25x8xf32, #tpu.memory_space<vmem>>, vector<16x16x8xf32>
    %95 = vector.shape_cast %94 : vector<16x16x8xf32> to vector<256x8xf32>
    %c1_123 = arith.constant 1 : index
    %c1_124 = arith.constant 1 : index
    %c0_125 = arith.constant 0 : index
    %c0_126 = arith.constant 0 : index
    %96 = vector.load %arg4[%c1_123, %c1_124, %c0_125, %c0_126] : memref<3x3x8x8xf32, #tpu.memory_space<vmem>>, vector<1x1x8x8xf32>
    %97 = vector.shape_cast %96 : vector<1x1x8x8xf32> to vector<8x8xf32>
    %cst_127 = arith.constant dense<0.000000e+00> : vector<256x8xf32>
    %98 = tpu.matmul %95, %97, %cst_127 {dimension_numbers = #tpu.dot_dimension_numbers<[1], [0], [0], [1], [0, 0, 1, 1], [], []>} : vector<256x8xf32>, vector<8x8xf32>, vector<256x8xf32> -> vector<256x8xf32>
    %99 = arith.addf %93, %98 : vector<256x8xf32>
    %c1_128 = arith.constant 1 : index
    %c9_129 = arith.constant 9 : index
    %c0_130 = arith.constant 0 : index
    %100 = vector.load %arg8[%c1_128, %c9_129, %c0_130] : memref<18x25x8xf32, #tpu.memory_space<vmem>>, vector<16x16x8xf32>
    %101 = vector.shape_cast %100 : vector<16x16x8xf32> to vector<256x8xf32>
    %c1_131 = arith.constant 1 : index
    %c2_132 = arith.constant 2 : index
    %c0_133 = arith.constant 0 : index
    %c0_134 = arith.constant 0 : index
    %102 = vector.load %arg4[%c1_131, %c2_132, %c0_133, %c0_134] : memref<3x3x8x8xf32, #tpu.memory_space<vmem>>, vector<1x1x8x8xf32>
    %103 = vector.shape_cast %102 : vector<1x1x8x8xf32> to vector<8x8xf32>
    %cst_135 = arith.constant dense<0.000000e+00> : vector<256x8xf32>
    %104 = tpu.matmul %101, %103, %cst_135 {dimension_numbers = #tpu.dot_dimension_numbers<[1], [0], [0], [1], [0, 0, 1, 1], [], []>} : vector<256x8xf32>, vector<8x8xf32>, vector<256x8xf32> -> vector<256x8xf32>
    %105 = arith.addf %99, %104 : vector<256x8xf32>
    %c2_136 = arith.constant 2 : index
    %c7_137 = arith.constant 7 : index
    %c0_138 = arith.constant 0 : index
    %106 = vector.load %arg8[%c2_136, %c7_137, %c0_138] : memref<18x25x8xf32, #tpu.memory_space<vmem>>, vector<16x16x8xf32>
    %107 = vector.shape_cast %106 : vector<16x16x8xf32> to vector<256x8xf32>
    %c2_139 = arith.constant 2 : index
    %c0_140 = arith.constant 0 : index
    %c0_141 = arith.constant 0 : index
    %c0_142 = arith.constant 0 : index
    %108 = vector.load %arg4[%c2_139, %c0_140, %c0_141, %c0_142] : memref<3x3x8x8xf32, #tpu.memory_space<vmem>>, vector<1x1x8x8xf32>
    %109 = vector.shape_cast %108 : vector<1x1x8x8xf32> to vector<8x8xf32>
    %cst_143 = arith.constant dense<0.000000e+00> : vector<256x8xf32>
    %110 = tpu.matmul %107, %109, %cst_143 {dimension_numbers = #tpu.dot_dimension_numbers<[1], [0], [0], [1], [0, 0, 1, 1], [], []>} : vector<256x8xf32>, vector<8x8xf32>, vector<256x8xf32> -> vector<256x8xf32>
    %111 = arith.addf %105, %110 : vector<256x8xf32>
    %c2_144 = arith.constant 2 : index
    %c8_145 = arith.constant 8 : index
    %c0_146 = arith.constant 0 : index
    %112 = vector.load %arg8[%c2_144, %c8_145, %c0_146] : memref<18x25x8xf32, #tpu.memory_space<vmem>>, vector<16x16x8xf32>
    %113 = vector.shape_cast %112 : vector<16x16x8xf32> to vector<256x8xf32>
    %c2_147 = arith.constant 2 : index
    %c1_148 = arith.constant 1 : index
    %c0_149 = arith.constant 0 : index
    %c0_150 = arith.constant 0 : index
    %114 = vector.load %arg4[%c2_147, %c1_148, %c0_149, %c0_150] : memref<3x3x8x8xf32, #tpu.memory_space<vmem>>, vector<1x1x8x8xf32>
    %115 = vector.shape_cast %114 : vector<1x1x8x8xf32> to vector<8x8xf32>
    %cst_151 = arith.constant dense<0.000000e+00> : vector<256x8xf32>
    %116 = tpu.matmul %113, %115, %cst_151 {dimension_numbers = #tpu.dot_dimension_numbers<[1], [0], [0], [1], [0, 0, 1, 1], [], []>} : vector<256x8xf32>, vector<8x8xf32>, vector<256x8xf32> -> vector<256x8xf32>
    %117 = arith.addf %111, %116 : vector<256x8xf32>
    %c2_152 = arith.constant 2 : index
    %c9_153 = arith.constant 9 : index
    %c0_154 = arith.constant 0 : index
    %118 = vector.load %arg8[%c2_152, %c9_153, %c0_154] : memref<18x25x8xf32, #tpu.memory_space<vmem>>, vector<16x16x8xf32>
    %119 = vector.shape_cast %118 : vector<16x16x8xf32> to vector<256x8xf32>
    %c2_155 = arith.constant 2 : index
    %c2_156 = arith.constant 2 : index
    %c0_157 = arith.constant 0 : index
    %c0_158 = arith.constant 0 : index
    %120 = vector.load %arg4[%c2_155, %c2_156, %c0_157, %c0_158] : memref<3x3x8x8xf32, #tpu.memory_space<vmem>>, vector<1x1x8x8xf32>
    %121 = vector.shape_cast %120 : vector<1x1x8x8xf32> to vector<8x8xf32>
    %cst_159 = arith.constant dense<0.000000e+00> : vector<256x8xf32>
    %122 = tpu.matmul %119, %121, %cst_159 {dimension_numbers = #tpu.dot_dimension_numbers<[1], [0], [0], [1], [0, 0, 1, 1], [], []>} : vector<256x8xf32>, vector<8x8xf32>, vector<256x8xf32> -> vector<256x8xf32>
    %123 = arith.addf %117, %122 : vector<256x8xf32>
    %c0_160 = arith.constant 0 : index
    %c0_161 = arith.constant 0 : index
    %124 = vector.load %arg5[%c0_160, %c0_161] : memref<1x8xf32, #tpu.memory_space<vmem>>, vector<1x8xf32>
    %125 = vector.broadcast %124 : vector<1x8xf32> to vector<256x8xf32>
    %126 = arith.addf %123, %125 : vector<256x8xf32>
    %cst_162 = arith.constant 0.000000e+00 : f32
    %127 = vector.broadcast %cst_162 : f32 to vector<256x8xf32>
    %128 = arith.maximumf %126, %127 : vector<256x8xf32>
    %129 = vector.shape_cast %128 : vector<256x8xf32> to vector<16x16x8xf32>
    %c0_163 = arith.constant 0 : index
    %c0_164 = arith.constant 0 : index
    %c0_165 = arith.constant 0 : index
    %c0_166 = arith.constant 0 : index
    %130 = vector.load %arg6[%c0_163, %c0_164, %c0_165, %c0_166] : memref<1x16x16x8xf32, #tpu.memory_space<vmem>>, vector<1x16x16x8xf32>
    %131 = vector.shape_cast %130 : vector<1x16x16x8xf32> to vector<16x16x8xf32>
    %132 = vector.shape_cast %129 : vector<16x16x8xf32> to vector<1x16x16x8xf32>
    tpu.vector_store %arg6[%c0_163, %c0_164, %c0_165, %c0_166], %132 {strides = array<i32>} : memref<1x16x16x8xf32, #tpu.memory_space<vmem>>, vector<1x16x16x8xf32>,
    return
  }
  func.func @transform_0(%arg0: i32) -> (i32, i32, i32, i32) {
    %c0_i32 = arith.constant 0 : i32
    %c0_i32_0 = arith.constant 0 : i32
    %c0_i32_1 = arith.constant 0 : i32
    %c0_i32_2 = arith.constant 0 : i32
    return %arg0, %c0_i32, %c0_i32_0, %c0_i32_1 : i32, i32, i32, i32
  }
  func.func @transform_1(%arg0: i32) -> (i32, i32, i32, i32) {
    %c0_i32 = arith.constant 0 : i32
    %c0_i32_0 = arith.constant 0 : i32
    %c0_i32_1 = arith.constant 0 : i32
    %c0_i32_2 = arith.constant 0 : i32
    %c0_i32_3 = arith.constant 0 : i32
    return %c0_i32, %c0_i32_0, %c0_i32_1, %c0_i32_2 : i32, i32, i32, i32
  }
  func.func @transform_2(%arg0: i32) -> (i32, i32) {
    %c0_i32 = arith.constant 0 : i32
    %c0_i32_0 = arith.constant 0 : i32
    %c0_i32_1 = arith.constant 0 : i32
    return %c0_i32, %c0_i32_0 : i32, i32
  }
  func.func @transform_3(%arg0: i32) -> (i32, i32, i32, i32) {
    %c0_i32 = arith.constant 0 : i32
    %c0_i32_0 = arith.constant 0 : i32
    %c0_i32_1 = arith.constant 0 : i32
    %c0_i32_2 = arith.constant 0 : i32
    %c0_i32_3 = arith.constant 0 : i32
    return %c0_i32, %c0_i32_0, %c0_i32_1, %c0_i32_2 : i32, i32, i32, i32
  }
  func.func @transform_4(%arg0: i32) -> (i32, i32) {
    %c0_i32 = arith.constant 0 : i32
    %c0_i32_0 = arith.constant 0 : i32
    %c0_i32_1 = arith.constant 0 : i32
    return %c0_i32, %c0_i32_0 : i32, i32
  }
  func.func @transform_5(%arg0: i32) -> (i32, i32, i32, i32) {
    %c0_i32 = arith.constant 0 : i32
    %c0_i32_0 = arith.constant 0 : i32
    %c0_i32_1 = arith.constant 0 : i32
    %c0_i32_2 = arith.constant 0 : i32
    return %arg0, %c0_i32, %c0_i32_0, %c0_i32_1 : i32, i32, i32, i32
  }
}

</mosaic_0001>

<bundles_post_ra>
// kernel: unet_conv2_forward.1
= control target key start
LH: loop header
LB: loop body
LE: loop exit
PB: predicated region body
PF: predicated region fallthrough
CT: control target
= control target key end

     0   :  { %s10236_s18 = smov 0   ;;  %s12377_s0 = inlined_call_operand.vmem [shape: f32[2,16,16,4], index: 0, kind: input, shape index: {}]   ;;  %s12378_s1 = inlined_call_operand.vmem [shape: f32[3,3,4,8], index: 1, kind: input, shape index: {}]   ;;  %s12379_s2 = inlined_call_operand.vmem [shape: f32[1,8], index: 2, kind: input, shape index: {}]   ;;  %s12380_s3 = inlined_call_operand.vmem [shape: f32[3,3,8,8], index: 3, kind: input, shape index: {}]   ;;  %s12381_s4 = inlined_call_operand.vmem [shape: f32[1,8], index: 4, kind: input, shape index: {}]   ;;  %s12382_s5 = inlined_call_operand.vmem [shape: f32[2,16,16,8], index: 5, kind: output, shape index: {}]  }
   0x1 LB: > { %s7566_s19 = sadd.s32 4294967295, %s10203_s18   ;;  %p7570_p0 = scmp.ge.s32.totalorder %s10203_s18, 1  ;;  %s10203_s18 = sphi %s10236_s18, %s15_s18  }
   0x2   : > { %p187_p1 = scmp.lt.s32.totalorder %s10203_s18, 3 }
   0x4   : > { %p188_p2 = pnand %p7570_p0, %p187_p1 }
   0x6   : > { %191 = sbr.rel (%p188_p2) target bundleno = 1579 (0x62b), region = 40 }
   0xd   : > { %v7575_v0 = vld [vmem:[%s12378_s1 + $0x4] sm:$0xf]  ;;  %vm527_vm0 = vcmask 1043456   ;;  %vm225_vm1 = vcmask 31744   ;;  %p10249_p3 = scmp.lt.s32.totalorder %s7566_s19, 1  ;;  %v12383_v1 = vmov 0.0  }
   0xe   : > { %8776 = vmatprep.subr.msk.mxu0 %vm527_vm0, %v7575_v0  ;;  %227 = vst.msk [vmem:[#allocation2 + $0x8] sm:$0xff] %vm225_vm1, %v12383_v1  ;;  %226 = vst.msk [vmem:[#allocation2] sm:$0xff] %vm225_vm1, %v12383_v1  ;;  %v396_v2 = vld [vmem:[%s12378_s1] sm:$0xf]  ;;  %vm229_vm2 = vcmask 24576   ;;  %vm3882_vm3 = vcmask 64512  }
   0xf   : > { %228 = vst.msk [vmem:[#allocation2 + $0x10] sm:$0xff] %vm225_vm1, %v12383_v1  ;;  %231 = vst.msk [vmem:[#allocation2 + $0x20] sm:$0xff] %vm225_vm1, %v12383_v1  ;;  %8777 = vmatpush3.msk.msra.mxu0 %vm527_vm0, %v7575_v0  ;;  %s12641_s19 = smov (!%p10249_p3, %s7566_s19), 1  ;;  %v10429_v9 = vld [vmem:[%s12378_s1 + $0x8] sm:$0xf]  ;;  %vm3886_vm4 = vcmask 57344  }
  0x10   : > { %232 = vst.msk [vmem:[#allocation2 + $0x28] sm:$0xff] %vm225_vm1, %v12383_v1  ;;  %233 = vst.msk [vmem:[#allocation2 + $0x30] sm:$0xff] %vm225_vm1, %v12383_v1  ;;  %8826 = vmatprep.subr.msk.mxu0 %vm527_vm0, %v396_v2  ;;  %s8180_s25 = sshll.u32 %s12641_s19, 8 }
  0x11   : > { %235 = vst.msk [vmem:[#allocation2 + $0x40] sm:$0xff] %vm225_vm1, %v12383_v1  ;;  %236 = vst.msk [vmem:[#allocation2 + $0x48] sm:$0xff] %vm225_vm1, %v12383_v1  ;;  %s10415_s28 = scalar_lea.vmem %s12377_s0, %s8180_s25  ;;  %s12277_s22 = scalar_lea.vmem %s12382_s5, %s8180_s25 }
  0x12   : > { %237 = vst.msk [vmem:[#allocation2 + $0x50] sm:$0xff] %vm225_vm1, %v12383_v1  ;;  %239 = vst.msk [vmem:[#allocation2 + $0x60] sm:$0xff] %vm225_vm1, %v12383_v1  ;;  %v299_v3 = vld [vmem:[%s10415_s28] sm:$0xff]  ;;  %v300_v4 = vld [vmem:[%s10415_s28 + $0x8] sm:$0xff] }
  0x13   : > { %240 = vst.msk [vmem:[#allocation2 + $0x68] sm:$0xff] %vm225_vm1, %v12383_v1  ;;  %241 = vst.msk [vmem:[#allocation2 + $0x70] sm:$0xff] %vm225_vm1, %v12383_v1  ;;  %v301_v5 = vld [vmem:[%s10415_s28 + $0x10] sm:$0xff]  ;;  %v302_v6 = vld [vmem:[%s10415_s28 + $0x18] sm:$0xff] }
  0x14   : > { %243 = vst.msk [vmem:[#allocation2 + $0x80] sm:$0xff] %vm225_vm1, %v12383_v1  ;;  %244 = vst.msk [vmem:[#allocation2 + $0x88] sm:$0xff] %vm225_vm1, %v12383_v1  ;;  %v303_v7 = vld [vmem:[%s10415_s28 + $0x20] sm:$0xff]  ;;  %v304_v8 = vld [vmem:[%s10415_s28 + $0x28] sm:$0xff] }
  0x15   : > { %245 = vst.msk [vmem:[#allocation2 + $0x90] sm:$0xff] %vm225_vm1, %v12383_v1  ;;  %247 = vst.msk [vmem:[#allocation2 + $0xa0] sm:$0xff] %vm225_vm1, %v12383_v1  ;;  %v397_v10 = vld [vmem:[#allocation2 + $0x8] sm:$0xff]  ;;  %v305_v12 = vld [vmem:[%s10415_s28 + $0x30] sm:$0xff] }
  0x16   : > { %248 = vst.msk [vmem:[#allocation2 + $0xa8] sm:$0xff] %vm225_vm1, %v12383_v1  ;;  %249 = vst.msk [vmem:[#allocation2 + $0xb0] sm:$0xff] %vm225_vm1, %v12383_v1  ;;  %v398_v11 = vld [vmem:[#allocation2 + $0x10] sm:$0xff]  ;;  %8778 = vmatprep.mubr.msk.f32.mxu0 %vm225_vm1, %v397_v10  ;;  %v306_v13 = vld [vmem:[%s10415_s28 + $0x38] sm:$0xff] }
  0x17   : > { %251 = vst.msk [vmem:[#allocation2 + $0xc0] sm:$0xff] %vm225_vm1, %v12383_v1  ;;  %252 = vst.msk [vmem:[#allocation2 + $0xc8] sm:$0xff] %vm225_vm1, %v12383_v1  ;;  %v307_v14 = vld [vmem:[%s10415_s28 + $0x40] sm:$0xff]  ;;  %v308_v15 = vld [vmem:[%s10415_s28 + $0x48] sm:$0xff]  ;;  %8779 = vmatmul.mubr.msk.f32.vlgmr.msra.gmra.mrb[0].mxu0 %vm225_vm1, %v398_v11 }
  0x18   : > { %253 = vst.msk [vmem:[#allocation2 + $0xd0] sm:$0xff] %vm225_vm1, %v12383_v1  ;;  %255 = vst.msk [vmem:[#allocation2 + $0xe0] sm:$0xff] %vm225_vm1, %v12383_v1  ;;  %v309_v16 = vld [vmem:[%s10415_s28 + $0x50] sm:$0xff]  ;;  %v310_v17 = vld [vmem:[%s10415_s28 + $0x58] sm:$0xff]  ;;  %8827 = vmatpush3.msk.msra.mxu0 %vm527_vm0, %v396_v2 }
  0x19   : > { %256 = vst.msk [vmem:[#allocation2 + $0xe8] sm:$0xff] %vm225_vm1, %v12383_v1  ;;  %257 = vst.msk [vmem:[#allocation2 + $0xf0] sm:$0xff] %vm225_vm1, %v12383_v1  ;;  %v311_v18 = vld [vmem:[%s10415_s28 + $0x60] sm:$0xff]  ;;  %v312_v19 = vld [vmem:[%s10415_s28 + $0x68] sm:$0xff]  ;;  %8876 = vmatprep.subr.msk.mxu0 %vm527_vm0, %v10429_v9 }
  0x1a   : > { %259 = vst.msk [vmem:[#allocation2 + $0x100] sm:$0xff] %vm225_vm1, %v12383_v1  ;;  %260 = vst.msk [vmem:[#allocation2 + $0x108] sm:$0xff] %vm225_vm1, %v12383_v1  ;;  %v313_v20 = vld [vmem:[%s10415_s28 + $0x70] sm:$0xff]  ;;  %v314_v21 = vld [vmem:[%s10415_s28 + $0x78] sm:$0xff] }
  0x1b   : > { %261 = vst.msk [vmem:[#allocation2 + $0x110] sm:$0xff] %vm225_vm1, %v12383_v1  ;;  %263 = vst.msk [vmem:[#allocation2 + $0x120] sm:$0xff] %vm225_vm1, %v12383_v1  ;;  %v315_v22 = vld [vmem:[%s10415_s28 + $0x80] sm:$0xff]  ;;  %v316_v23 = vld [vmem:[%s10415_s28 + $0x88] sm:$0xff] }
  0x1c   : > { %264 = vst.msk [vmem:[#allocation2 + $0x128] sm:$0xff] %vm225_vm1, %v12383_v1  ;;  %265 = vst.msk [vmem:[#allocation2 + $0x130] sm:$0xff] %vm225_vm1, %v12383_v1  ;;  %v317_v24 = vld [vmem:[%s10415_s28 + $0x90] sm:$0xff]  ;;  %v318_v25 = vld [vmem:[%s10415_s28 + $0x98] sm:$0xff] }
  0x1d   : > { %267 = vst.msk [vmem:[#allocation2 + $0x140] sm:$0xff] %vm225_vm1, %v12383_v1  ;;  %268 = vst.msk [vmem:[#allocation2 + $0x148] sm:$0xff] %vm225_vm1, %v12383_v1  ;;  %v319_v26 = vld [vmem:[%s10415_s28 + $0xa0] sm:$0xff]  ;;  %v320_v27 = vld [vmem:[%s10415_s28 + $0xa8] sm:$0xff] }
  0x1e   : > { %269 = vst.msk [vmem:[#allocation2 + $0x150] sm:$0xff] %vm225_vm1, %v12383_v1  ;;  %271 = vst.msk [vmem:[#allocation2 + $0x160] sm:$0xff] %vm225_vm1, %v12383_v1  ;;  %v321_v31 = vld [vmem:[%s10415_s28 + $0xb0] sm:$0xff]  ;;  %v322_v32 = vld [vmem:[%s10415_s28 + $0xb8] sm:$0xff] }
  0x1f   : > { %272 = vst.msk [vmem:[#allocation2 + $0x168] sm:$0xff] %vm225_vm1, %v12383_v1  ;;  %273 = vst.msk [vmem:[#allocation2 + $0x170] sm:$0xff] %vm225_vm1, %v12383_v1  ;;  %v323_v37 = vld [vmem:[%s10415_s28 + $0xc0] sm:$0xff]  ;;  %v324_v38 = vld [vmem:[%s10415_s28 + $0xc8] sm:$0xff] }
  0x20   : > { %275 = vst.msk [vmem:[#allocation2 + $0x180] sm:$0xff] %vm225_vm1, %v12383_v1  ;;  %276 = vst.msk [vmem:[#allocation2 + $0x188] sm:$0xff] %vm225_vm1, %v12383_v1  ;;  %v325_v39 = vld [vmem:[%s10415_s28 + $0xd0] sm:$0xff]  ;;  %v326_v40 = vld [vmem:[%s10415_s28 + $0xd8] sm:$0xff] }
  0x21   : > { %277 = vst.msk [vmem:[#allocation2 + $0x190] sm:$0xff] %vm225_vm1, %v12383_v1  ;;  %279 = vst.msk [vmem:[#allocation2 + $0x1a0] sm:$0xff] %vm225_vm1, %v12383_v1  ;;  %v327_v41 = vld [vmem:[%s10415_s28 + $0xe0] sm:$0xff]  ;;  %v328_v42 = vld [vmem:[%s10415_s28 + $0xe8] sm:$0xff] }
  0x22   : > { %280 = vst.msk [vmem:[#allocation2 + $0x1a8] sm:$0xff] %vm225_vm1, %v12383_v1  ;;  %281 = vst.msk [vmem:[#allocation2 + $0x1b0] sm:$0xff] %vm225_vm1, %v12383_v1 }
  0x23   : > { %283 = vst.msk [vmem:[#allocation2 + $0x1c0] sm:$0xff] %vm225_vm1, %v12383_v1  ;;  %284 = vst.msk [vmem:[#allocation2 + $0x1c8] sm:$0xff] %vm225_vm1, %v12383_v1 }
  0x24   : > { %285 = vst.msk [vmem:[#allocation2 + $0x1d0] sm:$0xff] %vm225_vm1, %v12383_v1  ;;  %287 = vst.msk [vmem:[#allocation2 + $0x1e0] sm:$0xff] %vm225_vm1, %v12383_v1 }
  0x25   : > { %288 = vst.msk [vmem:[#allocation2 + $0x1e8] sm:$0xff] %vm225_vm1, %v12383_v1  ;;  %289 = vst.msk [vmem:[#allocation2 + $0x1f0] sm:$0xff] %vm225_vm1, %v12383_v1 }
  0x26   : > { %291 = vst.msk [vmem:[#allocation2 + $0x200] sm:$0xff] %vm225_vm1, %v12383_v1  ;;  %292 = vst.msk [vmem:[#allocation2 + $0x208] sm:$0xff] %vm225_vm1, %v12383_v1 }
  0x27   : > { %293 = vst.msk [vmem:[#allocation2 + $0x210] sm:$0xff] %vm225_vm1, %v12383_v1  ;;  %295 = vst.msk [vmem:[#allocation2 + $0x220] sm:$0xff] %vm225_vm1, %v12383_v1 }
  0x28   : > { %296 = vst.msk [vmem:[#allocation2 + $0x228] sm:$0xff] %vm225_vm1, %v12383_v1  ;;  %297 = vst.msk [vmem:[#allocation2 + $0x230] sm:$0xff] %vm225_vm1, %v12383_v1 }
  0x29   : > { %230 = vst.msk [vmem:[#allocation2 + $0x18] sm:$0x1] %vm229_vm2, %v12383_v1  ;;  %234 = vst.msk [vmem:[#allocation2 + $0x38] sm:$0x1] %vm229_vm2, %v12383_v1 }
  0x2a   : > { %238 = vst.msk [vmem:[#allocation2 + $0x58] sm:$0x1] %vm229_vm2, %v12383_v1  ;;  %242 = vst.msk [vmem:[#allocation2 + $0x78] sm:$0x1] %vm229_vm2, %v12383_v1 }
  0x2b   : > { %246 = vst.msk [vmem:[#allocation2 + $0x98] sm:$0x1] %vm229_vm2, %v12383_v1  ;;  %250 = vst.msk [vmem:[#allocation2 + $0xb8] sm:$0x1] %vm229_vm2, %v12383_v1 }
  0x2c   : > { %254 = vst.msk [vmem:[#allocation2 + $0xd8] sm:$0x1] %vm229_vm2, %v12383_v1  ;;  %258 = vst.msk [vmem:[#allocation2 + $0xf8] sm:$0x1] %vm229_vm2, %v12383_v1 }
  0x2d   : > { %262 = vst.msk [vmem:[#allocation2 + $0x118] sm:$0x1] %vm229_vm2, %v12383_v1  ;;  %266 = vst.msk [vmem:[#allocation2 + $0x138] sm:$0x1] %vm229_vm2, %v12383_v1 }
  0x2e   : > { %270 = vst.msk [vmem:[#allocation2 + $0x158] sm:$0x1] %vm229_vm2, %v12383_v1  ;;  %274 = vst.msk [vmem:[#allocation2 + $0x178] sm:$0x1] %vm229_vm2, %v12383_v1 }
  0x2f   : > { %278 = vst.msk [vmem:[#allocation2 + $0x198] sm:$0x1] %vm229_vm2, %v12383_v1  ;;  %282 = vst.msk [vmem:[#allocation2 + $0x1b8] sm:$0x1] %vm229_vm2, %v12383_v1 }
  0x30   : > { %286 = vst.msk [vmem:[#allocation2 + $0x1d8] sm:$0x1] %vm229_vm2, %v12383_v1  ;;  %290 = vst.msk [vmem:[#allocation2 + $0x1f8] sm:$0x1] %vm229_vm2, %v12383_v1 }
  0x31   : > { %294 = vst.msk [vmem:[#allocation2 + $0x218] sm:$0x1] %vm229_vm2, %v12383_v1  ;;  %298 = vst.msk [vmem:[#allocation2 + $0x238] sm:$0x1] %vm229_vm2, %v12383_v1 }
  0x32   : > { %332 = vst.msk [vmem:[#allocation2 + $0x28] sm:$0xff] %vm225_vm1, %v299_v3  ;;  %333 = vst.msk [vmem:[#allocation2 + $0x30] sm:$0xff] %vm225_vm1, %v300_v4  ;;  %v364_v3 = vld [vmem:[#allocation2 + $0x7] sm:$0xff]  ;;  %v365_v4 = vld [vmem:[#allocation2 + $0xf] sm:$0xff] }
  0x33   : > { %334 = vst.msk [vmem:[#allocation2 + $0x48] sm:$0xff] %vm225_vm1, %v301_v5  ;;  %335 = vst.msk [vmem:[#allocation2 + $0x50] sm:$0xff] %vm225_vm1, %v302_v6  ;;  %v10613_v6 = vld [vmem:[%s12378_s1 + $0xc] sm:$0xf] }
  0x34   : > { %336 = vst.msk [vmem:[#allocation2 + $0x68] sm:$0xff] %vm225_vm1, %v303_v7  ;;  %337 = vst.msk [vmem:[#allocation2 + $0x70] sm:$0xff] %vm225_vm1, %v304_v8 }
  0x35   : > { %338 = vst.msk [vmem:[#allocation2 + $0x88] sm:$0xff] %vm225_vm1, %v305_v12  ;;  %339 = vst.msk [vmem:[#allocation2 + $0x90] sm:$0xff] %vm225_vm1, %v306_v13 }
  0x36   : > { %340 = vst.msk [vmem:[#allocation2 + $0xa8] sm:$0xff] %vm225_vm1, %v307_v14  ;;  %341 = vst.msk [vmem:[#allocation2 + $0xb0] sm:$0xff] %vm225_vm1, %v308_v15 }
  0x37   : > { %342 = vst.msk [vmem:[#allocation2 + $0xc8] sm:$0xff] %vm225_vm1, %v309_v16  ;;  %343 = vst.msk [vmem:[#allocation2 + $0xd0] sm:$0xff] %vm225_vm1, %v310_v17 }
  0x38   : > { %344 = vst.msk [vmem:[#allocation2 + $0xe8] sm:$0xff] %vm225_vm1, %v311_v18  ;;  %345 = vst.msk [vmem:[#allocation2 + $0xf0] sm:$0xff] %vm225_vm1, %v312_v19 }
  0x39   : > { %346 = vst.msk [vmem:[#allocation2 + $0x108] sm:$0xff] %vm225_vm1, %v313_v20  ;;  %347 = vst.msk [vmem:[#allocation2 + $0x110] sm:$0xff] %vm225_vm1, %v314_v21  ;;  %v10468_v28 = vld [vmem:[#allocation2 + $0x28] sm:$0xff]  ;;  %v10470_v29 = vld [vmem:[#allocation2 + $0x30] sm:$0xff] }
  0x3a   : > { %348 = vst.msk [vmem:[#allocation2 + $0x128] sm:$0xff] %vm225_vm1, %v315_v22  ;;  %349 = vst.msk [vmem:[#allocation2 + $0x130] sm:$0xff] %vm225_vm1, %v316_v23  ;;  %v10472_v30 = vld [vmem:[#allocation2 + $0x48] sm:$0xff]  ;;  %8781 = vmatprep.mubr.msk.f32.mxu0 %vm225_vm1, %v10468_v28  ;;  %v10485_v33 = vld [vmem:[#allocation2 + $0x50] sm:$0xff] }
  0x3b   : > { %350 = vst.msk [vmem:[#allocation2 + $0x148] sm:$0xff] %vm225_vm1, %v317_v24  ;;  %351 = vst.msk [vmem:[#allocation2 + $0x150] sm:$0xff] %vm225_vm1, %v318_v25  ;;  %8782 = vmatmul.mubr.msk.f32.gmra.mrb[2].mxu0 %vm225_vm1, %v10470_v29  ;;  %v10489_v34 = vld [vmem:[#allocation2 + $0x68] sm:$0xff]  ;;  %v10495_v35 = vld [vmem:[#allocation2 + $0x70] sm:$0xff] }
  0x3c   : > { %352 = vst.msk [vmem:[#allocation2 + $0x168] sm:$0xff] %vm225_vm1, %v319_v26  ;;  %353 = vst.msk [vmem:[#allocation2 + $0x170] sm:$0xff] %vm225_vm1, %v320_v27  ;;  %8784 = vmatprep.mubr.msk.f32.mxu0 %vm225_vm1, %v10472_v30  ;;  %v10497_v36 = vld [vmem:[#allocation2 + $0x88] sm:$0xff]  ;;  %v10515_v43 = vld [vmem:[#allocation2 + $0x90] sm:$0xff] }
  0x3d   : > { %354 = vst.msk [vmem:[#allocation2 + $0x188] sm:$0xff] %vm225_vm1, %v321_v31  ;;  %355 = vst.msk [vmem:[#allocation2 + $0x190] sm:$0xff] %vm225_vm1, %v322_v32  ;;  %v10517_v44 = vld [vmem:[#allocation2 + $0xa8] sm:$0xff]  ;;  %v10523_v45 = vld [vmem:[#allocation2 + $0xb0] sm:$0xff] }
  0x3e   : > { %356 = vst.msk [vmem:[#allocation2 + $0x1a8] sm:$0xff] %vm225_vm1, %v323_v37  ;;  %357 = vst.msk [vmem:[#allocation2 + $0x1b0] sm:$0xff] %vm225_vm1, %v324_v38  ;;  %v10525_v46 = vld [vmem:[#allocation2 + $0xc8] sm:$0xff]  ;;  %v10531_v47 = vld [vmem:[#allocation2 + $0xd0] sm:$0xff] }
  0x3f   : > { %8785 = vmatmul.mubr.msk.f32.gmra.mrb[4].mxu0 %vm225_vm1, %v10485_v33  ;;  %358 = vst.msk [vmem:[#allocation2 + $0x1c8] sm:$0xff] %vm225_vm1, %v325_v39  ;;  %359 = vst.msk [vmem:[#allocation2 + $0x1d0] sm:$0xff] %vm225_vm1, %v326_v40  ;;  %v10533_v48 = vld [vmem:[#allocation2 + $0xe8] sm:$0xff]  ;;  %v10539_v49 = vld [vmem:[#allocation2 + $0xf0] sm:$0xff] }
  0x40   : > { %8787 = vmatprep.mubr.msk.f32.mxu0 %vm225_vm1, %v10489_v34  ;;  %360 = vst.msk [vmem:[#allocation2 + $0x1e8] sm:$0xff] %vm225_vm1, %v327_v41  ;;  %361 = vst.msk [vmem:[#allocation2 + $0x1f0] sm:$0xff] %vm225_vm1, %v328_v42  ;;  %v10541_v50 = vld [vmem:[#allocation2 + $0x108] sm:$0xff]  ;;  %v10547_v51 = vld [vmem:[#allocation2 + $0x110] sm:$0xff] }
  0x41   : > { %v10549_v52 = vld [vmem:[#allocation2 + $0x128] sm:$0xff]  ;;  %v10555_v53 = vld [vmem:[#allocation2 + $0x130] sm:$0xff]  ;;  %v330_v41 = vld [vmem:[%s10415_s28 + $0xf8] sm:$0xff] }
  0x42   : > { %v10557_v54 = vld [vmem:[#allocation2 + $0x148] sm:$0xff]  ;;  %v10563_v55 = vld [vmem:[#allocation2 + $0x150] sm:$0xff]  ;;  %363 = vst.msk [vmem:[#allocation2 + $0x210] sm:$0xff] %vm225_vm1, %v330_v41 }
  0x43   : > { %8788 = vmatmul.mubr.msk.f32.gmra.mrb[6].mxu0 %vm225_vm1, %v10495_v35  ;;  %v10565_v56 = vld [vmem:[#allocation2 + $0x168] sm:$0xff]  ;;  %v10571_v57 = vld [vmem:[#allocation2 + $0x170] sm:$0xff] }
  0x44   : > { %8790 = vmatprep.mubr.msk.f32.mxu0 %vm225_vm1, %v10497_v36  ;;  %v10573_v58 = vld [vmem:[#allocation2 + $0x188] sm:$0xff]  ;;  %v10579_v59 = vld [vmem:[#allocation2 + $0x190] sm:$0xff] }
  0x45   : > { %v10581_v60 = vld [vmem:[#allocation2 + $0x1a8] sm:$0xff]  ;;  %v10587_v61 = vld [vmem:[#allocation2 + $0x1b0] sm:$0xff] }
  0x46   : > { %v10589_v62 = vld [vmem:[#allocation2 + $0x1c8] sm:$0xff]  ;;  %v10595_v63 = vld [vmem:[#allocation2 + $0x1d0] sm:$0xff] }
  0x47   : > { %8791 = vmatmul.mubr.msk.f32.gmra.mrb[8].mxu0 %vm225_vm1, %v10515_v43  ;;  %12496 = vst [vmem:[#allocation4_spill] sm:$0xff] %v10595_v63  ;;  %v10597_v0 = vld [vmem:[#allocation2 + $0x1e8] sm:$0xff]  ;;  %v10603_v2 = vld [vmem:[#allocation2 + $0x1f0] sm:$0xff] }
  0x48   : > { %8793 = vmatprep.mubr.msk.f32.mxu0 %vm225_vm1, %v10517_v44  ;;  %12497 = vst [vmem:[#allocation5_spill] sm:$0xff] %v10597_v0  ;;  %12498 = vst [vmem:[#allocation6_spill] sm:$0xff] %v10603_v2  ;;  %v10608_v5 = vld [vmem:[#allocation2 + $0x27] sm:$0xff]  ;;  %v10620_v7 = vld [vmem:[#allocation2 + $0x2f] sm:$0xff] }
  0x49   : > { %v10622_v8 = vld [vmem:[#allocation2 + $0x47] sm:$0xff]  ;;  %v10630_v10 = vld [vmem:[#allocation2 + $0x4f] sm:$0xff] }
  0x4a   : > { %v10632_v11 = vld [vmem:[#allocation2 + $0x67] sm:$0xff]  ;;  %v10646_v13 = vld [vmem:[#allocation2 + $0x8f] sm:$0xff] }
  0x4b   : > { %8794 = vmatmul.mubr.msk.f32.gmra.mrb[10].mxu0 %vm225_vm1, %v10523_v45  ;;  %v10640_v12 = vld [vmem:[#allocation2 + $0x87] sm:$0xff]  ;;  %v10654_v15 = vld [vmem:[#allocation2 + $0xaf] sm:$0xff] }
  0x4c   : > { %8796 = vmatprep.mubr.msk.f32.mxu0 %vm225_vm1, %v10525_v46  ;;  %v10648_v14 = vld [vmem:[#allocation2 + $0xa7] sm:$0xff]  ;;  %v10662_v17 = vld [vmem:[#allocation2 + $0xcf] sm:$0xff] }
  0x4d   : > { %v10656_v16 = vld [vmem:[#allocation2 + $0xc7] sm:$0xff]  ;;  %v10670_v19 = vld [vmem:[#allocation2 + $0xef] sm:$0xff] }
  0x4e   : > { %v10664_v18 = vld [vmem:[#allocation2 + $0xe7] sm:$0xff]  ;;  %v10678_v21 = vld [vmem:[#allocation2 + $0x10f] sm:$0xff] }
  0x4f   : > { %8797 = vmatmul.mubr.msk.f32.gmra.mrb[12].mxu0 %vm225_vm1, %v10531_v47  ;;  %v10672_v20 = vld [vmem:[#allocation2 + $0x107] sm:$0xff]  ;;  %v10686_v23 = vld [vmem:[#allocation2 + $0x12f] sm:$0xff] }
  0x50   : > { %8799 = vmatprep.mubr.msk.f32.mxu0 %vm225_vm1, %v10533_v48  ;;  %v10680_v22 = vld [vmem:[#allocation2 + $0x127] sm:$0xff]  ;;  %v10694_v25 = vld [vmem:[#allocation2 + $0x14f] sm:$0xff] }
  0x51   : > { %v10688_v24 = vld [vmem:[#allocation2 + $0x147] sm:$0xff]  ;;  %v10702_v27 = vld [vmem:[#allocation2 + $0x16f] sm:$0xff] }
  0x52   : > { %v10696_v26 = vld [vmem:[#allocation2 + $0x167] sm:$0xff]  ;;  %v10710_v32 = vld [vmem:[#allocation2 + $0x18f] sm:$0xff] }
  0x53   : > { %8800 = vmatmul.mubr.msk.f32.gmra.mrb[14].mxu0 %vm225_vm1, %v10539_v49  ;;  %v10704_v31 = vld [vmem:[#allocation2 + $0x187] sm:$0xff]  ;;  %v10718_v38 = vld [vmem:[#allocation2 + $0x1af] sm:$0xff] }
  0x54   : > { %8802 = vmatprep.mubr.msk.f32.mxu0 %vm225_vm1, %v10541_v50  ;;  %v10712_v37 = vld [vmem:[#allocation2 + $0x1a7] sm:$0xff]  ;;  %v329_v40 = vld [vmem:[%s10415_s28 + $0xf0] sm:$0xff] }
  0x55   : > { %v10720_v39 = vld [vmem:[#allocation2 + $0x1c7] sm:$0xff]  ;;  %362 = vst.msk [vmem:[#allocation2 + $0x208] sm:$0xff] %vm225_vm1, %v329_v40  ;;  %v10730_v42 = vld [vmem:[#allocation2 + $0x1cf] sm:$0xff] }
  0x56   : > { %v1080_v40 = vld [vmem:[#allocation2 + $0x9] sm:$0xff]  ;;  %v1081_v41 = vld [vmem:[#allocation2 + $0x11] sm:$0xff] }
  0x57   : > { %8803 = vmatmul.mubr.msk.f32.gmra.mrb[16].mxu0 %vm225_vm1, %v10547_v51  ;;  %v10743_v1 = vld [vmem:[#allocation2 + $0x29] sm:$0xff] }
  0x58   : > { %8805 = vmatprep.mubr.msk.f32.mxu0 %vm225_vm1, %v10549_v52  ;;  %12499 = vst [vmem:[#allocation7_spill] sm:$0xff] %v10743_v1 }
  0x5b   : > { %8806 = vmatmul.mubr.msk.f32.gmra.mrb[18].mxu0 %vm225_vm1, %v10555_v53 }
  0x5c   : > { %8808 = vmatprep.mubr.msk.f32.mxu0 %vm225_vm1, %v10557_v54 }
  0x5f   : > { %8809 = vmatmul.mubr.msk.f32.gmra.mrb[20].mxu0 %vm225_vm1, %v10563_v55 }
  0x60   : > { %8811 = vmatprep.mubr.msk.f32.mxu0 %vm225_vm1, %v10565_v56 }
  0x63   : > { %8812 = vmatmul.mubr.msk.f32.gmra.mrb[22].mxu0 %vm225_vm1, %v10571_v57 }
  0x64   : > { %8814 = vmatprep.mubr.msk.f32.mxu0 %vm225_vm1, %v10573_v58 }
  0x67   : > { %8815 = vmatmul.mubr.msk.f32.gmra.mrb[24].mxu0 %vm225_vm1, %v10579_v59 }
  0x68   : > { %8817 = vmatprep.mubr.msk.f32.mxu0 %vm225_vm1, %v10581_v60 }
  0x6b   : > { %8818 = vmatmul.mubr.msk.f32.gmra.mrb[26].mxu0 %vm225_vm1, %v10587_v61 }
  0x6c   : > { %8820 = vmatprep.mubr.msk.f32.mxu0 %vm225_vm1, %v10589_v62 }
  0x6f   : > { %8821 = vmatmul.mubr.msk.f32.gmra.mrb[28].mxu0 %vm225_vm1, %v10595_v63  ;;  %v10757_v63 = vld [vmem:[#allocation2 + $0x49] sm:$0xff] }
  0x70   : > { %8823 = vmatprep.mubr.msk.f32.mxu0 %vm225_vm1, %v10597_v0  ;;  %v10755_v0 = vld [vmem:[#allocation2 + $0x31] sm:$0xff]  ;;  %12501 = vst [vmem:[#allocation9_spill] sm:$0xff] %v10757_v63 }
  0x71   : > { %12500 = vst [vmem:[#allocation8_spill] sm:$0xff] %v10755_v0 }
  0x73   : > { %8824 = vmatmul.mubr.msk.f32.gmra.mrb[30].mxu0 %vm225_vm1, %v10603_v2  ;;  %v10748_v2 = vld [vmem:[%s12378_s1 + $0x10] sm:$0xf] }
  0x74   : > { %8828 = vmatprep.mubr.msk.f32.mxu0 %vm225_vm1, %v364_v3  ;;  %v10732_v3 = vld [vmem:[#allocation2 + $0x1e7] sm:$0xff] }
  0x77   : > { %8829 = vmatmul.mubr.msk.f32.vlgmr.msra.gmra.mrb[0].mxu0 %vm225_vm1, %v365_v4  ;;  %v10738_v4 = vld [vmem:[#allocation2 + $0x1ef] sm:$0xff] }
  0x78   : > { %8877 = vmatpush3.msk.msra.mxu0 %vm527_vm0, %v10429_v9  ;;  %8831 = vmatprep.mubr.msk.f32.mxu0 %vm225_vm1, %v10608_v5  ;;  %v10638_v9 = vld [vmem:[#allocation2 + $0x6f] sm:$0xff] }
  0x79   : > { %8926 = vmatprep.subr.msk.mxu0 %vm527_vm0, %v10613_v6 }
  0x7b   : > { %8832 = vmatmul.mubr.msk.f32.gmra.mrb[2].mxu0 %vm225_vm1, %v10620_v7 }
  0x7c   : > { %8834 = vmatprep.mubr.msk.f32.mxu0 %vm225_vm1, %v10622_v8 }
  0x7f   : > { %8835 = vmatmul.mubr.msk.f32.gmra.mrb[4].mxu0 %vm225_vm1, %v10630_v10 }
  0x80   : > { %8837 = vmatprep.mubr.msk.f32.mxu0 %vm225_vm1, %v10632_v11 }
  0x83   : > { %8838 = vmatmul.mubr.msk.f32.gmra.mrb[6].mxu0 %vm225_vm1, %v10638_v9 }
  0x84   : > { %8840 = vmatprep.mubr.msk.f32.mxu0 %vm225_vm1, %v10640_v12 }
  0x87   : > { %8841 = vmatmul.mubr.msk.f32.gmra.mrb[8].mxu0 %vm225_vm1, %v10646_v13 }
  0x88   : > { %8843 = vmatprep.mubr.msk.f32.mxu0 %vm225_vm1, %v10648_v14 }
  0x8b   : > { %8844 = vmatmul.mubr.msk.f32.gmra.mrb[10].mxu0 %vm225_vm1, %v10654_v15 }
  0x8c   : > { %8846 = vmatprep.mubr.msk.f32.mxu0 %vm225_vm1, %v10656_v16 }
  0x8f   : > { %8847 = vmatmul.mubr.msk.f32.gmra.mrb[12].mxu0 %vm225_vm1, %v10662_v17 }
  0x90   : > { %8849 = vmatprep.mubr.msk.f32.mxu0 %vm225_vm1, %v10664_v18 }
  0x93   : > { %8850 = vmatmul.mubr.msk.f32.gmra.mrb[14].mxu0 %vm225_vm1, %v10670_v19 }
  0x94   : > { %8852 = vmatprep.mubr.msk.f32.mxu0 %vm225_vm1, %v10672_v20 }
  0x97   : > { %8853 = vmatmul.mubr.msk.f32.gmra.mrb[16].mxu0 %vm225_vm1, %v10678_v21 }
  0x98   : > { %8855 = vmatprep.mubr.msk.f32.mxu0 %vm225_vm1, %v10680_v22 }
  0x9b   : > { %8856 = vmatmul.mubr.msk.f32.gmra.mrb[18].mxu0 %vm225_vm1, %v10686_v23 }
  0x9c   : > { %8858 = vmatprep.mubr.msk.f32.mxu0 %vm225_vm1, %v10688_v24 }
  0x9f   : > { %8859 = vmatmul.mubr.msk.f32.gmra.mrb[20].mxu0 %vm225_vm1, %v10694_v25 }
  0xa0   : > { %8861 = vmatprep.mubr.msk.f32.mxu0 %vm225_vm1, %v10696_v26 }
  0xa3   : > { %8862 = vmatmul.mubr.msk.f32.gmra.mrb[22].mxu0 %vm225_vm1, %v10702_v27 }
  0xa4   : > { %8864 = vmatprep.mubr.msk.f32.mxu0 %vm225_vm1, %v10704_v31 }
  0xa7   : > { %8865 = vmatmul.mubr.msk.f32.gmra.mrb[24].mxu0 %vm225_vm1, %v10710_v32 }
  0xa8   : > { %8867 = vmatprep.mubr.msk.f32.mxu0 %vm225_vm1, %v10712_v37 }
  0xab   : > { %8868 = vmatmul.mubr.msk.f32.gmra.mrb[26].mxu0 %vm225_vm1, %v10718_v38 }
  0xac   : > { %8870 = vmatprep.mubr.msk.f32.mxu0 %vm225_vm1, %v10720_v39 }
  0xaf   : > { %8871 = vmatmul.mubr.msk.f32.gmra.mrb[28].mxu0 %vm225_vm1, %v10730_v42 }
  0xb0   : > { %8873 = vmatprep.mubr.msk.f32.mxu0 %vm225_vm1, %v10732_v3 }
  0xb3   : > { %8874 = vmatmul.mubr.msk.f32.gmra.mrb[30].mxu0 %vm225_vm1, %v10738_v4 }
  0xb4   : > { %8878 = vmatprep.mubr.msk.f32.mxu0 %vm225_vm1, %v1080_v40  ;;  %v10765_v40 = vld [vmem:[#allocation2 + $0x51] sm:$0xff] }
  0xb5   : > { %12502 = vst [vmem:[#allocation10_spill] sm:$0xff] %v10765_v40 }
  0xb7   : > { %8879 = vmatmul.mubr.msk.f32.vlgmr.msra.gmra.mrb[0].mxu0 %vm225_vm1, %v1081_v41  ;;  %v10767_v41 = vld [vmem:[#allocation2 + $0x69] sm:$0xff] }
  0xb8   : > { %8927 = vmatpush3.msk.msra.mxu0 %vm527_vm0, %v10613_v6  ;;  %8881 = vmatprep.mubr.msk.f32.mxu0 %vm225_vm1, %v10743_v1  ;;  %12503 = vst [vmem:[#allocation11_spill] sm:$0xff] %v10767_v41  ;;  %v10773_v6 = vld [vmem:[#allocation2 + $0x71] sm:$0xff]  ;;  %v10775_v1 = vld [vmem:[#allocation2 + $0x89] sm:$0xff] }
  0xb9   : > { %8976 = vmatprep.subr.msk.mxu0 %vm527_vm0, %v10748_v2  ;;  %12504 = vst [vmem:[#allocation12_spill] sm:$0xff] %v10773_v6  ;;  %12505 = vst [vmem:[#allocation13_spill] sm:$0xff] %v10775_v1 }
  0xbb   : > { %8882 = vmatmul.mubr.msk.f32.gmra.mrb[2].mxu0 %vm225_vm1, %v10755_v0  ;;  %v10783_v0 = vld [vmem:[#allocation2 + $0xa9] sm:$0xff] }
  0xbc   : > { %8884 = vmatprep.mubr.msk.f32.mxu0 %vm225_vm1, %v10757_v63  ;;  %v10781_v63 = vld [vmem:[#allocation2 + $0x91] sm:$0xff]  ;;  %12507 = vst [vmem:[#allocation15_spill] sm:$0xff] %v10783_v0 }
  0xbd   : > { %12506 = vst [vmem:[#allocation14_spill] sm:$0xff] %v10781_v63 }
  0xbf   : > { %8885 = vmatmul.mubr.msk.f32.gmra.mrb[4].mxu0 %vm225_vm1, %v10765_v40  ;;  %v10791_v40 = vld [vmem:[#allocation2 + $0xc9] sm:$0xff] }
  0xc0   : > { %8887 = vmatprep.mubr.msk.f32.mxu0 %vm225_vm1, %v10767_v41  ;;  %v10789_v41 = vld [vmem:[#allocation2 + $0xb1] sm:$0xff]  ;;  %12509 = vst [vmem:[#allocation17_spill] sm:$0xff] %v10791_v40 }
  0xc1   : > { %12508 = vst [vmem:[#allocation16_spill] sm:$0xff] %v10789_v41 }
  0xc3   : > { %8888 = vmatmul.mubr.msk.f32.gmra.mrb[6].mxu0 %vm225_vm1, %v10773_v6  ;;  %v10799_v6 = vld [vmem:[#allocation2 + $0xe9] sm:$0xff] }
  0xc4   : > { %8890 = vmatprep.mubr.msk.f32.mxu0 %vm225_vm1, %v10775_v1  ;;  %v10797_v1 = vld [vmem:[#allocation2 + $0xd1] sm:$0xff]  ;;  %12511 = vst [vmem:[#allocation19_spill] sm:$0xff] %v10799_v6 }
  0xc5   : > { %12510 = vst [vmem:[#allocation18_spill] sm:$0xff] %v10797_v1 }
  0xc7   : > { %8891 = vmatmul.mubr.msk.f32.gmra.mrb[8].mxu0 %vm225_vm1, %v10781_v63  ;;  %v10807_v63 = vld [vmem:[#allocation2 + $0x109] sm:$0xff] }
  0xc8   : > { %8893 = vmatprep.mubr.msk.f32.mxu0 %vm225_vm1, %v10783_v0  ;;  %v10805_v0 = vld [vmem:[#allocation2 + $0xf1] sm:$0xff]  ;;  %12513 = vst [vmem:[#allocation21_spill] sm:$0xff] %v10807_v63 }
  0xc9   : > { %12512 = vst [vmem:[#allocation20_spill] sm:$0xff] %v10805_v0 }
  0xcb   : > { %8894 = vmatmul.mubr.msk.f32.gmra.mrb[10].mxu0 %vm225_vm1, %v10789_v41  ;;  %v10815_v41 = vld [vmem:[#allocation2 + $0x129] sm:$0xff] }
  0xcc   : > { %8896 = vmatprep.mubr.msk.f32.mxu0 %vm225_vm1, %v10791_v40  ;;  %v10813_v40 = vld [vmem:[#allocation2 + $0x111] sm:$0xff]  ;;  %12515 = vst [vmem:[#allocation23_spill] sm:$0xff] %v10815_v41 }
  0xcd   : > { %12514 = vst [vmem:[#allocation22_spill] sm:$0xff] %v10813_v40 }
  0xcf   : > { %8897 = vmatmul.mubr.msk.f32.gmra.mrb[12].mxu0 %vm225_vm1, %v10797_v1  ;;  %v10823_v1 = vld [vmem:[#allocation2 + $0x149] sm:$0xff] }
  0xd0   : > { %8899 = vmatprep.mubr.msk.f32.mxu0 %vm225_vm1, %v10799_v6  ;;  %v10821_v6 = vld [vmem:[#allocation2 + $0x131] sm:$0xff]  ;;  %12517 = vst [vmem:[#allocation25_spill] sm:$0xff] %v10823_v1 }
  0xd1   : > { %12516 = vst [vmem:[#allocation24_spill] sm:$0xff] %v10821_v6 }
  0xd3   : > { %8900 = vmatmul.mubr.msk.f32.gmra.mrb[14].mxu0 %vm225_vm1, %v10805_v0  ;;  %v10831_v0 = vld [vmem:[#allocation2 + $0x169] sm:$0xff] }
  0xd4   : > { %8902 = vmatprep.mubr.msk.f32.mxu0 %vm225_vm1, %v10807_v63  ;;  %v10829_v63 = vld [vmem:[#allocation2 + $0x151] sm:$0xff]  ;;  %12519 = vst [vmem:[#allocation27_spill] sm:$0xff] %v10831_v0 }
  0xd5   : > { %12518 = vst [vmem:[#allocation26_spill] sm:$0xff] %v10829_v63 }
  0xd7   : > { %8903 = vmatmul.mubr.msk.f32.gmra.mrb[16].mxu0 %vm225_vm1, %v10813_v40  ;;  %v10839_v40 = vld [vmem:[#allocation2 + $0x189] sm:$0xff] }
  0xd8   : > { %8905 = vmatprep.mubr.msk.f32.mxu0 %vm225_vm1, %v10815_v41  ;;  %v10837_v41 = vld [vmem:[#allocation2 + $0x171] sm:$0xff]  ;;  %12521 = vst [vmem:[#allocation29_spill] sm:$0xff] %v10839_v40 }
  0xd9   : > { %12520 = vst [vmem:[#allocation28_spill] sm:$0xff] %v10837_v41 }
  0xdb   : > { %8906 = vmatmul.mubr.msk.f32.gmra.mrb[18].mxu0 %vm225_vm1, %v10821_v6  ;;  %v10847_v6 = vld [vmem:[#allocation2 + $0x1a9] sm:$0xff] }
  0xdc   : > { %8908 = vmatprep.mubr.msk.f32.mxu0 %vm225_vm1, %v10823_v1  ;;  %v10845_v1 = vld [vmem:[#allocation2 + $0x191] sm:$0xff]  ;;  %12522 = vst [vmem:[#allocation30_spill] sm:$0xff] %v10847_v6 }
  0xdf   : > { %8909 = vmatmul.mubr.msk.f32.gmra.mrb[20].mxu0 %vm225_vm1, %v10829_v63  ;;  %v10855_v63 = vld [vmem:[#allocation2 + $0x1c9] sm:$0xff] }
  0xe0   : > { %8911 = vmatprep.mubr.msk.f32.mxu0 %vm225_vm1, %v10831_v0  ;;  %v10853_v0 = vld [vmem:[#allocation2 + $0x1b1] sm:$0xff]  ;;  %12523 = vst [vmem:[#allocation31_spill] sm:$0xff] %v10855_v63 }
  0xe3   : > { %8912 = vmatmul.mubr.msk.f32.gmra.mrb[22].mxu0 %vm225_vm1, %v10837_v41  ;;  %v10863_v41 = vld [vmem:[#allocation2 + $0x1e9] sm:$0xff] }
  0xe4   : > { %8914 = vmatprep.mubr.msk.f32.mxu0 %vm225_vm1, %v10839_v40  ;;  %v10861_v40 = vld [vmem:[#allocation2 + $0x1d1] sm:$0xff]  ;;  %12524 = vst [vmem:[#allocation32_spill] sm:$0xff] %v10863_v41 }
  0xe7   : > { %8915 = vmatmul.mubr.msk.f32.gmra.mrb[24].mxu0 %vm225_vm1, %v10845_v1 }
  0xe8   : > { %8917 = vmatprep.mubr.msk.f32.mxu0 %vm225_vm1, %v10847_v6  ;;  %v10869_v6 = vld [vmem:[#allocation2 + $0x1f1] sm:$0xff] }
  0xeb   : > { %8918 = vmatmul.mubr.msk.f32.gmra.mrb[26].mxu0 %vm225_vm1, %v10853_v0 }
  0xec   : > { %8920 = vmatprep.mubr.msk.f32.mxu0 %vm225_vm1, %v10855_v63  ;;  %v7744_v63 = vld [vmem:[%s12378_s1 + $0x14] sm:$0xf] }
  0xef   : > { %8921 = vmatmul.mubr.msk.f32.gmra.mrb[28].mxu0 %vm225_vm1, %v10861_v40 }
  0xf0   : > { %8923 = vmatprep.mubr.msk.f32.mxu0 %vm225_vm1, %v10863_v41 }
  0xf3   : > { %8924 = vmatmul.mubr.msk.f32.gmra.mrb[30].mxu0 %vm225_vm1, %v10869_v6 }
  0xf4   : > { %8928 = vmatprep.mubr.msk.f32.mxu0 %vm225_vm1, %v10608_v5  ;;  %v10943_v5 = vld [vmem:[#allocation2 + $0x20f] sm:$0xff] }
  0xf7   : > { %8929 = vmatmul.mubr.msk.f32.vlgmr.msra.gmra.mrb[0].mxu0 %vm225_vm1, %v10620_v7  ;;  %v7778_v7 = vld [vmem:[%s12378_s1 + $0x18] sm:$0xf] }
  0xf8   : > { %8977 = vmatpush3.msk.msra.mxu0 %vm527_vm0, %v10748_v2  ;;  %8931 = vmatprep.mubr.msk.f32.mxu0 %vm225_vm1, %v10622_v8  ;;  %v10937_v2 = vld [vmem:[#allocation2 + $0x207] sm:$0xff] }
  0xf9   : > { %9026 = vmatprep.subr.msk.mxu0 %vm527_vm0, %v7744_v63 }
  0xfb   : > { %8932 = vmatmul.mubr.msk.f32.gmra.mrb[2].mxu0 %vm225_vm1, %v10630_v10 }
  0xfc   : > { %8934 = vmatprep.mubr.msk.f32.mxu0 %vm225_vm1, %v10632_v11 }
  0xff   : > { %8935 = vmatmul.mubr.msk.f32.gmra.mrb[4].mxu0 %vm225_vm1, %v10638_v9 }
 0x100   : > { %8937 = vmatprep.mubr.msk.f32.mxu0 %vm225_vm1, %v10640_v12 }
 0x103   : > { %8938 = vmatmul.mubr.msk.f32.gmra.mrb[6].mxu0 %vm225_vm1, %v10646_v13 }
 0x104   : > { %8940 = vmatprep.mubr.msk.f32.mxu0 %vm225_vm1, %v10648_v14 }
 0x107   : > { %8941 = vmatmul.mubr.msk.f32.gmra.mrb[8].mxu0 %vm225_vm1, %v10654_v15 }
 0x108   : > { %8943 = vmatprep.mubr.msk.f32.mxu0 %vm225_vm1, %v10656_v16 }
 0x10b   : > { %8944 = vmatmul.mubr.msk.f32.gmra.mrb[10].mxu0 %vm225_vm1, %v10662_v17 }
 0x10c   : > { %8946 = vmatprep.mubr.msk.f32.mxu0 %vm225_vm1, %v10664_v18 }
 0x10f   : > { %8947 = vmatmul.mubr.msk.f32.gmra.mrb[12].mxu0 %vm225_vm1, %v10670_v19 }
 0x110   : > { %8949 = vmatprep.mubr.msk.f32.mxu0 %vm225_vm1, %v10672_v20 }
 0x113   : > { %8950 = vmatmul.mubr.msk.f32.gmra.mrb[14].mxu0 %vm225_vm1, %v10678_v21 }
 0x114   : > { %8952 = vmatprep.mubr.msk.f32.mxu0 %vm225_vm1, %v10680_v22 }
 0x117   : > { %8953 = vmatmul.mubr.msk.f32.gmra.mrb[16].mxu0 %vm225_vm1, %v10686_v23 }
 0x118   : > { %8955 = vmatprep.mubr.msk.f32.mxu0 %vm225_vm1, %v10688_v24 }
 0x11b   : > { %8956 = vmatmul.mubr.msk.f32.gmra.mrb[18].mxu0 %vm225_vm1, %v10694_v25 }
 0x11c   : > { %8958 = vmatprep.mubr.msk.f32.mxu0 %vm225_vm1, %v10696_v26 }
 0x11f   : > { %8959 = vmatmul.mubr.msk.f32.gmra.mrb[20].mxu0 %vm225_vm1, %v10702_v27 }
 0x120   : > { %8961 = vmatprep.mubr.msk.f32.mxu0 %vm225_vm1, %v10704_v31 }
 0x123   : > { %8962 = vmatmul.mubr.msk.f32.gmra.mrb[22].mxu0 %vm225_vm1, %v10710_v32 }
 0x124   : > { %8964 = vmatprep.mubr.msk.f32.mxu0 %vm225_vm1, %v10712_v37 }
 0x127   : > { %8965 = vmatmul.mubr.msk.f32.gmra.mrb[24].mxu0 %vm225_vm1, %v10718_v38 }
 0x128   : > { %8967 = vmatprep.mubr.msk.f32.mxu0 %vm225_vm1, %v10720_v39 }
 0x12b   : > { %8968 = vmatmul.mubr.msk.f32.gmra.mrb[26].mxu0 %vm225_vm1, %v10730_v42 }
 0x12c   : > { %8970 = vmatprep.mubr.msk.f32.mxu0 %vm225_vm1, %v10732_v3 }
 0x12f   : > { %8971 = vmatmul.mubr.msk.f32.gmra.mrb[28].mxu0 %vm225_vm1, %v10738_v4 }
 0x130   : > { %8973 = vmatprep.mubr.msk.f32.mxu0 %vm225_vm1, %v10937_v2 }
 0x133   : > { %8974 = vmatmul.mubr.msk.f32.gmra.mrb[30].mxu0 %vm225_vm1, %v10943_v5 }
 0x134   : > { %8978 = vmatprep.mubr.msk.f32.mxu0 %vm225_vm1, %v10468_v28  ;;  %v12525_v28 = vld [vmem:[#allocation4_spill] sm:$0xff] }
 0x137   : > { %8979 = vmatmul.mubr.msk.f32.vlgmr.msra.gmra.mrb[0].mxu0 %vm225_vm1, %v10470_v29  ;;  %v12526_v29 = vld [vmem:[#allocation5_spill] sm:$0xff] }
 0x138   : > { %9027 = vmatpush3.msk.msra.mxu0 %vm527_vm0, %v7744_v63  ;;  %8981 = vmatprep.mubr.msk.f32.mxu0 %vm225_vm1, %v10472_v30  ;;  %v11010_v30 = vld [vmem:[#allocation2 + $0x208] sm:$0xff]  ;;  %v12537_v63 = vld [vmem:[#allocation16_spill] sm:$0xff] }
 0x139   : > { %9076 = vmatprep.subr.msk.mxu0 %vm527_vm0, %v7778_v7 }
 0x13b   : > { %8982 = vmatmul.mubr.msk.f32.gmra.mrb[2].mxu0 %vm225_vm1, %v10485_v33  ;;  %v12527_v33 = vld [vmem:[#allocation6_spill] sm:$0xff] }
 0x13c   : > { %8984 = vmatprep.mubr.msk.f32.mxu0 %vm225_vm1, %v10489_v34  ;;  %v11016_v34 = vld [vmem:[#allocation2 + $0x210] sm:$0xff] }
 0x13f   : > { %8985 = vmatmul.mubr.msk.f32.gmra.mrb[4].mxu0 %vm225_vm1, %v10495_v35  ;;  %v12528_v35 = vld [vmem:[#allocation7_spill] sm:$0xff] }
 0x140   : > { %8987 = vmatprep.mubr.msk.f32.mxu0 %vm225_vm1, %v10497_v36  ;;  %v7812_v36 = vld [vmem:[%s12378_s1 + $0x1c] sm:$0xf] }
 0x143   : > { %8988 = vmatmul.mubr.msk.f32.gmra.mrb[6].mxu0 %vm225_vm1, %v10515_v43  ;;  %v12529_v43 = vld [vmem:[#allocation8_spill] sm:$0xff] }
 0x144   : > { %8990 = vmatprep.mubr.msk.f32.mxu0 %vm225_vm1, %v10517_v44  ;;  %v12530_v44 = vld [vmem:[#allocation9_spill] sm:$0xff] }
 0x147   : > { %8991 = vmatmul.mubr.msk.f32.gmra.mrb[8].mxu0 %vm225_vm1, %v10523_v45  ;;  %v12531_v45 = vld [vmem:[#allocation10_spill] sm:$0xff] }
 0x148   : > { %8993 = vmatprep.mubr.msk.f32.mxu0 %vm225_vm1, %v10525_v46  ;;  %v12532_v46 = vld [vmem:[#allocation11_spill] sm:$0xff] }
 0x14b   : > { %8994 = vmatmul.mubr.msk.f32.gmra.mrb[10].mxu0 %vm225_vm1, %v10531_v47  ;;  %v12533_v47 = vld [vmem:[#allocation12_spill] sm:$0xff] }
 0x14c   : > { %8996 = vmatprep.mubr.msk.f32.mxu0 %vm225_vm1, %v10533_v48  ;;  %v12534_v48 = vld [vmem:[#allocation13_spill] sm:$0xff] }
 0x14f   : > { %8997 = vmatmul.mubr.msk.f32.gmra.mrb[12].mxu0 %vm225_vm1, %v10539_v49  ;;  %v12535_v49 = vld [vmem:[#allocation14_spill] sm:$0xff] }
 0x150   : > { %8999 = vmatprep.mubr.msk.f32.mxu0 %vm225_vm1, %v10541_v50  ;;  %v12536_v50 = vld [vmem:[#allocation15_spill] sm:$0xff] }
 0x153   : > { %9000 = vmatmul.mubr.msk.f32.gmra.mrb[14].mxu0 %vm225_vm1, %v10547_v51 }
 0x154   : > { %9002 = vmatprep.mubr.msk.f32.mxu0 %vm225_vm1, %v10549_v52 }
 0x157   : > { %9003 = vmatmul.mubr.msk.f32.gmra.mrb[16].mxu0 %vm225_vm1, %v10555_v53 }
 0x158   : > { %9005 = vmatprep.mubr.msk.f32.mxu0 %vm225_vm1, %v10557_v54 }
 0x15b   : > { %9006 = vmatmul.mubr.msk.f32.gmra.mrb[18].mxu0 %vm225_vm1, %v10563_v55 }
 0x15c   : > { %9008 = vmatprep.mubr.msk.f32.mxu0 %vm225_vm1, %v10565_v56 }
 0x15f   : > { %9009 = vmatmul.mubr.msk.f32.gmra.mrb[20].mxu0 %vm225_vm1, %v10571_v57 }
 0x160   : > { %9011 = vmatprep.mubr.msk.f32.mxu0 %vm225_vm1, %v10573_v58 }
 0x163   : > { %9012 = vmatmul.mubr.msk.f32.gmra.mrb[22].mxu0 %vm225_vm1, %v10579_v59 }
 0x164   : > { %9014 = vmatprep.mubr.msk.f32.mxu0 %vm225_vm1, %v10581_v60 }
 0x167   : > { %9015 = vmatmul.mubr.msk.f32.gmra.mrb[24].mxu0 %vm225_vm1, %v10587_v61 }
 0x168   : > { %9017 = vmatprep.mubr.msk.f32.mxu0 %vm225_vm1, %v10589_v62 }
 0x16b   : > { %9018 = vmatmul.mubr.msk.f32.gmra.mrb[26].mxu0 %vm225_vm1, %v12525_v28 }
 0x16c   : > { %9020 = vmatprep.mubr.msk.f32.mxu0 %vm225_vm1, %v12526_v29 }
 0x16f   : > { %9021 = vmatmul.mubr.msk.f32.gmra.mrb[28].mxu0 %vm225_vm1, %v12527_v33 }
 0x170   : > { %9023 = vmatprep.mubr.msk.f32.mxu0 %vm225_vm1, %v11010_v30 }
 0x173   : > { %9024 = vmatmul.mubr.msk.f32.gmra.mrb[30].mxu0 %vm225_vm1, %v11016_v34 }
 0x174   : > { %9028 = vmatprep.mubr.msk.f32.mxu0 %vm225_vm1, %v12528_v35  ;;  %v12539_v35 = vld [vmem:[#allocation18_spill] sm:$0xff] }
 0x177   : > { %9029 = vmatmul.mubr.msk.f32.vlgmr.msra.gmra.mrb[0].mxu0 %vm225_vm1, %v12529_v43  ;;  %v12540_v43 = vld [vmem:[#allocation19_spill] sm:$0xff] }
 0x178   : > { %9077 = vmatpush3.msk.msra.mxu0 %vm527_vm0, %v7778_v7  ;;  %9031 = vmatprep.mubr.msk.f32.mxu0 %vm225_vm1, %v12530_v44  ;;  %v12538_v7 = vld [vmem:[#allocation17_spill] sm:$0xff] }
 0x179   : > { %9126 = vmatprep.subr.msk.mxu0 %vm527_vm0, %v7812_v36 }
 0x17b   : > { %9032 = vmatmul.mubr.msk.f32.gmra.mrb[2].mxu0 %vm225_vm1, %v12531_v45 }
 0x17c   : > { %9034 = vmatprep.mubr.msk.f32.mxu0 %vm225_vm1, %v12532_v46 }
 0x17f   : > { %9035 = vmatmul.mubr.msk.f32.gmra.mrb[4].mxu0 %vm225_vm1, %v12533_v47  ;;  %v12541_v47 = vld [vmem:[#allocation20_spill] sm:$0xff] }
 0x180   : > { %9037 = vmatprep.mubr.msk.f32.mxu0 %vm225_vm1, %v12534_v48  ;;  %v12542_v48 = vld [vmem:[#allocation21_spill] sm:$0xff] }
 0x183   : > { %9038 = vmatmul.mubr.msk.f32.gmra.mrb[6].mxu0 %vm225_vm1, %v12535_v49  ;;  %v12543_v49 = vld [vmem:[#allocation22_spill] sm:$0xff] }
 0x184   : > { %9040 = vmatprep.mubr.msk.f32.mxu0 %vm225_vm1, %v12536_v50  ;;  %v12544_v50 = vld [vmem:[#allocation23_spill] sm:$0xff] }
 0x187   : > { %9041 = vmatmul.mubr.msk.f32.gmra.mrb[8].mxu0 %vm225_vm1, %v12537_v63  ;;  %v12545_v63 = vld [vmem:[#allocation24_spill] sm:$0xff] }
 0x188   : > { %9043 = vmatprep.mubr.msk.f32.mxu0 %vm225_vm1, %v12538_v7  ;;  %v12546_v7 = vld [vmem:[#allocation25_spill] sm:$0xff] }
 0x18b   : > { %9044 = vmatmul.mubr.msk.f32.gmra.mrb[10].mxu0 %vm225_vm1, %v12539_v35  ;;  %v12547_v35 = vld [vmem:[#allocation26_spill] sm:$0xff] }
 0x18c   : > { %9046 = vmatprep.mubr.msk.f32.mxu0 %vm225_vm1, %v12540_v43  ;;  %v12548_v43 = vld [vmem:[#allocation27_spill] sm:$0xff] }
 0x18f   : > { %9047 = vmatmul.mubr.msk.f32.gmra.mrb[12].mxu0 %vm225_vm1, %v12541_v47  ;;  %v12549_v47 = vld [vmem:[#allocation28_spill] sm:$0xff] }
 0x190   : > { %9049 = vmatprep.mubr.msk.f32.mxu0 %vm225_vm1, %v12542_v48  ;;  %v12550_v48 = vld [vmem:[#allocation29_spill] sm:$0xff] }
 0x193   : > { %9050 = vmatmul.mubr.msk.f32.gmra.mrb[14].mxu0 %vm225_vm1, %v12543_v49 }
 0x194   : > { %9052 = vmatprep.mubr.msk.f32.mxu0 %vm225_vm1, %v12544_v50  ;;  %v12551_v50 = vld [vmem:[#allocation30_spill] sm:$0xff] }
 0x197   : > { %9053 = vmatmul.mubr.msk.f32.gmra.mrb[16].mxu0 %vm225_vm1, %v12545_v63 }
 0x198   : > { %9055 = vmatprep.mubr.msk.f32.mxu0 %vm225_vm1, %v12546_v7  ;;  %v12552_v7 = vld [vmem:[#allocation31_spill] sm:$0xff] }
 0x19b   : > { %9056 = vmatmul.mubr.msk.f32.gmra.mrb[18].mxu0 %vm225_vm1, %v12547_v35 }
 0x19c   : > { %9058 = vmatprep.mubr.msk.f32.mxu0 %vm225_vm1, %v12548_v43 }
 0x19f   : > { %9059 = vmatmul.mubr.msk.f32.gmra.mrb[20].mxu0 %vm225_vm1, %v12549_v47  ;;  %v11083_v47 = vld [vmem:[#allocation2 + $0x209] sm:$0xff] }
 0x1a0   : > { %9061 = vmatprep.mubr.msk.f32.mxu0 %vm225_vm1, %v12550_v48 }
 0x1a3   : > { %9062 = vmatmul.mubr.msk.f32.gmra.mrb[22].mxu0 %vm225_vm1, %v10845_v1 }
 0x1a4   : > { %9064 = vmatprep.mubr.msk.f32.mxu0 %vm225_vm1, %v12551_v50  ;;  %v11089_v50 = vld [vmem:[#allocation2 + $0x211] sm:$0xff] }
 0x1a7   : > { %9065 = vmatmul.mubr.msk.f32.gmra.mrb[24].mxu0 %vm225_vm1, %v10853_v0 }
 0x1a8   : > { %9067 = vmatprep.mubr.msk.f32.mxu0 %vm225_vm1, %v12552_v7 }
 0x1ab   : > { %9068 = vmatmul.mubr.msk.f32.gmra.mrb[26].mxu0 %vm225_vm1, %v10861_v40 }
 0x1ac   : > { %9070 = vmatprep.mubr.msk.f32.mxu0 %vm225_vm1, %v10863_v41  ;;  %v7846_v41 = vld [vmem:[%s12378_s1 + $0x20] sm:$0xf] }
 0x1af   : > { %9071 = vmatmul.mubr.msk.f32.gmra.mrb[28].mxu0 %vm225_vm1, %v10869_v6 }
 0x1b0   : > { %9073 = vmatprep.mubr.msk.f32.mxu0 %vm225_vm1, %v11083_v47 }
 0x1b3   : > { %9074 = vmatmul.mubr.msk.f32.gmra.mrb[30].mxu0 %vm225_vm1, %v11089_v50 }
 0x1b4   : > { %9078 = vmatprep.mubr.msk.f32.mxu0 %vm225_vm1, %v10622_v8  ;;  %v2671_v8 = vld [vmem:[#allocation2 + $0x227] sm:$0xff] }
 0x1b7   : > { %9079 = vmatmul.mubr.msk.f32.vlgmr.msra.gmra.mrb[0].mxu0 %vm225_vm1, %v10630_v10  ;;  %v2672_v10 = vld [vmem:[#allocation2 + $0x22f] sm:$0xff] }
 0x1b8   : > { %9127 = vmatpush3.msk.msra.mxu0 %vm527_vm0, %v7812_v36  ;;  %9081 = vmatprep.mubr.msk.f32.mxu0 %vm225_vm1, %v10632_v11  ;;  %v3031_v11 = vld [vmem:[#allocation2 + $0x48] sm:$0xff] }
 0x1b9   : > { %9176 = vmatprep.subr.msk.mxu0 %vm527_vm0, %v7846_v41 }
 0x1bb   : > { %9082 = vmatmul.mubr.msk.f32.gmra.mrb[2].mxu0 %vm225_vm1, %v10638_v9  ;;  %v3032_v9 = vld [vmem:[#allocation2 + $0x50] sm:$0xff] }
 0x1bc   : > { %9084 = vmatprep.mubr.msk.f32.mxu0 %vm225_vm1, %v10640_v12  ;;  %v3033_v12 = vld [vmem:[#allocation2 + $0x68] sm:$0xff] }
 0x1bf   : > { %9085 = vmatmul.mubr.msk.f32.gmra.mrb[4].mxu0 %vm225_vm1, %v10646_v13  ;;  %v3034_v13 = vld [vmem:[#allocation2 + $0x70] sm:$0xff] }
 0x1c0   : > { %9087 = vmatprep.mubr.msk.f32.mxu0 %vm225_vm1, %v10648_v14  ;;  %v3035_v14 = vld [vmem:[#allocation2 + $0x88] sm:$0xff] }
 0x1c3   : > { %9088 = vmatmul.mubr.msk.f32.gmra.mrb[6].mxu0 %vm225_vm1, %v10654_v15  ;;  %v3036_v15 = vld [vmem:[#allocation2 + $0x90] sm:$0xff] }
 0x1c4   : > { %9090 = vmatprep.mubr.msk.f32.mxu0 %vm225_vm1, %v10656_v16  ;;  %v3037_v16 = vld [vmem:[#allocation2 + $0xa8] sm:$0xff] }
 0x1c7   : > { %9091 = vmatmul.mubr.msk.f32.gmra.mrb[8].mxu0 %vm225_vm1, %v10662_v17  ;;  %v3038_v17 = vld [vmem:[#allocation2 + $0xb0] sm:$0xff] }
 0x1c8   : > { %9093 = vmatprep.mubr.msk.f32.mxu0 %vm225_vm1, %v10664_v18  ;;  %v3039_v18 = vld [vmem:[#allocation2 + $0xc8] sm:$0xff] }
 0x1cb   : > { %9094 = vmatmul.mubr.msk.f32.gmra.mrb[10].mxu0 %vm225_vm1, %v10670_v19  ;;  %v3040_v19 = vld [vmem:[#allocation2 + $0xd0] sm:$0xff] }
 0x1cc   : > { %9096 = vmatprep.mubr.msk.f32.mxu0 %vm225_vm1, %v10672_v20  ;;  %v3041_v20 = vld [vmem:[#allocation2 + $0xe8] sm:$0xff] }
 0x1cf   : > { %9097 = vmatmul.mubr.msk.f32.gmra.mrb[12].mxu0 %vm225_vm1, %v10678_v21  ;;  %v3042_v21 = vld [vmem:[#allocation2 + $0xf0] sm:$0xff] }
 0x1d0   : > { %9099 = vmatprep.mubr.msk.f32.mxu0 %vm225_vm1, %v10680_v22  ;;  %v3043_v22 = vld [vmem:[#allocation2 + $0x108] sm:$0xff] }
 0x1d3   : > { %9100 = vmatmul.mubr.msk.f32.gmra.mrb[14].mxu0 %vm225_vm1, %v10686_v23  ;;  %v12563_v23 = vld [vmem:[#allocation23_spill] sm:$0xff] }
 0x1d4   : > { %9102 = vmatprep.mubr.msk.f32.mxu0 %vm225_vm1, %v10688_v24  ;;  %v12564_v24 = vld [vmem:[#allocation25_spill] sm:$0xff] }
 0x1d7   : > { %9103 = vmatmul.mubr.msk.f32.gmra.mrb[16].mxu0 %vm225_vm1, %v10694_v25  ;;  %v12565_v25 = vld [vmem:[#allocation28_spill] sm:$0xff] }
 0x1d8   : > { %9105 = vmatprep.mubr.msk.f32.mxu0 %vm225_vm1, %v10696_v26  ;;  %v12566_v26 = vld [vmem:[#allocation30_spill] sm:$0xff] }
 0x1db   : > { %9106 = vmatmul.mubr.msk.f32.gmra.mrb[18].mxu0 %vm225_vm1, %v10702_v27  ;;  %v12567_v27 = vld [vmem:[#allocation32_spill] sm:$0xff] }
 0x1dc   : > { %9108 = vmatprep.mubr.msk.f32.mxu0 %vm225_vm1, %v10704_v31  ;;  %v12568_v31 = vmov 0.0  }
 0x1dd   : > { %3890 = vst.msk [vmem:[#allocation3 + $0x30] sm:$0xff] %vm3882_vm3, %v12568_v31  ;;  %3883 = vst.msk [vmem:[#allocation3] sm:$0xff] %vm3882_vm3, %v12568_v31 }
 0x1de   : > { %3884 = vst.msk [vmem:[#allocation3 + $0x8] sm:$0xff] %vm3882_vm3, %v12568_v31  ;;  %3885 = vst.msk [vmem:[#allocation3 + $0x10] sm:$0xff] %vm3882_vm3, %v12568_v31 }
 0x1df   : > { %9109 = vmatmul.mubr.msk.f32.gmra.mrb[20].mxu0 %vm225_vm1, %v10710_v32  ;;  %3888 = vst.msk [vmem:[#allocation3 + $0x20] sm:$0xff] %vm3882_vm3, %v12568_v31  ;;  %3889 = vst.msk [vmem:[#allocation3 + $0x28] sm:$0xff] %vm3882_vm3, %v12568_v31  ;;  %v7881_v32 = vld [vmem:[%s12380_s3 + $0x8] sm:$0xff] }
 0x1e0   : > { %9111 = vmatprep.mubr.msk.f32.mxu0 %vm225_vm1, %v10712_v37  ;;  %3892 = vst.msk [vmem:[#allocation3 + $0x40] sm:$0xff] %vm3882_vm3, %v12568_v31  ;;  %3893 = vst.msk [vmem:[#allocation3 + $0x48] sm:$0xff] %vm3882_vm3, %v12568_v31  ;;  %9226 = vmatprep.subr.mxu1 %v7881_v32 }
 0x1e1   : > { %3894 = vst.msk [vmem:[#allocation3 + $0x50] sm:$0xff] %vm3882_vm3, %v12568_v31  ;;  %3896 = vst.msk [vmem:[#allocation3 + $0x60] sm:$0xff] %vm3882_vm3, %v12568_v31  ;;  %9227 = vmatpush3.msra.mxu1 %v7881_v32 }
 0x1e2   : > { %3897 = vst.msk [vmem:[#allocation3 + $0x68] sm:$0xff] %vm3882_vm3, %v12568_v31  ;;  %3898 = vst.msk [vmem:[#allocation3 + $0x70] sm:$0xff] %vm3882_vm3, %v12568_v31 }
 0x1e3   : > { %9112 = vmatmul.mubr.msk.f32.gmra.mrb[22].mxu0 %vm225_vm1, %v10718_v38  ;;  %3900 = vst.msk [vmem:[#allocation3 + $0x80] sm:$0xff] %vm3882_vm3, %v12568_v31  ;;  %3901 = vst.msk [vmem:[#allocation3 + $0x88] sm:$0xff] %vm3882_vm3, %v12568_v31 }
 0x1e4   : > { %9114 = vmatprep.mubr.msk.f32.mxu0 %vm225_vm1, %v10720_v39  ;;  %3902 = vst.msk [vmem:[#allocation3 + $0x90] sm:$0xff] %vm3882_vm3, %v12568_v31  ;;  %3904 = vst.msk [vmem:[#allocation3 + $0xa0] sm:$0xff] %vm3882_vm3, %v12568_v31  ;;  %v4021_v39 = vld [vmem:[%s12380_s3] sm:$0xff] }
 0x1e5   : > { %3905 = vst.msk [vmem:[#allocation3 + $0xa8] sm:$0xff] %vm3882_vm3, %v12568_v31  ;;  %3906 = vst.msk [vmem:[#allocation3 + $0xb0] sm:$0xff] %vm3882_vm3, %v12568_v31  ;;  %v4022_v37 = vld [vmem:[#allocation3 + $0x8] sm:$0xff]  ;;  %v4023_v38 = vld [vmem:[#allocation3 + $0x10] sm:$0xff]  ;;  %9276 = vmatprep.subr.mxu1 %v4021_v39 }
 0x1e6   : > { %3908 = vst.msk [vmem:[#allocation3 + $0xc0] sm:$0xff] %vm3882_vm3, %v12568_v31  ;;  %3909 = vst.msk [vmem:[#allocation3 + $0xc8] sm:$0xff] %vm3882_vm3, %v12568_v31  ;;  %9228 = vmatprep.mubr.msk.f32.mxu1 %vm3882_vm3, %v4022_v37 }
 0x1e7   : > { %9115 = vmatmul.mubr.msk.f32.gmra.mrb[24].mxu0 %vm225_vm1, %v10730_v42  ;;  %3910 = vst.msk [vmem:[#allocation3 + $0xd0] sm:$0xff] %vm3882_vm3, %v12568_v31  ;;  %3912 = vst.msk [vmem:[#allocation3 + $0xe0] sm:$0xff] %vm3882_vm3, %v12568_v31  ;;  %9229 = vmatmul.mubr.msk.f32.vlgmr.msra.gmra.mrb[0].mxu1 %vm3882_vm3, %v4023_v38  ;;  %v11427_v42 = vld [vmem:[%s12380_s3 + $0x10] sm:$0xff] }
 0x1e8   : > { %9117 = vmatprep.mubr.msk.f32.mxu0 %vm225_vm1, %v10732_v3  ;;  %3913 = vst.msk [vmem:[#allocation3 + $0xe8] sm:$0xff] %vm3882_vm3, %v12568_v31  ;;  %3914 = vst.msk [vmem:[#allocation3 + $0xf0] sm:$0xff] %vm3882_vm3, %v12568_v31  ;;  %9277 = vmatpush3.msra.mxu1 %v4021_v39  ;;  %v11433_v3 = vld [vmem:[%s12379_s2] ss:$0 sm:$0xff] }
 0x1e9   : > { %3916 = vst.msk [vmem:[#allocation3 + $0x100] sm:$0xff] %vm3882_vm3, %v12568_v31  ;;  %3917 = vst.msk [vmem:[#allocation3 + $0x108] sm:$0xff] %vm3882_vm3, %v12568_v31  ;;  %9326 = vmatprep.subr.mxu1 %v11427_v42 }
 0x1ea   : > { %3918 = vst.msk [vmem:[#allocation3 + $0x110] sm:$0xff] %vm3882_vm3, %v12568_v31  ;;  %3920 = vst.msk [vmem:[#allocation3 + $0x120] sm:$0xff] %vm3882_vm3, %v12568_v31 }
 0x1eb   : > { %9118 = vmatmul.mubr.msk.f32.gmra.mrb[26].mxu0 %vm225_vm1, %v10738_v4  ;;  %3921 = vst.msk [vmem:[#allocation3 + $0x128] sm:$0xff] %vm3882_vm3, %v12568_v31  ;;  %3922 = vst.msk [vmem:[#allocation3 + $0x130] sm:$0xff] %vm3882_vm3, %v12568_v31 }
 0x1ec   : > { %9120 = vmatprep.mubr.msk.f32.mxu0 %vm225_vm1, %v10937_v2  ;;  %3924 = vst.msk [vmem:[#allocation3 + $0x140] sm:$0xff] %vm3882_vm3, %v12568_v31  ;;  %3925 = vst.msk [vmem:[#allocation3 + $0x148] sm:$0xff] %vm3882_vm3, %v12568_v31 }
 0x1ed   : > { %3926 = vst.msk [vmem:[#allocation3 + $0x150] sm:$0xff] %vm3882_vm3, %v12568_v31  ;;  %3928 = vst.msk [vmem:[#allocation3 + $0x160] sm:$0xff] %vm3882_vm3, %v12568_v31 }
 0x1ee   : > { %3929 = vst.msk [vmem:[#allocation3 + $0x168] sm:$0xff] %vm3882_vm3, %v12568_v31  ;;  %3930 = vst.msk [vmem:[#allocation3 + $0x170] sm:$0xff] %vm3882_vm3, %v12568_v31 }
 0x1ef   : > { %9121 = vmatmul.mubr.msk.f32.gmra.mrb[28].mxu0 %vm225_vm1, %v10943_v5  ;;  %3932 = vst.msk [vmem:[#allocation3 + $0x180] sm:$0xff] %vm3882_vm3, %v12568_v31  ;;  %3933 = vst.msk [vmem:[#allocation3 + $0x188] sm:$0xff] %vm3882_vm3, %v12568_v31 }
 0x1f0   : > { %9123 = vmatprep.mubr.msk.f32.mxu0 %vm225_vm1, %v2671_v8  ;;  %3934 = vst.msk [vmem:[#allocation3 + $0x190] sm:$0xff] %vm3882_vm3, %v12568_v31  ;;  %3936 = vst.msk [vmem:[#allocation3 + $0x1a0] sm:$0xff] %vm3882_vm3, %v12568_v31 }
 0x1f1   : > { %3937 = vst.msk [vmem:[#allocation3 + $0x1a8] sm:$0xff] %vm3882_vm3, %v12568_v31  ;;  %3938 = vst.msk [vmem:[#allocation3 + $0x1b0] sm:$0xff] %vm3882_vm3, %v12568_v31 }
 0x1f2   : > { %3940 = vst.msk [vmem:[#allocation3 + $0x1c0] sm:$0xff] %vm3882_vm3, %v12568_v31  ;;  %3941 = vst.msk [vmem:[#allocation3 + $0x1c8] sm:$0xff] %vm3882_vm3, %v12568_v31 }
 0x1f3   : > { %9124 = vmatmul.mubr.msk.f32.gmra.mrb[30].mxu0 %vm225_vm1, %v2672_v10  ;;  %3942 = vst.msk [vmem:[#allocation3 + $0x1d0] sm:$0xff] %vm3882_vm3, %v12568_v31  ;;  %3944 = vst.msk [vmem:[#allocation3 + $0x1e0] sm:$0xff] %vm3882_vm3, %v12568_v31 }
 0x1f4   : > { %9128 = vmatprep.mubr.msk.f32.mxu0 %vm225_vm1, %v3031_v11  ;;  %3945 = vst.msk [vmem:[#allocation3 + $0x1e8] sm:$0xff] %vm3882_vm3, %v12568_v31  ;;  %3946 = vst.msk [vmem:[#allocation3 + $0x1f0] sm:$0xff] %vm3882_vm3, %v12568_v31 }
 0x1f5   : > { %3948 = vst.msk [vmem:[#allocation3 + $0x200] sm:$0xff] %vm3882_vm3, %v12568_v31  ;;  %3949 = vst.msk [vmem:[#allocation3 + $0x208] sm:$0xff] %vm3882_vm3, %v12568_v31 }
 0x1f6   : > { %3950 = vst.msk [vmem:[#allocation3 + $0x210] sm:$0xff] %vm3882_vm3, %v12568_v31  ;;  %3952 = vst.msk [vmem:[#allocation3 + $0x220] sm:$0xff] %vm3882_vm3, %v12568_v31 }
 0x1f7   : > { %9129 = vmatmul.mubr.msk.f32.vlgmr.msra.gmra.mrb[0].mxu0 %vm225_vm1, %v3032_v9  ;;  %3953 = vst.msk [vmem:[#allocation3 + $0x228] sm:$0xff] %vm3882_vm3, %v12568_v31  ;;  %3954 = vst.msk [vmem:[#allocation3 + $0x230] sm:$0xff] %vm3882_vm3, %v12568_v31 }
 0x1f8   : > { %9177 = vmatpush3.msk.msra.mxu0 %vm527_vm0, %v7846_v41  ;;  %9131 = vmatprep.mubr.msk.f32.mxu0 %vm225_vm1, %v3033_v12  ;;  %3887 = vst.msk [vmem:[#allocation3 + $0x18] sm:$0x1] %vm3886_vm4, %v12568_v31  ;;  %3891 = vst.msk [vmem:[#allocation3 + $0x38] sm:$0x1] %vm3886_vm4, %v12568_v31 }
 0x1f9   : > { %3895 = vst.msk [vmem:[#allocation3 + $0x58] sm:$0x1] %vm3886_vm4, %v12568_v31  ;;  %3899 = vst.msk [vmem:[#allocation3 + $0x78] sm:$0x1] %vm3886_vm4, %v12568_v31 }
 0x1fa   : > { %3903 = vst.msk [vmem:[#allocation3 + $0x98] sm:$0x1] %vm3886_vm4, %v12568_v31  ;;  %3907 = vst.msk [vmem:[#allocation3 + $0xb8] sm:$0x1] %vm3886_vm4, %v12568_v31 }
 0x1fb   : > { %9132 = vmatmul.mubr.msk.f32.gmra.mrb[2].mxu0 %vm225_vm1, %v3034_v13  ;;  %3911 = vst.msk [vmem:[#allocation3 + $0xd8] sm:$0x1] %vm3886_vm4, %v12568_v31  ;;  %3915 = vst.msk [vmem:[#allocation3 + $0xf8] sm:$0x1] %vm3886_vm4, %v12568_v31 }
 0x1fc   : > { %9134 = vmatprep.mubr.msk.f32.mxu0 %vm225_vm1, %v3035_v14  ;;  %3919 = vst.msk [vmem:[#allocation3 + $0x118] sm:$0x1] %vm3886_vm4, %v12568_v31  ;;  %3923 = vst.msk [vmem:[#allocation3 + $0x138] sm:$0x1] %vm3886_vm4, %v12568_v31 }
 0x1fd   : > { %3927 = vst.msk [vmem:[#allocation3 + $0x158] sm:$0x1] %vm3886_vm4, %v12568_v31  ;;  %3931 = vst.msk [vmem:[#allocation3 + $0x178] sm:$0x1] %vm3886_vm4, %v12568_v31 }
 0x1fe   : > { %3935 = vst.msk [vmem:[#allocation3 + $0x198] sm:$0x1] %vm3886_vm4, %v12568_v31  ;;  %3939 = vst.msk [vmem:[#allocation3 + $0x1b8] sm:$0x1] %vm3886_vm4, %v12568_v31 }
 0x1ff   : > { %9135 = vmatmul.mubr.msk.f32.gmra.mrb[4].mxu0 %vm225_vm1, %v3036_v15  ;;  %3943 = vst.msk [vmem:[#allocation3 + $0x1d8] sm:$0x1] %vm3886_vm4, %v12568_v31  ;;  %3947 = vst.msk [vmem:[#allocation3 + $0x1f8] sm:$0x1] %vm3886_vm4, %v12568_v31 }
 0x200   : > { %9137 = vmatprep.mubr.msk.f32.mxu0 %vm225_vm1, %v3037_v16  ;;  %3951 = vst.msk [vmem:[#allocation3 + $0x218] sm:$0x1] %vm3886_vm4, %v12568_v31  ;;  %3955 = vst.msk [vmem:[#allocation3 + $0x238] sm:$0x1] %vm3886_vm4, %v12568_v31 }
 0x203   : > { %9138 = vmatmul.mubr.msk.f32.gmra.mrb[6].mxu0 %vm225_vm1, %v3038_v17 }
 0x204   : > { %9140 = vmatprep.mubr.msk.f32.mxu0 %vm225_vm1, %v3039_v18 }
 0x207   : > { %9141 = vmatmul.mubr.msk.f32.gmra.mrb[8].mxu0 %vm225_vm1, %v3040_v19 }
 0x208   : > { %9143 = vmatprep.mubr.msk.f32.mxu0 %vm225_vm1, %v3041_v20 }
 0x20b   : > { %9144 = vmatmul.mubr.msk.f32.gmra.mrb[10].mxu0 %vm225_vm1, %v3042_v21 }
 0x20c   : > { %9146 = vmatprep.mubr.msk.f32.mxu0 %vm225_vm1, %v3043_v22 }
 0x20f   : > { %9147 = vmatmul.mubr.msk.f32.gmra.mrb[12].mxu0 %vm225_vm1, %v10547_v51  ;;  %v3061_v51 = vld [vmem:[#allocation2 + $0x228] sm:$0xff] }
 0x210   : > { %9149 = vmatprep.mubr.msk.f32.mxu0 %vm225_vm1, %v10549_v52  ;;  %v3062_v52 = vld [vmem:[#allocation2 + $0x230] sm:$0xff] }
 0x213   : > { %9150 = vmatmul.mubr.msk.f32.gmra.mrb[14].mxu0 %vm225_vm1, %v10555_v53  ;;  %v12553_v53 = vld [vmem:[#allocation12_spill] sm:$0xff] }
 0x214   : > { %9152 = vmatprep.mubr.msk.f32.mxu0 %vm225_vm1, %v10557_v54  ;;  %v12554_v54 = vld [vmem:[#allocation13_spill] sm:$0xff] }
 0x217   : > { %9153 = vmatmul.mubr.msk.f32.gmra.mrb[16].mxu0 %vm225_vm1, %v10563_v55  ;;  %v12555_v55 = vld [vmem:[#allocation14_spill] sm:$0xff] }
 0x218   : > { %9155 = vmatprep.mubr.msk.f32.mxu0 %vm225_vm1, %v10565_v56  ;;  %v12556_v56 = vld [vmem:[#allocation15_spill] sm:$0xff] }
 0x21b   : > { %9156 = vmatmul.mubr.msk.f32.gmra.mrb[18].mxu0 %vm225_vm1, %v10571_v57  ;;  %v12557_v57 = vld [vmem:[#allocation16_spill] sm:$0xff] }
 0x21c   : > { %9158 = vmatprep.mubr.msk.f32.mxu0 %vm225_vm1, %v10573_v58  ;;  %v12558_v58 = vld [vmem:[#allocation17_spill] sm:$0xff] }
 0x21f   : > { %9159 = vmatmul.mubr.msk.f32.gmra.mrb[20].mxu0 %vm225_vm1, %v10579_v59  ;;  %v12559_v59 = vld [vmem:[#allocation18_spill] sm:$0xff] }
 0x220   : > { %9161 = vmatprep.mubr.msk.f32.mxu0 %vm225_vm1, %v10581_v60  ;;  %v12560_v60 = vld [vmem:[#allocation19_spill] sm:$0xff] }
 0x223   : > { %9162 = vmatmul.mubr.msk.f32.gmra.mrb[22].mxu0 %vm225_vm1, %v10587_v61  ;;  %v12561_v61 = vld [vmem:[#allocation20_spill] sm:$0xff] }
 0x224   : > { %9164 = vmatprep.mubr.msk.f32.mxu0 %vm225_vm1, %v10589_v62  ;;  %v12562_v62 = vld [vmem:[#allocation21_spill] sm:$0xff] }
 0x227   : > { %9165 = vmatmul.mubr.msk.f32.gmra.mrb[24].mxu0 %vm225_vm1, %v12525_v28 }
 0x228   : > { %9167 = vmatprep.mubr.msk.f32.mxu0 %vm225_vm1, %v12526_v29 }
 0x22b   : > { %9168 = vmatmul.mubr.msk.f32.gmra.mrb[26].mxu0 %vm225_vm1, %v12527_v33 }
 0x22c   : > { %9170 = vmatprep.mubr.msk.f32.mxu0 %vm225_vm1, %v11010_v30 }
 0x22f   : > { %9171 = vmatmul.mubr.msk.f32.gmra.mrb[28].mxu0 %vm225_vm1, %v11016_v34 }
 0x230   : > { %9173 = vmatprep.mubr.msk.f32.mxu0 %vm225_vm1, %v3061_v51 }
 0x233   : > { %9174 = vmatmul.mubr.msk.f32.gmra.mrb[30].mxu0 %vm225_vm1, %v3062_v52 }
 0x234   : > { %9178 = vmatprep.mubr.msk.f32.mxu0 %vm225_vm1, %v12530_v44 }
 0x237   : > { %9179 = vmatmul.mubr.msk.f32.vlgmr.msra.gmra.mrb[0].mxu0 %vm225_vm1, %v12531_v45 }
 0x238   : > { %9181 = vmatprep.mubr.msk.f32.mxu0 %vm225_vm1, %v12532_v46 }
 0x23b   : > { %9182 = vmatmul.mubr.msk.f32.gmra.mrb[2].mxu0 %vm225_vm1, %v12553_v53 }
 0x23c   : > { %9184 = vmatprep.mubr.msk.f32.mxu0 %vm225_vm1, %v12554_v54 }
 0x23f   : > { %9185 = vmatmul.mubr.msk.f32.gmra.mrb[4].mxu0 %vm225_vm1, %v12555_v55 }
 0x240   : > { %9187 = vmatprep.mubr.msk.f32.mxu0 %vm225_vm1, %v12556_v56 }
 0x243   : > { %9188 = vmatmul.mubr.msk.f32.gmra.mrb[6].mxu0 %vm225_vm1, %v12557_v57 }
 0x244   : > { %9190 = vmatprep.mubr.msk.f32.mxu0 %vm225_vm1, %v12558_v58 }
 0x247   : > { %9191 = vmatmul.mubr.msk.f32.gmra.mrb[8].mxu0 %vm225_vm1, %v12559_v59 }
 0x248   : > { %9193 = vmatprep.mubr.msk.f32.mxu0 %vm225_vm1, %v12560_v60 }
 0x24b   : > { %9194 = vmatmul.mubr.msk.f32.gmra.mrb[10].mxu0 %vm225_vm1, %v12561_v61 }
 0x24c   : > { %9196 = vmatprep.mubr.msk.f32.mxu0 %vm225_vm1, %v12562_v62 }
 0x24f   : > { %9197 = vmatmul.mubr.msk.f32.gmra.mrb[12].mxu0 %vm225_vm1, %v12543_v49 }
 0x250   : > { %9199 = vmatprep.mubr.msk.f32.mxu0 %vm225_vm1, %v12563_v23 }
 0x253   : > { %9200 = vmatmul.mubr.msk.f32.gmra.mrb[14].mxu0 %vm225_vm1, %v12545_v63 }
 0x254   : > { %9202 = vmatprep.mubr.msk.f32.mxu0 %vm225_vm1, %v12564_v24 }
 0x257   : > { %9203 = vmatmul.mubr.msk.f32.gmra.mrb[16].mxu0 %vm225_vm1, %v12547_v35 }
 0x258   : > { %9205 = vmatprep.mubr.msk.f32.mxu0 %vm225_vm1, %v12548_v43 }
 0x25b   : > { %9206 = vmatmul.mubr.msk.f32.gmra.mrb[18].mxu0 %vm225_vm1, %v12565_v25 }
 0x25c   : > { %9208 = vmatprep.mubr.msk.f32.mxu0 %vm225_vm1, %v12550_v48 }
 0x25f   : > { %9209 = vmatmul.mubr.msk.f32.gmra.mrb[20].mxu0 %vm225_vm1, %v10845_v1  ;;  %v3451_v1 = vld [vmem:[#allocation2 + $0x229] sm:$0xff] }
 0x260   : > { %9211 = vmatprep.mubr.msk.f32.mxu0 %vm225_vm1, %v12566_v26 }
 0x263   : > { %9212 = vmatmul.mubr.msk.f32.gmra.mrb[22].mxu0 %vm225_vm1, %v10853_v0  ;;  %v3452_v0 = vld [vmem:[#allocation2 + $0x231] sm:$0xff] }
 0x264   : > { %9214 = vmatprep.mubr.msk.f32.mxu0 %vm225_vm1, %v12552_v7 }
 0x267   : > { %9215 = vmatmul.mubr.msk.f32.gmra.mrb[24].mxu0 %vm225_vm1, %v10861_v40 }
 0x268   : > { %9217 = vmatprep.mubr.msk.f32.mxu0 %vm225_vm1, %v12567_v27 }
 0x26b   : > { %9218 = vmatmul.mubr.msk.f32.gmra.mrb[26].mxu0 %vm225_vm1, %v10869_v6 }
 0x26c   : > { %9220 = vmatprep.mubr.msk.f32.mxu0 %vm225_vm1, %v11083_v47 }
 0x26f   : > { %9221 = vmatmul.mubr.msk.f32.gmra.mrb[28].mxu0 %vm225_vm1, %v11089_v50 }
 0x270   : > { %9223 = vmatprep.mubr.msk.f32.mxu0 %vm225_vm1, %v3451_v1 }
 0x273   : > { %9224 = vmatmul.mubr.msk.f32.gmra.mrb[30].mxu0 %vm225_vm1, %v3452_v0 }
 0x30a   : > { %v9180_v4 = vpop.f32.mrb[0].mxu0 }
 0x30b   : > { %v3819_v40 = vadd.f32 %v9180_v4, %v11433_v3  ;;  %v3620_v41 = vpop.f32.mrb[1].mxu0 }
 0x30c   : > { %v3818_v6 = vadd.f32 %v11433_v3, %v3620_v41 }
 0x30d   : > { %v3851_v2 = vmax.f32 %v3819_v40, 0.0 }
 0x30e   : > { %v3850_v5 = vmax.f32 %v3818_v6, 0.0  ;;  %v9183_v28 = vpop.f32.mrb[2].mxu0 }
 0x30f   : > { %3958 = vst.msk [vmem:[#allocation3 + $0x30] sm:$0xff] %vm3882_vm3, %v3851_v2  ;;  %v3821_v29 = vadd.f32 %v9183_v28, %v11433_v3  ;;  %v3630_v30 = vpop.f32.mrb[3].mxu0 }
 0x310   : > { %3957 = vst.msk [vmem:[#allocation3 + $0x28] sm:$0xff] %vm3882_vm3, %v3850_v5  ;;  %v3820_v33 = vadd.f32 %v11433_v3, %v3630_v30 }
 0x311   : > { %v3853_v34 = vmax.f32 %v3821_v29, 0.0 }
 0x312   : > { %v3852_v36 = vmax.f32 %v3820_v33, 0.0  ;;  %v9186_v44 = vpop.f32.mrb[4].mxu0 }
 0x313   : > { %3960 = vst.msk [vmem:[#allocation3 + $0x50] sm:$0xff] %vm3882_vm3, %v3853_v34  ;;  %v3823_v45 = vadd.f32 %v9186_v44, %v11433_v3  ;;  %v3640_v46 = vpop.f32.mrb[5].mxu0 }
 0x314   : > { %3959 = vst.msk [vmem:[#allocation3 + $0x48] sm:$0xff] %vm3882_vm3, %v3852_v36  ;;  %v3822_v47 = vadd.f32 %v11433_v3, %v3640_v46 }
 0x315   : > { %v3855_v48 = vmax.f32 %v3823_v45, 0.0 }
 0x316   : > { %v3854_v49 = vmax.f32 %v3822_v47, 0.0  ;;  %v9189_v50 = vpop.f32.mrb[6].mxu0  ;;  %v11453_v8 = vld [vmem:[#allocation3 + $0x30] sm:$0xff] }
 0x317   : > { %3962 = vst.msk [vmem:[#allocation3 + $0x70] sm:$0xff] %vm3882_vm3, %v3855_v48  ;;  %v3825_v63 = vadd.f32 %v9189_v50, %v11433_v3  ;;  %v3650_v7 = vpop.f32.mrb[7].mxu0  ;;  %v11447_v35 = vld [vmem:[#allocation3 + $0x28] sm:$0xff] }
 0x318   : > { %3961 = vst.msk [vmem:[#allocation3 + $0x68] sm:$0xff] %vm3882_vm3, %v3854_v49  ;;  %v3824_v43 = vadd.f32 %v11433_v3, %v3650_v7  ;;  %9231 = vmatprep.mubr.msk.f32.mxu1 %vm3882_vm3, %v11447_v35 }
 0x319   : > { %v3857_v10 = vmax.f32 %v3825_v63, 0.0  ;;  %9232 = vmatmul.mubr.msk.f32.gmra.mrb[2].mxu1 %vm3882_vm3, %v11453_v8 }
 0x31a   : > { %v3856_v11 = vmax.f32 %v3824_v43, 0.0  ;;  %v9192_v9 = vpop.f32.mrb[8].mxu0  ;;  %v11465_v16 = vld [vmem:[#allocation3 + $0x50] sm:$0xff] }
 0x31b   : > { %3964 = vst.msk [vmem:[#allocation3 + $0x90] sm:$0xff] %vm3882_vm3, %v3857_v10  ;;  %v3827_v12 = vadd.f32 %v9192_v9, %v11433_v3  ;;  %v3660_v13 = vpop.f32.mrb[9].mxu0  ;;  %v11459_v14 = vld [vmem:[#allocation3 + $0x48] sm:$0xff] }
 0x31c   : > { %3963 = vst.msk [vmem:[#allocation3 + $0x88] sm:$0xff] %vm3882_vm3, %v3856_v11  ;;  %v3826_v15 = vadd.f32 %v11433_v3, %v3660_v13  ;;  %9234 = vmatprep.mubr.msk.f32.mxu1 %vm3882_vm3, %v11459_v14 }
 0x31d   : > { %v3859_v17 = vmax.f32 %v3827_v12, 0.0  ;;  %9235 = vmatmul.mubr.msk.f32.gmra.mrb[4].mxu1 %vm3882_vm3, %v11465_v16 }
 0x31e   : > { %v3858_v18 = vmax.f32 %v3826_v15, 0.0  ;;  %v9195_v19 = vpop.f32.mrb[10].mxu0  ;;  %v11477_v52 = vld [vmem:[#allocation3 + $0x70] sm:$0xff] }
 0x31f   : > { %3966 = vst.msk [vmem:[#allocation3 + $0xb0] sm:$0xff] %vm3882_vm3, %v3859_v17  ;;  %v3829_v20 = vadd.f32 %v9195_v19, %v11433_v3  ;;  %v3670_v21 = vpop.f32.mrb[11].mxu0  ;;  %v11471_v22 = vld [vmem:[#allocation3 + $0x68] sm:$0xff] }
 0x320   : > { %3965 = vst.msk [vmem:[#allocation3 + $0xa8] sm:$0xff] %vm3882_vm3, %v3858_v18  ;;  %v3828_v51 = vadd.f32 %v11433_v3, %v3670_v21  ;;  %9237 = vmatprep.mubr.msk.f32.mxu1 %vm3882_vm3, %v11471_v22 }
 0x321   : > { %v3861_v53 = vmax.f32 %v3829_v20, 0.0  ;;  %9238 = vmatmul.mubr.msk.f32.gmra.mrb[6].mxu1 %vm3882_vm3, %v11477_v52 }
 0x322   : > { %v3860_v54 = vmax.f32 %v3828_v51, 0.0  ;;  %v9198_v55 = vpop.f32.mrb[12].mxu0  ;;  %v11489_v60 = vld [vmem:[#allocation3 + $0x90] sm:$0xff] }
 0x323   : > { %3968 = vst.msk [vmem:[#allocation3 + $0xd0] sm:$0xff] %vm3882_vm3, %v3861_v53  ;;  %v3831_v56 = vadd.f32 %v9198_v55, %v11433_v3  ;;  %v3680_v57 = vpop.f32.mrb[13].mxu0  ;;  %v11483_v58 = vld [vmem:[#allocation3 + $0x88] sm:$0xff] }
 0x324   : > { %3967 = vst.msk [vmem:[#allocation3 + $0xc8] sm:$0xff] %vm3882_vm3, %v3860_v54  ;;  %v3830_v59 = vadd.f32 %v11433_v3, %v3680_v57  ;;  %9240 = vmatprep.mubr.msk.f32.mxu1 %vm3882_vm3, %v11483_v58 }
 0x325   : > { %v3863_v61 = vmax.f32 %v3831_v56, 0.0  ;;  %9241 = vmatmul.mubr.msk.f32.gmra.mrb[8].mxu1 %vm3882_vm3, %v11489_v60 }
 0x326   : > { %v3862_v62 = vmax.f32 %v3830_v59, 0.0  ;;  %v9201_v23 = vpop.f32.mrb[14].mxu0  ;;  %v11501_v1 = vld [vmem:[#allocation3 + $0xb0] sm:$0xff] }
 0x327   : > { %3970 = vst.msk [vmem:[#allocation3 + $0xf0] sm:$0xff] %vm3882_vm3, %v3863_v61  ;;  %v3833_v24 = vadd.f32 %v9201_v23, %v11433_v3  ;;  %v3690_v25 = vpop.f32.mrb[15].mxu0  ;;  %v11495_v26 = vld [vmem:[#allocation3 + $0xa8] sm:$0xff] }
 0x328   : > { %3969 = vst.msk [vmem:[#allocation3 + $0xe8] sm:$0xff] %vm3882_vm3, %v3862_v62  ;;  %v3832_v27 = vadd.f32 %v11433_v3, %v3690_v25  ;;  %9243 = vmatprep.mubr.msk.f32.mxu1 %vm3882_vm3, %v11495_v26 }
 0x329   : > { %v3865_v0 = vmax.f32 %v3833_v24, 0.0  ;;  %9244 = vmatmul.mubr.msk.f32.gmra.mrb[10].mxu1 %vm3882_vm3, %v11501_v1 }
 0x32a   : > { %v3864_v31 = vmax.f32 %v3832_v27, 0.0  ;;  %v9204_v32 = vpop.f32.mrb[16].mxu0  ;;  %v11513_v40 = vld [vmem:[#allocation3 + $0xd0] sm:$0xff] }
 0x32b   : > { %3972 = vst.msk [vmem:[#allocation3 + $0x110] sm:$0xff] %vm3882_vm3, %v3865_v0  ;;  %v3835_v37 = vadd.f32 %v9204_v32, %v11433_v3  ;;  %v3700_v38 = vpop.f32.mrb[17].mxu0  ;;  %v11507_v39 = vld [vmem:[#allocation3 + $0xc8] sm:$0xff] }
 0x32c   : > { %3971 = vst.msk [vmem:[#allocation3 + $0x108] sm:$0xff] %vm3882_vm3, %v3864_v31  ;;  %v3834_v4 = vadd.f32 %v11433_v3, %v3700_v38  ;;  %9246 = vmatprep.mubr.msk.f32.mxu1 %vm3882_vm3, %v11507_v39 }
 0x32d   : > { %v3867_v41 = vmax.f32 %v3835_v37, 0.0  ;;  %9247 = vmatmul.mubr.msk.f32.gmra.mrb[12].mxu1 %vm3882_vm3, %v11513_v40 }
 0x32e   : > { %v3866_v6 = vmax.f32 %v3834_v4, 0.0  ;;  %v9207_v2 = vpop.f32.mrb[18].mxu0  ;;  %v11525_v33 = vld [vmem:[#allocation3 + $0xf0] sm:$0xff] }
 0x32f   : > { %3974 = vst.msk [vmem:[#allocation3 + $0x130] sm:$0xff] %vm3882_vm3, %v3867_v41  ;;  %v3837_v5 = vadd.f32 %v9207_v2, %v11433_v3  ;;  %v3710_v28 = vpop.f32.mrb[19].mxu0  ;;  %v11519_v29 = vld [vmem:[#allocation3 + $0xe8] sm:$0xff] }
 0x330   : > { %3973 = vst.msk [vmem:[#allocation3 + $0x128] sm:$0xff] %vm3882_vm3, %v3866_v6  ;;  %v3836_v30 = vadd.f32 %v11433_v3, %v3710_v28  ;;  %9249 = vmatprep.mubr.msk.f32.mxu1 %vm3882_vm3, %v11519_v29 }
 0x331   : > { %v3869_v34 = vmax.f32 %v3837_v5, 0.0  ;;  %9250 = vmatmul.mubr.msk.f32.gmra.mrb[14].mxu1 %vm3882_vm3, %v11525_v33 }
 0x332   : > { %v3868_v36 = vmax.f32 %v3836_v30, 0.0  ;;  %v9210_v44 = vpop.f32.mrb[20].mxu0  ;;  %v11537_v49 = vld [vmem:[#allocation3 + $0x110] sm:$0xff] }
 0x333   : > { %3976 = vst.msk [vmem:[#allocation3 + $0x150] sm:$0xff] %vm3882_vm3, %v3869_v34  ;;  %v3839_v45 = vadd.f32 %v9210_v44, %v11433_v3  ;;  %v3720_v46 = vpop.f32.mrb[21].mxu0  ;;  %v11531_v47 = vld [vmem:[#allocation3 + $0x108] sm:$0xff] }
 0x334   : > { %3975 = vst.msk [vmem:[#allocation3 + $0x148] sm:$0xff] %vm3882_vm3, %v3868_v36  ;;  %v3838_v48 = vadd.f32 %v11433_v3, %v3720_v46  ;;  %9252 = vmatprep.mubr.msk.f32.mxu1 %vm3882_vm3, %v11531_v47  ;;  %v3989_v46 = vld [vmem:[#allocation3 + $0x7] sm:$0xff] }
 0x335   : > { %v3871_v50 = vmax.f32 %v3839_v45, 0.0  ;;  %9253 = vmatmul.mubr.msk.f32.gmra.mrb[16].mxu1 %vm3882_vm3, %v11537_v49 }
 0x336   : > { %v3870_v63 = vmax.f32 %v3838_v48, 0.0  ;;  %v9213_v7 = vpop.f32.mrb[22].mxu0  ;;  %v11549_v12 = vld [vmem:[#allocation3 + $0x130] sm:$0xff] }
 0x337   : > { %3978 = vst.msk [vmem:[#allocation3 + $0x170] sm:$0xff] %vm3882_vm3, %v3871_v50  ;;  %v3841_v43 = vadd.f32 %v9213_v7, %v11433_v3  ;;  %v3730_v10 = vpop.f32.mrb[23].mxu0  ;;  %v11543_v11 = vld [vmem:[#allocation3 + $0x128] sm:$0xff] }
 0x338   : > { %3977 = vst.msk [vmem:[#allocation3 + $0x168] sm:$0xff] %vm3882_vm3, %v3870_v63  ;;  %v3840_v9 = vadd.f32 %v11433_v3, %v3730_v10  ;;  %9255 = vmatprep.mubr.msk.f32.mxu1 %vm3882_vm3, %v11543_v11  ;;  %v3990_v50 = vld [vmem:[#allocation3 + $0xf] sm:$0xff]  ;;  %v11623_v63 = vld [vmem:[%s12380_s3 + $0x18] sm:$0xff]  ;;  %v11626_v7 = vld [vmem:[#allocation3 + $0x27] sm:$0xff] }
 0x339   : > { %v3873_v13 = vmax.f32 %v3841_v43, 0.0  ;;  %9256 = vmatmul.mubr.msk.f32.gmra.mrb[18].mxu1 %vm3882_vm3, %v11549_v12  ;;  %v11632_v43 = vld [vmem:[#allocation3 + $0x2f] sm:$0xff]  ;;  %v11636_v10 = vld [vmem:[#allocation3 + $0x47] sm:$0xff] }
 0x33a   : > { %v3872_v15 = vmax.f32 %v3840_v9, 0.0  ;;  %v9216_v17 = vpop.f32.mrb[24].mxu0  ;;  %v11561_v51 = vld [vmem:[#allocation3 + $0x150] sm:$0xff] }
 0x33b   : > { %3980 = vst.msk [vmem:[#allocation3 + $0x190] sm:$0xff] %vm3882_vm3, %v3873_v13  ;;  %v3843_v18 = vadd.f32 %v9216_v17, %v11433_v3  ;;  %v3740_v19 = vpop.f32.mrb[25].mxu0  ;;  %v11555_v20 = vld [vmem:[#allocation3 + $0x148] sm:$0xff] }
 0x33c   : > { %3979 = vst.msk [vmem:[#allocation3 + $0x188] sm:$0xff] %vm3882_vm3, %v3872_v15  ;;  %v3842_v21 = vadd.f32 %v11433_v3, %v3740_v19  ;;  %9258 = vmatprep.mubr.msk.f32.mxu1 %vm3882_vm3, %v11555_v20  ;;  %v11640_v9 = vld [vmem:[#allocation3 + $0x4f] sm:$0xff]  ;;  %v11652_v15 = vld [vmem:[#allocation3 + $0x87] sm:$0xff] }
 0x33d   : > { %v3875_v53 = vmax.f32 %v3843_v18, 0.0  ;;  %9259 = vmatmul.mubr.msk.f32.gmra.mrb[20].mxu1 %vm3882_vm3, %v11561_v51  ;;  %v11648_v13 = vld [vmem:[#allocation3 + $0x6f] sm:$0xff]  ;;  %v11660_v18 = vld [vmem:[#allocation3 + $0xa7] sm:$0xff] }
 0x33e   : > { %v3874_v54 = vmax.f32 %v3842_v21, 0.0  ;;  %v9219_v55 = vpop.f32.mrb[26].mxu0  ;;  %v11573_v62 = vld [vmem:[#allocation3 + $0x170] sm:$0xff]  ;;  %v11668_v21 = vld [vmem:[#allocation3 + $0xc7] sm:$0xff] }
 0x33f   : > { %3982 = vst.msk [vmem:[#allocation3 + $0x1b0] sm:$0xff] %vm3882_vm3, %v3875_v53  ;;  %v3845_v56 = vadd.f32 %v9219_v55, %v11433_v3  ;;  %v3750_v57 = vpop.f32.mrb[27].mxu0  ;;  %v11567_v59 = vld [vmem:[#allocation3 + $0x168] sm:$0xff] }
 0x340   : > { %3981 = vst.msk [vmem:[#allocation3 + $0x1a8] sm:$0xff] %vm3882_vm3, %v3874_v54  ;;  %v3844_v61 = vadd.f32 %v11433_v3, %v3750_v57  ;;  %9261 = vmatprep.mubr.msk.f32.mxu1 %vm3882_vm3, %v11567_v59  ;;  %v11656_v17 = vld [vmem:[#allocation3 + $0x8f] sm:$0xff]  ;;  %v11676_v54 = vld [vmem:[#allocation3 + $0xe7] sm:$0xff] }
 0x341   : > { %v3877_v23 = vmax.f32 %v3845_v56, 0.0  ;;  %9262 = vmatmul.mubr.msk.f32.gmra.mrb[22].mxu1 %vm3882_vm3, %v11573_v62  ;;  %v11664_v19 = vld [vmem:[#allocation3 + $0xaf] sm:$0xff]  ;;  %v11684_v56 = vld [vmem:[#allocation3 + $0x107] sm:$0xff] }
 0x342   : > { %v3876_v24 = vmax.f32 %v3844_v61, 0.0  ;;  %v9222_v25 = vpop.f32.mrb[28].mxu0  ;;  %v11585_v37 = vld [vmem:[#allocation3 + $0x190] sm:$0xff]  ;;  %v11692_v61 = vld [vmem:[#allocation3 + $0x127] sm:$0xff] }
 0x343   : > { %3984 = vst.msk [vmem:[#allocation3 + $0x1d0] sm:$0xff] %vm3882_vm3, %v3877_v23  ;;  %v3847_v27 = vadd.f32 %v9222_v25, %v11433_v3  ;;  %v3760_v0 = vpop.f32.mrb[29].mxu0  ;;  %v11579_v31 = vld [vmem:[#allocation3 + $0x188] sm:$0xff] }
 0x344   : > { %3983 = vst.msk [vmem:[#allocation3 + $0x1c8] sm:$0xff] %vm3882_vm3, %v3876_v24  ;;  %v3846_v32 = vadd.f32 %v11433_v3, %v3760_v0  ;;  %9264 = vmatprep.mubr.msk.f32.mxu1 %vm3882_vm3, %v11579_v31  ;;  %v11672_v53 = vld [vmem:[#allocation3 + $0xcf] sm:$0xff]  ;;  %v11700_v24 = vld [vmem:[#allocation3 + $0x147] sm:$0xff] }
 0x345   : > { %v3879_v38 = vmax.f32 %v3847_v27, 0.0  ;;  %9265 = vmatmul.mubr.msk.f32.gmra.mrb[24].mxu1 %vm3882_vm3, %v11585_v37  ;;  %v11680_v55 = vld [vmem:[#allocation3 + $0xef] sm:$0xff]  ;;  %v11708_v27 = vld [vmem:[#allocation3 + $0x167] sm:$0xff] }
 0x346   : > { %v3878_v4 = vmax.f32 %v3846_v32, 0.0  ;;  %v9225_v41 = vpop.f32.mrb[30].mxu0  ;;  %v11597_v30 = vld [vmem:[#allocation3 + $0x1b0] sm:$0xff]  ;;  %v11716_v32 = vld [vmem:[#allocation3 + $0x187] sm:$0xff] }
 0x347   : > { %3986 = vst.msk [vmem:[#allocation3 + $0x1f0] sm:$0xff] %vm3882_vm3, %v3879_v38  ;;  %v3849_v6 = vadd.f32 %v9225_v41, %v11433_v3  ;;  %v3770_v2 = vpop.f32.mrb[31].mxu0  ;;  %v11591_v5 = vld [vmem:[#allocation3 + $0x1a8] sm:$0xff] }
 0x348   : > { %3985 = vst.msk [vmem:[#allocation3 + $0x1e8] sm:$0xff] %vm3882_vm3, %v3878_v4  ;;  %v3848_v28 = vadd.f32 %v11433_v3, %v3770_v2  ;;  %9267 = vmatprep.mubr.msk.f32.mxu1 %vm3882_vm3, %v11591_v5  ;;  %v11688_v57 = vld [vmem:[#allocation3 + $0x10f] sm:$0xff]  ;;  %v11724_v4 = vld [vmem:[#allocation3 + $0x1a7] sm:$0xff] }
 0x349   : > { %v3881_v34 = vmax.f32 %v3849_v6, 0.0  ;;  %9268 = vmatmul.mubr.msk.f32.gmra.mrb[26].mxu1 %vm3882_vm3, %v11597_v30  ;;  %v11696_v23 = vld [vmem:[#allocation3 + $0x12f] sm:$0xff] }
 0x34a   : > { %v3880_v36 = vmax.f32 %v3848_v28, 0.0  ;;  %v11607_v3 = vld [vmem:[#allocation3 + $0x1d0] sm:$0xff] }
 0x34b   : > { %3988 = vst.msk [vmem:[#allocation3 + $0x210] sm:$0xff] %vm3882_vm3, %v3881_v34  ;;  %v11602_v44 = vld [vmem:[#allocation3 + $0x1c8] sm:$0xff] }
 0x34c   : > { %3987 = vst.msk [vmem:[#allocation3 + $0x208] sm:$0xff] %vm3882_vm3, %v3880_v36  ;;  %9270 = vmatprep.mubr.msk.f32.mxu1 %vm3882_vm3, %v11602_v44  ;;  %v11704_v25 = vld [vmem:[#allocation3 + $0x14f] sm:$0xff]  ;;  %v11732_v6 = vld [vmem:[#allocation3 + $0x1c7] sm:$0xff] }
 0x34d   : > { %9271 = vmatmul.mubr.msk.f32.gmra.mrb[28].mxu1 %vm3882_vm3, %v11607_v3  ;;  %v11712_v0 = vld [vmem:[#allocation3 + $0x16f] sm:$0xff] }
 0x34e   : > { %v11615_v48 = vld [vmem:[#allocation3 + $0x1f0] sm:$0xff] }
 0x34f   : > { %v11611_v45 = vld [vmem:[#allocation3 + $0x1e8] sm:$0xff]  ;;  %12570 = vst [vmem:[#allocation5_spill] sm:$0xff] %v11615_v48 }
 0x350   : > { %12569 = vst [vmem:[#allocation4_spill] sm:$0xff] %v11611_v45  ;;  %9273 = vmatprep.mubr.msk.f32.mxu1 %vm3882_vm3, %v11611_v45  ;;  %v11720_v38 = vld [vmem:[#allocation3 + $0x18f] sm:$0xff]  ;;  %v11740_v28 = vld [vmem:[#allocation3 + $0x1e7] sm:$0xff] }
 0x351   : > { %9274 = vmatmul.mubr.msk.f32.gmra.mrb[30].mxu1 %vm3882_vm3, %v11615_v48  ;;  %v11728_v41 = vld [vmem:[#allocation3 + $0x1af] sm:$0xff] }
 0x352   : > { %9278 = vmatprep.mubr.msk.f32.mxu1 %vm3882_vm3, %v3989_v46  ;;  %v11736_v2 = vld [vmem:[#allocation3 + $0x1cf] sm:$0xff] }
 0x353   : > { %v4698_v34 = vld [vmem:[#allocation3 + $0x9] sm:$0xff]  ;;  %v4699_v46 = vld [vmem:[#allocation3 + $0x11] sm:$0xff] }
 0x354   : > { %v11744_v36 = vld [vmem:[#allocation3 + $0x1ef] sm:$0xff] }
 0x355   : > { %9279 = vmatmul.mubr.msk.f32.vlgmr.msra.gmra.mrb[0].mxu1 %vm3882_vm3, %v3990_v50  ;;  %v11752_v50 = vld [vmem:[%s12380_s3 + $0x20] sm:$0xff]  ;;  %v11755_v48 = vld [vmem:[#allocation3 + $0x29] sm:$0xff]  ;;  %v11761_v45 = vld [vmem:[#allocation3 + $0x31] sm:$0xff] }
 0x356   : > { %9327 = vmatpush3.msra.mxu1 %v11427_v42  ;;  %9281 = vmatprep.mubr.msk.f32.mxu1 %vm3882_vm3, %v11626_v7  ;;  %v11644_v42 = vld [vmem:[#allocation3 + $0x67] sm:$0xff]  ;;  %12571 = vst [vmem:[#allocation6_spill] sm:$0xff] %v11755_v48  ;;  %12572 = vst [vmem:[#allocation7_spill] sm:$0xff] %v11761_v45 }
 0x357   : > { %9376 = vmatprep.subr.mxu1 %v11623_v63 }
 0x359   : > { %9282 = vmatmul.mubr.msk.f32.gmra.mrb[2].mxu1 %vm3882_vm3, %v11632_v43 }
 0x35a   : > { %9284 = vmatprep.mubr.msk.f32.mxu1 %vm3882_vm3, %v11636_v10 }
 0x35d   : > { %9285 = vmatmul.mubr.msk.f32.gmra.mrb[4].mxu1 %vm3882_vm3, %v11640_v9 }
 0x35e   : > { %9287 = vmatprep.mubr.msk.f32.mxu1 %vm3882_vm3, %v11644_v42 }
 0x361   : > { %9288 = vmatmul.mubr.msk.f32.gmra.mrb[6].mxu1 %vm3882_vm3, %v11648_v13 }
 0x362   : > { %9290 = vmatprep.mubr.msk.f32.mxu1 %vm3882_vm3, %v11652_v15 }
 0x365   : > { %9291 = vmatmul.mubr.msk.f32.gmra.mrb[8].mxu1 %vm3882_vm3, %v11656_v17 }
 0x366   : > { %9293 = vmatprep.mubr.msk.f32.mxu1 %vm3882_vm3, %v11660_v18 }
 0x369   : > { %9294 = vmatmul.mubr.msk.f32.gmra.mrb[10].mxu1 %vm3882_vm3, %v11664_v19 }
 0x36a   : > { %9296 = vmatprep.mubr.msk.f32.mxu1 %vm3882_vm3, %v11668_v21 }
 0x36d   : > { %9297 = vmatmul.mubr.msk.f32.gmra.mrb[12].mxu1 %vm3882_vm3, %v11672_v53 }
 0x36e   : > { %9299 = vmatprep.mubr.msk.f32.mxu1 %vm3882_vm3, %v11676_v54 }
 0x371   : > { %9300 = vmatmul.mubr.msk.f32.gmra.mrb[14].mxu1 %vm3882_vm3, %v11680_v55 }
 0x372   : > { %9302 = vmatprep.mubr.msk.f32.mxu1 %vm3882_vm3, %v11684_v56 }
 0x375   : > { %9303 = vmatmul.mubr.msk.f32.gmra.mrb[16].mxu1 %vm3882_vm3, %v11688_v57 }
 0x376   : > { %9305 = vmatprep.mubr.msk.f32.mxu1 %vm3882_vm3, %v11692_v61 }
 0x379   : > { %9306 = vmatmul.mubr.msk.f32.gmra.mrb[18].mxu1 %vm3882_vm3, %v11696_v23 }
 0x37a   : > { %9308 = vmatprep.mubr.msk.f32.mxu1 %vm3882_vm3, %v11700_v24 }
 0x37d   : > { %9309 = vmatmul.mubr.msk.f32.gmra.mrb[20].mxu1 %vm3882_vm3, %v11704_v25 }
 0x37e   : > { %9311 = vmatprep.mubr.msk.f32.mxu1 %vm3882_vm3, %v11708_v27 }
 0x381   : > { %9312 = vmatmul.mubr.msk.f32.gmra.mrb[22].mxu1 %vm3882_vm3, %v11712_v0 }
 0x382   : > { %9314 = vmatprep.mubr.msk.f32.mxu1 %vm3882_vm3, %v11716_v32 }
 0x385   : > { %9315 = vmatmul.mubr.msk.f32.gmra.mrb[24].mxu1 %vm3882_vm3, %v11720_v38 }
 0x386   : > { %9317 = vmatprep.mubr.msk.f32.mxu1 %vm3882_vm3, %v11724_v4 }
 0x389   : > { %9318 = vmatmul.mubr.msk.f32.gmra.mrb[26].mxu1 %vm3882_vm3, %v11728_v41 }
 0x38a   : > { %9320 = vmatprep.mubr.msk.f32.mxu1 %vm3882_vm3, %v11732_v6 }
 0x38d   : > { %9321 = vmatmul.mubr.msk.f32.gmra.mrb[28].mxu1 %vm3882_vm3, %v11736_v2 }
 0x38e   : > { %9323 = vmatprep.mubr.msk.f32.mxu1 %vm3882_vm3, %v11740_v28 }
 0x391   : > { %9324 = vmatmul.mubr.msk.f32.gmra.mrb[30].mxu1 %vm3882_vm3, %v11744_v36 }
 0x392   : > { %9328 = vmatprep.mubr.msk.f32.mxu1 %vm3882_vm3, %v4698_v34  ;;  %v11765_v34 = vld [vmem:[#allocation3 + $0x49] sm:$0xff] }
 0x393   : > { %12573 = vst [vmem:[#allocation8_spill] sm:$0xff] %v11765_v34 }
 0x395   : > { %9329 = vmatmul.mubr.msk.f32.vlgmr.msra.gmra.mrb[0].mxu1 %vm3882_vm3, %v4699_v46  ;;  %v11769_v46 = vld [vmem:[#allocation3 + $0x51] sm:$0xff] }
 0x396   : > { %9377 = vmatpush3.msra.mxu1 %v11623_v63  ;;  %9331 = vmatprep.mubr.msk.f32.mxu1 %vm3882_vm3, %v11755_v48  ;;  %12574 = vst [vmem:[#allocation9_spill] sm:$0xff] %v11769_v46  ;;  %v11773_v63 = vld [vmem:[#allocation3 + $0x69] sm:$0xff]  ;;  %v11777_v48 = vld [vmem:[#allocation3 + $0x71] sm:$0xff] }
 0x397   : > { %9426 = vmatprep.subr.mxu1 %v11752_v50  ;;  %12575 = vst [vmem:[#allocation10_spill] sm:$0xff] %v11773_v63  ;;  %12576 = vst [vmem:[#allocation11_spill] sm:$0xff] %v11777_v48 }
 0x399   : > { %9332 = vmatmul.mubr.msk.f32.gmra.mrb[2].mxu1 %vm3882_vm3, %v11761_v45  ;;  %v11781_v45 = vld [vmem:[#allocation3 + $0x89] sm:$0xff] }
 0x39a   : > { %9334 = vmatprep.mubr.msk.f32.mxu1 %vm3882_vm3, %v11765_v34  ;;  %12577 = vst [vmem:[#allocation22_spill] sm:$0xff] %v11781_v45  ;;  %v11785_v34 = vld [vmem:[#allocation3 + $0x91] sm:$0xff] }
 0x39b   : > { %12578 = vst [vmem:[#allocation24_spill] sm:$0xff] %v11785_v34 }
 0x39d   : > { %9335 = vmatmul.mubr.msk.f32.gmra.mrb[4].mxu1 %vm3882_vm3, %v11769_v46  ;;  %v11789_v46 = vld [vmem:[#allocation3 + $0xa9] sm:$0xff] }
 0x39e   : > { %9337 = vmatprep.mubr.msk.f32.mxu1 %vm3882_vm3, %v11773_v63  ;;  %12579 = vst [vmem:[#allocation26_spill] sm:$0xff] %v11789_v46  ;;  %v11793_v63 = vld [vmem:[#allocation3 + $0xb1] sm:$0xff] }
 0x39f   : > { %12580 = vst [vmem:[#allocation27_spill] sm:$0xff] %v11793_v63 }
 0x3a1   : > { %9338 = vmatmul.mubr.msk.f32.gmra.mrb[6].mxu1 %vm3882_vm3, %v11777_v48  ;;  %v11797_v48 = vld [vmem:[#allocation3 + $0xc9] sm:$0xff] }
 0x3a2   : > { %9340 = vmatprep.mubr.msk.f32.mxu1 %vm3882_vm3, %v11781_v45  ;;  %12581 = vst [vmem:[#allocation29_spill] sm:$0xff] %v11797_v48  ;;  %v11801_v45 = vld [vmem:[#allocation3 + $0xd1] sm:$0xff] }
 0x3a3   : > { %12582 = vst [vmem:[#allocation31_spill] sm:$0xff] %v11801_v45 }
 0x3a5   : > { %9341 = vmatmul.mubr.msk.f32.gmra.mrb[8].mxu1 %vm3882_vm3, %v11785_v34  ;;  %v11805_v34 = vld [vmem:[#allocation3 + $0xe9] sm:$0xff] }
 0x3a6   : > { %9343 = vmatprep.mubr.msk.f32.mxu1 %vm3882_vm3, %v11789_v46  ;;  %12583 = vst [vmem:[#allocation12_spill] sm:$0xff] %v11805_v34  ;;  %v11809_v46 = vld [vmem:[#allocation3 + $0xf1] sm:$0xff] }
 0x3a7   : > { %12584 = vst [vmem:[#allocation13_spill] sm:$0xff] %v11809_v46 }
 0x3a9   : > { %9344 = vmatmul.mubr.msk.f32.gmra.mrb[10].mxu1 %vm3882_vm3, %v11793_v63  ;;  %v11813_v63 = vld [vmem:[#allocation3 + $0x109] sm:$0xff] }
 0x3aa   : > { %9346 = vmatprep.mubr.msk.f32.mxu1 %vm3882_vm3, %v11797_v48  ;;  %12585 = vst [vmem:[#allocation14_spill] sm:$0xff] %v11813_v63  ;;  %v11817_v48 = vld [vmem:[#allocation3 + $0x111] sm:$0xff] }
 0x3ab   : > { %12586 = vst [vmem:[#allocation15_spill] sm:$0xff] %v11817_v48 }
 0x3ad   : > { %9347 = vmatmul.mubr.msk.f32.gmra.mrb[12].mxu1 %vm3882_vm3, %v11801_v45  ;;  %v11821_v45 = vld [vmem:[#allocation3 + $0x129] sm:$0xff] }
 0x3ae   : > { %9349 = vmatprep.mubr.msk.f32.mxu1 %vm3882_vm3, %v11805_v34  ;;  %12587 = vst [vmem:[#allocation16_spill] sm:$0xff] %v11821_v45  ;;  %v11825_v34 = vld [vmem:[#allocation3 + $0x131] sm:$0xff] }
 0x3af   : > { %12588 = vst [vmem:[#allocation17_spill] sm:$0xff] %v11825_v34 }
 0x3b1   : > { %9350 = vmatmul.mubr.msk.f32.gmra.mrb[14].mxu1 %vm3882_vm3, %v11809_v46  ;;  %v11829_v46 = vld [vmem:[#allocation3 + $0x149] sm:$0xff] }
 0x3b2   : > { %9352 = vmatprep.mubr.msk.f32.mxu1 %vm3882_vm3, %v11813_v63  ;;  %12589 = vst [vmem:[#allocation18_spill] sm:$0xff] %v11829_v46  ;;  %v11833_v63 = vld [vmem:[#allocation3 + $0x151] sm:$0xff] }
 0x3b3   : > { %12590 = vst [vmem:[#allocation19_spill] sm:$0xff] %v11833_v63 }
 0x3b5   : > { %9353 = vmatmul.mubr.msk.f32.gmra.mrb[16].mxu1 %vm3882_vm3, %v11817_v48  ;;  %v11837_v48 = vld [vmem:[#allocation3 + $0x169] sm:$0xff] }
 0x3b6   : > { %9355 = vmatprep.mubr.msk.f32.mxu1 %vm3882_vm3, %v11821_v45  ;;  %12591 = vst [vmem:[#allocation20_spill] sm:$0xff] %v11837_v48  ;;  %v11841_v45 = vld [vmem:[#allocation3 + $0x171] sm:$0xff] }
 0x3b7   : > { %12592 = vst [vmem:[#allocation21_spill] sm:$0xff] %v11841_v45 }
 0x3b9   : > { %9356 = vmatmul.mubr.msk.f32.gmra.mrb[18].mxu1 %vm3882_vm3, %v11825_v34  ;;  %v11845_v34 = vld [vmem:[#allocation3 + $0x189] sm:$0xff] }
 0x3ba   : > { %9358 = vmatprep.mubr.msk.f32.mxu1 %vm3882_vm3, %v11829_v46  ;;  %12593 = vst [vmem:[#allocation23_spill] sm:$0xff] %v11845_v34  ;;  %v11849_v46 = vld [vmem:[#allocation3 + $0x191] sm:$0xff] }
 0x3bb   : > { %12594 = vst [vmem:[#allocation25_spill] sm:$0xff] %v11849_v46 }
 0x3bd   : > { %9359 = vmatmul.mubr.msk.f32.gmra.mrb[20].mxu1 %vm3882_vm3, %v11833_v63  ;;  %v11853_v63 = vld [vmem:[#allocation3 + $0x1a9] sm:$0xff] }
 0x3be   : > { %9361 = vmatprep.mubr.msk.f32.mxu1 %vm3882_vm3, %v11837_v48  ;;  %12595 = vst [vmem:[#allocation28_spill] sm:$0xff] %v11853_v63  ;;  %v11857_v48 = vld [vmem:[#allocation3 + $0x1b1] sm:$0xff] }
 0x3c1   : > { %9362 = vmatmul.mubr.msk.f32.gmra.mrb[22].mxu1 %vm3882_vm3, %v11841_v45  ;;  %v11861_v45 = vld [vmem:[#allocation3 + $0x1c9] sm:$0xff] }
 0x3c2   : > { %9364 = vmatprep.mubr.msk.f32.mxu1 %vm3882_vm3, %v11845_v34  ;;  %12596 = vst [vmem:[#allocation30_spill] sm:$0xff] %v11861_v45  ;;  %v11865_v34 = vld [vmem:[#allocation3 + $0x1d1] sm:$0xff] }
 0x3c5   : > { %9365 = vmatmul.mubr.msk.f32.gmra.mrb[24].mxu1 %vm3882_vm3, %v11849_v46  ;;  %v11869_v46 = vld [vmem:[#allocation3 + $0x1e9] sm:$0xff] }
 0x3c6   : > { %9367 = vmatprep.mubr.msk.f32.mxu1 %vm3882_vm3, %v11853_v63  ;;  %12597 = vst [vmem:[#allocation32_spill] sm:$0xff] %v11869_v46  ;;  %v11873_v63 = vld [vmem:[#allocation3 + $0x1f1] sm:$0xff] }
 0x3c9   : > { %9368 = vmatmul.mubr.msk.f32.gmra.mrb[26].mxu1 %vm3882_vm3, %v11857_v48 }
 0x3ca   : > { %9370 = vmatprep.mubr.msk.f32.mxu1 %vm3882_vm3, %v11861_v45  ;;  %v8045_v45 = vld [vmem:[%s12380_s3 + $0x28] sm:$0xff] }
 0x3cd   : > { %9371 = vmatmul.mubr.msk.f32.gmra.mrb[28].mxu1 %vm3882_vm3, %v11865_v34 }
 0x3ce   : > { %9373 = vmatprep.mubr.msk.f32.mxu1 %vm3882_vm3, %v11869_v46 }
 0x3d1   : > { %9374 = vmatmul.mubr.msk.f32.gmra.mrb[30].mxu1 %vm3882_vm3, %v11873_v63 }
 0x3d2   : > { %9378 = vmatprep.mubr.msk.f32.mxu1 %vm3882_vm3, %v11626_v7  ;;  %v11941_v7 = vld [vmem:[#allocation3 + $0x207] sm:$0xff] }
 0x3d5   : > { %9379 = vmatmul.mubr.msk.f32.vlgmr.msra.gmra.mrb[0].mxu1 %vm3882_vm3, %v11632_v43  ;;  %v11945_v43 = vld [vmem:[#allocation3 + $0x20f] sm:$0xff] }
 0x3d6   : > { %9427 = vmatpush3.msra.mxu1 %v11752_v50  ;;  %9381 = vmatprep.mubr.msk.f32.mxu1 %vm3882_vm3, %v11636_v10  ;;  %v8078_v50 = vld [vmem:[%s12380_s3 + $0x30] sm:$0xff] }
 0x3d7   : > { %9476 = vmatprep.subr.mxu1 %v8045_v45 }
 0x3d9   : > { %9382 = vmatmul.mubr.msk.f32.gmra.mrb[2].mxu1 %vm3882_vm3, %v11640_v9 }
 0x3da   : > { %9384 = vmatprep.mubr.msk.f32.mxu1 %vm3882_vm3, %v11644_v42 }
 0x3dd   : > { %9385 = vmatmul.mubr.msk.f32.gmra.mrb[4].mxu1 %vm3882_vm3, %v11648_v13 }
 0x3de   : > { %9387 = vmatprep.mubr.msk.f32.mxu1 %vm3882_vm3, %v11652_v15 }
 0x3e1   : > { %9388 = vmatmul.mubr.msk.f32.gmra.mrb[6].mxu1 %vm3882_vm3, %v11656_v17 }
 0x3e2   : > { %9390 = vmatprep.mubr.msk.f32.mxu1 %vm3882_vm3, %v11660_v18 }
 0x3e5   : > { %9391 = vmatmul.mubr.msk.f32.gmra.mrb[8].mxu1 %vm3882_vm3, %v11664_v19 }
 0x3e6   : > { %9393 = vmatprep.mubr.msk.f32.mxu1 %vm3882_vm3, %v11668_v21 }
 0x3e9   : > { %9394 = vmatmul.mubr.msk.f32.gmra.mrb[10].mxu1 %vm3882_vm3, %v11672_v53 }
 0x3ea   : > { %9396 = vmatprep.mubr.msk.f32.mxu1 %vm3882_vm3, %v11676_v54 }
 0x3ed   : > { %9397 = vmatmul.mubr.msk.f32.gmra.mrb[12].mxu1 %vm3882_vm3, %v11680_v55 }
 0x3ee   : > { %9399 = vmatprep.mubr.msk.f32.mxu1 %vm3882_vm3, %v11684_v56 }
 0x3f1   : > { %9400 = vmatmul.mubr.msk.f32.gmra.mrb[14].mxu1 %vm3882_vm3, %v11688_v57 }
 0x3f2   : > { %9402 = vmatprep.mubr.msk.f32.mxu1 %vm3882_vm3, %v11692_v61 }
 0x3f5   : > { %9403 = vmatmul.mubr.msk.f32.gmra.mrb[16].mxu1 %vm3882_vm3, %v11696_v23 }
 0x3f6   : > { %9405 = vmatprep.mubr.msk.f32.mxu1 %vm3882_vm3, %v11700_v24 }
 0x3f9   : > { %9406 = vmatmul.mubr.msk.f32.gmra.mrb[18].mxu1 %vm3882_vm3, %v11704_v25 }
 0x3fa   : > { %9408 = vmatprep.mubr.msk.f32.mxu1 %vm3882_vm3, %v11708_v27 }
 0x3fd   : > { %9409 = vmatmul.mubr.msk.f32.gmra.mrb[20].mxu1 %vm3882_vm3, %v11712_v0 }
 0x3fe   : > { %9411 = vmatprep.mubr.msk.f32.mxu1 %vm3882_vm3, %v11716_v32 }
 0x401   : > { %9412 = vmatmul.mubr.msk.f32.gmra.mrb[22].mxu1 %vm3882_vm3, %v11720_v38 }
 0x402   : > { %9414 = vmatprep.mubr.msk.f32.mxu1 %vm3882_vm3, %v11724_v4 }
 0x405   : > { %9415 = vmatmul.mubr.msk.f32.gmra.mrb[24].mxu1 %vm3882_vm3, %v11728_v41 }
 0x406   : > { %9417 = vmatprep.mubr.msk.f32.mxu1 %vm3882_vm3, %v11732_v6 }
 0x409   : > { %9418 = vmatmul.mubr.msk.f32.gmra.mrb[26].mxu1 %vm3882_vm3, %v11736_v2 }
 0x40a   : > { %9420 = vmatprep.mubr.msk.f32.mxu1 %vm3882_vm3, %v11740_v28 }
 0x40d   : > { %9421 = vmatmul.mubr.msk.f32.gmra.mrb[28].mxu1 %vm3882_vm3, %v11744_v36 }
 0x40e   : > { %9423 = vmatprep.mubr.msk.f32.mxu1 %vm3882_vm3, %v11941_v7 }
 0x411   : > { %9424 = vmatmul.mubr.msk.f32.gmra.mrb[30].mxu1 %vm3882_vm3, %v11945_v43 }
 0x412   : > { %9428 = vmatprep.mubr.msk.f32.mxu1 %vm3882_vm3, %v11447_v35  ;;  %v12598_v35 = vld [vmem:[#allocation4_spill] sm:$0xff] }
 0x415   : > { %9429 = vmatmul.mubr.msk.f32.vlgmr.msra.gmra.mrb[0].mxu1 %vm3882_vm3, %v11453_v8  ;;  %v12599_v8 = vld [vmem:[#allocation5_spill] sm:$0xff] }
 0x416   : > { %9477 = vmatpush3.msra.mxu1 %v8045_v45  ;;  %9431 = vmatprep.mubr.msk.f32.mxu1 %vm3882_vm3, %v11459_v14  ;;  %v12012_v14 = vld [vmem:[#allocation3 + $0x208] sm:$0xff]  ;;  %v12611_v45 = vld [vmem:[#allocation31_spill] sm:$0xff] }
 0x417   : > { %9526 = vmatprep.subr.mxu1 %v8078_v50 }
 0x419   : > { %9432 = vmatmul.mubr.msk.f32.gmra.mrb[2].mxu1 %vm3882_vm3, %v11465_v16  ;;  %v12016_v16 = vld [vmem:[#allocation3 + $0x210] sm:$0xff] }
 0x41a   : > { %9434 = vmatprep.mubr.msk.f32.mxu1 %vm3882_vm3, %v11471_v22  ;;  %v12600_v22 = vld [vmem:[#allocation6_spill] sm:$0xff] }
 0x41d   : > { %9435 = vmatmul.mubr.msk.f32.gmra.mrb[4].mxu1 %vm3882_vm3, %v11477_v52  ;;  %v8111_v52 = vld [vmem:[%s12380_s3 + $0x38] sm:$0xff] }
 0x41e   : > { %9437 = vmatprep.mubr.msk.f32.mxu1 %vm3882_vm3, %v11483_v58  ;;  %v12601_v58 = vld [vmem:[#allocation7_spill] sm:$0xff] }
 0x421   : > { %9438 = vmatmul.mubr.msk.f32.gmra.mrb[6].mxu1 %vm3882_vm3, %v11489_v60  ;;  %v12602_v60 = vld [vmem:[#allocation8_spill] sm:$0xff] }
 0x422   : > { %9440 = vmatprep.mubr.msk.f32.mxu1 %vm3882_vm3, %v11495_v26  ;;  %v12603_v26 = vld [vmem:[#allocation9_spill] sm:$0xff] }
 0x425   : > { %9441 = vmatmul.mubr.msk.f32.gmra.mrb[8].mxu1 %vm3882_vm3, %v11501_v1  ;;  %v12604_v1 = vld [vmem:[#allocation10_spill] sm:$0xff] }
 0x426   : > { %9443 = vmatprep.mubr.msk.f32.mxu1 %vm3882_vm3, %v11507_v39  ;;  %v12605_v39 = vld [vmem:[#allocation11_spill] sm:$0xff] }
 0x429   : > { %9444 = vmatmul.mubr.msk.f32.gmra.mrb[10].mxu1 %vm3882_vm3, %v11513_v40  ;;  %v12606_v40 = vld [vmem:[#allocation22_spill] sm:$0xff] }
 0x42a   : > { %9446 = vmatprep.mubr.msk.f32.mxu1 %vm3882_vm3, %v11519_v29  ;;  %v12607_v29 = vld [vmem:[#allocation24_spill] sm:$0xff] }
 0x42d   : > { %9447 = vmatmul.mubr.msk.f32.gmra.mrb[12].mxu1 %vm3882_vm3, %v11525_v33  ;;  %v12608_v33 = vld [vmem:[#allocation26_spill] sm:$0xff] }
 0x42e   : > { %9449 = vmatprep.mubr.msk.f32.mxu1 %vm3882_vm3, %v11531_v47  ;;  %v12609_v47 = vld [vmem:[#allocation27_spill] sm:$0xff] }
 0x431   : > { %9450 = vmatmul.mubr.msk.f32.gmra.mrb[14].mxu1 %vm3882_vm3, %v11537_v49  ;;  %v12610_v49 = vld [vmem:[#allocation29_spill] sm:$0xff] }
 0x432   : > { %9452 = vmatprep.mubr.msk.f32.mxu1 %vm3882_vm3, %v11543_v11 }
 0x435   : > { %9453 = vmatmul.mubr.msk.f32.gmra.mrb[16].mxu1 %vm3882_vm3, %v11549_v12 }
 0x436   : > { %9455 = vmatprep.mubr.msk.f32.mxu1 %vm3882_vm3, %v11555_v20 }
 0x439   : > { %9456 = vmatmul.mubr.msk.f32.gmra.mrb[18].mxu1 %vm3882_vm3, %v11561_v51 }
 0x43a   : > { %9458 = vmatprep.mubr.msk.f32.mxu1 %vm3882_vm3, %v11567_v59 }
 0x43d   : > { %9459 = vmatmul.mubr.msk.f32.gmra.mrb[20].mxu1 %vm3882_vm3, %v11573_v62 }
 0x43e   : > { %9461 = vmatprep.mubr.msk.f32.mxu1 %vm3882_vm3, %v11579_v31 }
 0x441   : > { %9462 = vmatmul.mubr.msk.f32.gmra.mrb[22].mxu1 %vm3882_vm3, %v11585_v37 }
 0x442   : > { %9464 = vmatprep.mubr.msk.f32.mxu1 %vm3882_vm3, %v11591_v5 }
 0x445   : > { %9465 = vmatmul.mubr.msk.f32.gmra.mrb[24].mxu1 %vm3882_vm3, %v11597_v30 }
 0x446   : > { %9467 = vmatprep.mubr.msk.f32.mxu1 %vm3882_vm3, %v11602_v44 }
 0x449   : > { %9468 = vmatmul.mubr.msk.f32.gmra.mrb[26].mxu1 %vm3882_vm3, %v11607_v3 }
 0x44a   : > { %9470 = vmatprep.mubr.msk.f32.mxu1 %vm3882_vm3, %v12598_v35 }
 0x44d   : > { %9471 = vmatmul.mubr.msk.f32.gmra.mrb[28].mxu1 %vm3882_vm3, %v12599_v8 }
 0x44e   : > { %9473 = vmatprep.mubr.msk.f32.mxu1 %vm3882_vm3, %v12012_v14 }
 0x451   : > { %9474 = vmatmul.mubr.msk.f32.gmra.mrb[30].mxu1 %vm3882_vm3, %v12016_v16 }
 0x452   : > { %9478 = vmatprep.mubr.msk.f32.mxu1 %vm3882_vm3, %v12600_v22  ;;  %v12613_v22 = vld [vmem:[#allocation13_spill] sm:$0xff] }
 0x455   : > { %9479 = vmatmul.mubr.msk.f32.vlgmr.msra.gmra.mrb[0].mxu1 %vm3882_vm3, %v12601_v58  ;;  %v12614_v58 = vld [vmem:[#allocation14_spill] sm:$0xff] }
 0x456   : > { %9527 = vmatpush3.msra.mxu1 %v8078_v50  ;;  %9481 = vmatprep.mubr.msk.f32.mxu1 %vm3882_vm3, %v12602_v60  ;;  %v12612_v50 = vld [vmem:[#allocation12_spill] sm:$0xff] }
 0x457   : > { %9576 = vmatprep.subr.mxu1 %v8111_v52 }
 0x459   : > { %9482 = vmatmul.mubr.msk.f32.gmra.mrb[2].mxu1 %vm3882_vm3, %v12603_v26 }
 0x45a   : > { %9484 = vmatprep.mubr.msk.f32.mxu1 %vm3882_vm3, %v12604_v1 }
 0x45d   : > { %9485 = vmatmul.mubr.msk.f32.gmra.mrb[4].mxu1 %vm3882_vm3, %v12605_v39 }
 0x45e   : > { %9487 = vmatprep.mubr.msk.f32.mxu1 %vm3882_vm3, %v12606_v40 }
 0x461   : > { %9488 = vmatmul.mubr.msk.f32.gmra.mrb[6].mxu1 %vm3882_vm3, %v12607_v29  ;;  %v12615_v29 = vld [vmem:[#allocation15_spill] sm:$0xff] }
 0x462   : > { %9490 = vmatprep.mubr.msk.f32.mxu1 %vm3882_vm3, %v12608_v33  ;;  %v12616_v33 = vld [vmem:[#allocation16_spill] sm:$0xff] }
 0x465   : > { %9491 = vmatmul.mubr.msk.f32.gmra.mrb[8].mxu1 %vm3882_vm3, %v12609_v47  ;;  %v12617_v47 = vld [vmem:[#allocation17_spill] sm:$0xff] }
 0x466   : > { %9493 = vmatprep.mubr.msk.f32.mxu1 %vm3882_vm3, %v12610_v49  ;;  %v12618_v49 = vld [vmem:[#allocation18_spill] sm:$0xff] }
 0x469   : > { %9494 = vmatmul.mubr.msk.f32.gmra.mrb[10].mxu1 %vm3882_vm3, %v12611_v45  ;;  %v12619_v45 = vld [vmem:[#allocation19_spill] sm:$0xff] }
 0x46a   : > { %9496 = vmatprep.mubr.msk.f32.mxu1 %vm3882_vm3, %v12612_v50  ;;  %v12620_v50 = vld [vmem:[#allocation20_spill] sm:$0xff] }
 0x46d   : > { %9497 = vmatmul.mubr.msk.f32.gmra.mrb[12].mxu1 %vm3882_vm3, %v12613_v22  ;;  %v12621_v22 = vld [vmem:[#allocation21_spill] sm:$0xff] }
 0x46e   : > { %9499 = vmatprep.mubr.msk.f32.mxu1 %vm3882_vm3, %v12614_v58  ;;  %v12622_v58 = vld [vmem:[#allocation23_spill] sm:$0xff] }
 0x471   : > { %9500 = vmatmul.mubr.msk.f32.gmra.mrb[14].mxu1 %vm3882_vm3, %v12615_v29  ;;  %v12623_v29 = vld [vmem:[#allocation25_spill] sm:$0xff] }
 0x472   : > { %9502 = vmatprep.mubr.msk.f32.mxu1 %vm3882_vm3, %v12616_v33  ;;  %v12624_v33 = vld [vmem:[#allocation28_spill] sm:$0xff] }
 0x475   : > { %9503 = vmatmul.mubr.msk.f32.gmra.mrb[16].mxu1 %vm3882_vm3, %v12617_v47 }
 0x476   : > { %9505 = vmatprep.mubr.msk.f32.mxu1 %vm3882_vm3, %v12618_v49  ;;  %v12625_v49 = vld [vmem:[#allocation30_spill] sm:$0xff] }
 0x479   : > { %9506 = vmatmul.mubr.msk.f32.gmra.mrb[18].mxu1 %vm3882_vm3, %v12619_v45 }
 0x47a   : > { %9508 = vmatprep.mubr.msk.f32.mxu1 %vm3882_vm3, %v12620_v50 }
 0x47d   : > { %9509 = vmatmul.mubr.msk.f32.gmra.mrb[20].mxu1 %vm3882_vm3, %v12621_v22 }
 0x47e   : > { %9511 = vmatprep.mubr.msk.f32.mxu1 %vm3882_vm3, %v12622_v58  ;;  %v12083_v58 = vld [vmem:[#allocation3 + $0x209] sm:$0xff] }
 0x481   : > { %9512 = vmatmul.mubr.msk.f32.gmra.mrb[22].mxu1 %vm3882_vm3, %v12623_v29 }
 0x482   : > { %9514 = vmatprep.mubr.msk.f32.mxu1 %vm3882_vm3, %v12624_v33  ;;  %v12087_v33 = vld [vmem:[#allocation3 + $0x211] sm:$0xff] }
 0x485   : > { %9515 = vmatmul.mubr.msk.f32.gmra.mrb[24].mxu1 %vm3882_vm3, %v11857_v48 }
 0x486   : > { %9517 = vmatprep.mubr.msk.f32.mxu1 %vm3882_vm3, %v12625_v49 }
 0x489   : > { %9518 = vmatmul.mubr.msk.f32.gmra.mrb[26].mxu1 %vm3882_vm3, %v11865_v34 }
 0x48a   : > { %9520 = vmatprep.mubr.msk.f32.mxu1 %vm3882_vm3, %v11869_v46  ;;  %v8144_v46 = vld [vmem:[%s12380_s3 + $0x40] sm:$0xff] }
 0x48d   : > { %9521 = vmatmul.mubr.msk.f32.gmra.mrb[28].mxu1 %vm3882_vm3, %v11873_v63 }
 0x48e   : > { %9523 = vmatprep.mubr.msk.f32.mxu1 %vm3882_vm3, %v12083_v58 }
 0x491   : > { %9524 = vmatmul.mubr.msk.f32.gmra.mrb[30].mxu1 %vm3882_vm3, %v12087_v33 }
 0x492   : > { %9528 = vmatprep.mubr.msk.f32.mxu1 %vm3882_vm3, %v11636_v10  ;;  %v6277_v10 = vld [vmem:[#allocation3 + $0x227] sm:$0xff] }
 0x495   : > { %9529 = vmatmul.mubr.msk.f32.vlgmr.msra.gmra.mrb[0].mxu1 %vm3882_vm3, %v11640_v9  ;;  %v6278_v9 = vld [vmem:[#allocation3 + $0x22f] sm:$0xff] }
 0x496   : > { %9577 = vmatpush3.msra.mxu1 %v8111_v52  ;;  %9531 = vmatprep.mubr.msk.f32.mxu1 %vm3882_vm3, %v11644_v42  ;;  %v6634_v42 = vld [vmem:[#allocation3 + $0x48] sm:$0xff] }
 0x497   : > { %9626 = vmatprep.subr.mxu1 %v8144_v46 }
 0x499   : > { %9532 = vmatmul.mubr.msk.f32.gmra.mrb[2].mxu1 %vm3882_vm3, %v11648_v13  ;;  %v6635_v13 = vld [vmem:[#allocation3 + $0x50] sm:$0xff] }
 0x49a   : > { %9534 = vmatprep.mubr.msk.f32.mxu1 %vm3882_vm3, %v11652_v15  ;;  %v6636_v15 = vld [vmem:[#allocation3 + $0x68] sm:$0xff] }
 0x49d   : > { %9535 = vmatmul.mubr.msk.f32.gmra.mrb[4].mxu1 %vm3882_vm3, %v11656_v17  ;;  %v6637_v17 = vld [vmem:[#allocation3 + $0x70] sm:$0xff] }
 0x49e   : > { %9537 = vmatprep.mubr.msk.f32.mxu1 %vm3882_vm3, %v11660_v18  ;;  %v6638_v18 = vld [vmem:[#allocation3 + $0x88] sm:$0xff] }
 0x4a1   : > { %9538 = vmatmul.mubr.msk.f32.gmra.mrb[6].mxu1 %vm3882_vm3, %v11664_v19  ;;  %v6639_v19 = vld [vmem:[#allocation3 + $0x90] sm:$0xff] }
 0x4a2   : > { %9540 = vmatprep.mubr.msk.f32.mxu1 %vm3882_vm3, %v11668_v21  ;;  %v6640_v21 = vld [vmem:[#allocation3 + $0xa8] sm:$0xff] }
 0x4a5   : > { %9541 = vmatmul.mubr.msk.f32.gmra.mrb[8].mxu1 %vm3882_vm3, %v11672_v53  ;;  %v6641_v53 = vld [vmem:[#allocation3 + $0xb0] sm:$0xff] }
 0x4a6   : > { %9543 = vmatprep.mubr.msk.f32.mxu1 %vm3882_vm3, %v11676_v54  ;;  %v6642_v54 = vld [vmem:[#allocation3 + $0xc8] sm:$0xff] }
 0x4a9   : > { %9544 = vmatmul.mubr.msk.f32.gmra.mrb[10].mxu1 %vm3882_vm3, %v11680_v55  ;;  %v6643_v55 = vld [vmem:[#allocation3 + $0xd0] sm:$0xff] }
 0x4aa   : > { %9546 = vmatprep.mubr.msk.f32.mxu1 %vm3882_vm3, %v11684_v56  ;;  %v6644_v56 = vld [vmem:[#allocation3 + $0xe8] sm:$0xff] }
 0x4ad   : > { %9547 = vmatmul.mubr.msk.f32.gmra.mrb[12].mxu1 %vm3882_vm3, %v11688_v57  ;;  %v6645_v57 = vld [vmem:[#allocation3 + $0xf0] sm:$0xff] }
 0x4ae   : > { %9549 = vmatprep.mubr.msk.f32.mxu1 %vm3882_vm3, %v11692_v61  ;;  %v6646_v61 = vld [vmem:[#allocation3 + $0x108] sm:$0xff] }
 0x4b1   : > { %9550 = vmatmul.mubr.msk.f32.gmra.mrb[14].mxu1 %vm3882_vm3, %v11696_v23  ;;  %v6647_v23 = vld [vmem:[#allocation3 + $0x110] sm:$0xff] }
 0x4b2   : > { %9552 = vmatprep.mubr.msk.f32.mxu1 %vm3882_vm3, %v11700_v24  ;;  %v12636_v24 = vld [vmem:[#allocation18_spill] sm:$0xff] }
 0x4b5   : > { %9553 = vmatmul.mubr.msk.f32.gmra.mrb[16].mxu1 %vm3882_vm3, %v11704_v25  ;;  %v12637_v25 = vld [vmem:[#allocation23_spill] sm:$0xff] }
 0x4b6   : > { %9555 = vmatprep.mubr.msk.f32.mxu1 %vm3882_vm3, %v11708_v27  ;;  %v12638_v27 = vld [vmem:[#allocation28_spill] sm:$0xff] }
 0x4b9   : > { %9556 = vmatmul.mubr.msk.f32.gmra.mrb[18].mxu1 %vm3882_vm3, %v11712_v0  ;;  %v12639_v0 = vld [vmem:[#allocation32_spill] sm:$0xff] }
 0x4ba   : > { %9558 = vmatprep.mubr.msk.f32.mxu1 %vm3882_vm3, %v11716_v32  ;;  %v7051_v32 = vld [vmem:[#allocation3 + $0x229] sm:$0xff] }
 0x4bd   : > { %9559 = vmatmul.mubr.msk.f32.gmra.mrb[20].mxu1 %vm3882_vm3, %v11720_v38  ;;  %v12269_v38 = vld [vmem:[%s12381_s4] ss:$0 sm:$0xff] }
 0x4be   : > { %9561 = vmatprep.mubr.msk.f32.mxu1 %vm3882_vm3, %v11724_v4 }
 0x4c1   : > { %9562 = vmatmul.mubr.msk.f32.gmra.mrb[22].mxu1 %vm3882_vm3, %v11728_v41 }
 0x4c2   : > { %9564 = vmatprep.mubr.msk.f32.mxu1 %vm3882_vm3, %v11732_v6 }
 0x4c5   : > { %9565 = vmatmul.mubr.msk.f32.gmra.mrb[24].mxu1 %vm3882_vm3, %v11736_v2 }
 0x4c6   : > { %9567 = vmatprep.mubr.msk.f32.mxu1 %vm3882_vm3, %v11740_v28 }
 0x4c9   : > { %9568 = vmatmul.mubr.msk.f32.gmra.mrb[26].mxu1 %vm3882_vm3, %v11744_v36 }
 0x4ca   : > { %9570 = vmatprep.mubr.msk.f32.mxu1 %vm3882_vm3, %v11941_v7 }
 0x4cd   : > { %9571 = vmatmul.mubr.msk.f32.gmra.mrb[28].mxu1 %vm3882_vm3, %v11945_v43 }
 0x4ce   : > { %9573 = vmatprep.mubr.msk.f32.mxu1 %vm3882_vm3, %v6277_v10 }
 0x4d1   : > { %9574 = vmatmul.mubr.msk.f32.gmra.mrb[30].mxu1 %vm3882_vm3, %v6278_v9 }
 0x4d2   : > { %9578 = vmatprep.mubr.msk.f32.mxu1 %vm3882_vm3, %v6634_v42 }
 0x4d5   : > { %9579 = vmatmul.mubr.msk.f32.vlgmr.msra.gmra.mrb[0].mxu1 %vm3882_vm3, %v6635_v13 }
 0x4d6   : > { %9627 = vmatpush3.msra.mxu1 %v8144_v46  ;;  %9581 = vmatprep.mubr.msk.f32.mxu1 %vm3882_vm3, %v6636_v15 }
 0x4d9   : > { %9582 = vmatmul.mubr.msk.f32.gmra.mrb[2].mxu1 %vm3882_vm3, %v6637_v17 }
 0x4da   : > { %9584 = vmatprep.mubr.msk.f32.mxu1 %vm3882_vm3, %v6638_v18 }
 0x4dd   : > { %9585 = vmatmul.mubr.msk.f32.gmra.mrb[4].mxu1 %vm3882_vm3, %v6639_v19 }
 0x4de   : > { %9587 = vmatprep.mubr.msk.f32.mxu1 %vm3882_vm3, %v6640_v21 }
 0x4e1   : > { %9588 = vmatmul.mubr.msk.f32.gmra.mrb[6].mxu1 %vm3882_vm3, %v6641_v53 }
 0x4e2   : > { %9590 = vmatprep.mubr.msk.f32.mxu1 %vm3882_vm3, %v6642_v54 }
 0x4e5   : > { %9591 = vmatmul.mubr.msk.f32.gmra.mrb[8].mxu1 %vm3882_vm3, %v6643_v55 }
 0x4e6   : > { %9593 = vmatprep.mubr.msk.f32.mxu1 %vm3882_vm3, %v6644_v56 }
 0x4e9   : > { %9594 = vmatmul.mubr.msk.f32.gmra.mrb[10].mxu1 %vm3882_vm3, %v6645_v57 }
 0x4ea   : > { %9596 = vmatprep.mubr.msk.f32.mxu1 %vm3882_vm3, %v6646_v61 }
 0x4ed   : > { %9597 = vmatmul.mubr.msk.f32.gmra.mrb[12].mxu1 %vm3882_vm3, %v6647_v23 }
 0x4ee   : > { %9599 = vmatprep.mubr.msk.f32.mxu1 %vm3882_vm3, %v11543_v11  ;;  %v6664_v11 = vld [vmem:[#allocation3 + $0x228] sm:$0xff] }
 0x4f1   : > { %9600 = vmatmul.mubr.msk.f32.gmra.mrb[14].mxu1 %vm3882_vm3, %v11549_v12  ;;  %v6665_v12 = vld [vmem:[#allocation3 + $0x230] sm:$0xff] }
 0x4f2   : > { %9602 = vmatprep.mubr.msk.f32.mxu1 %vm3882_vm3, %v11555_v20  ;;  %v12626_v20 = vld [vmem:[#allocation24_spill] sm:$0xff] }
 0x4f5   : > { %9603 = vmatmul.mubr.msk.f32.gmra.mrb[16].mxu1 %vm3882_vm3, %v11561_v51  ;;  %v12627_v51 = vld [vmem:[#allocation26_spill] sm:$0xff] }
 0x4f6   : > { %9605 = vmatprep.mubr.msk.f32.mxu1 %vm3882_vm3, %v11567_v59  ;;  %v12628_v59 = vld [vmem:[#allocation27_spill] sm:$0xff] }
 0x4f9   : > { %9606 = vmatmul.mubr.msk.f32.gmra.mrb[18].mxu1 %vm3882_vm3, %v11573_v62  ;;  %v12629_v62 = vld [vmem:[#allocation29_spill] sm:$0xff] }
 0x4fa   : > { %9608 = vmatprep.mubr.msk.f32.mxu1 %vm3882_vm3, %v11579_v31  ;;  %v12630_v31 = vld [vmem:[#allocation31_spill] sm:$0xff] }
 0x4fd   : > { %9609 = vmatmul.mubr.msk.f32.gmra.mrb[20].mxu1 %vm3882_vm3, %v11585_v37  ;;  %v12631_v37 = vld [vmem:[#allocation12_spill] sm:$0xff] }
 0x4fe   : > { %9611 = vmatprep.mubr.msk.f32.mxu1 %vm3882_vm3, %v11591_v5  ;;  %v12632_v5 = vld [vmem:[#allocation13_spill] sm:$0xff] }
 0x501   : > { %9612 = vmatmul.mubr.msk.f32.gmra.mrb[22].mxu1 %vm3882_vm3, %v11597_v30  ;;  %v12633_v30 = vld [vmem:[#allocation14_spill] sm:$0xff] }
 0x502   : > { %9614 = vmatprep.mubr.msk.f32.mxu1 %vm3882_vm3, %v11602_v44  ;;  %v12634_v44 = vld [vmem:[#allocation15_spill] sm:$0xff] }
 0x505   : > { %9615 = vmatmul.mubr.msk.f32.gmra.mrb[24].mxu1 %vm3882_vm3, %v11607_v3  ;;  %v12635_v3 = vld [vmem:[#allocation16_spill] sm:$0xff] }
 0x506   : > { %9617 = vmatprep.mubr.msk.f32.mxu1 %vm3882_vm3, %v12598_v35 }
 0x509   : > { %9618 = vmatmul.mubr.msk.f32.gmra.mrb[26].mxu1 %vm3882_vm3, %v12599_v8 }
 0x50a   : > { %9620 = vmatprep.mubr.msk.f32.mxu1 %vm3882_vm3, %v12012_v14 }
 0x50d   : > { %9621 = vmatmul.mubr.msk.f32.gmra.mrb[28].mxu1 %vm3882_vm3, %v12016_v16 }
 0x50e   : > { %9623 = vmatprep.mubr.msk.f32.mxu1 %vm3882_vm3, %v6664_v11 }
 0x511   : > { %9624 = vmatmul.mubr.msk.f32.gmra.mrb[30].mxu1 %vm3882_vm3, %v6665_v12 }
 0x512   : > { %9628 = vmatprep.mubr.msk.f32.mxu1 %vm3882_vm3, %v12602_v60 }
 0x515   : > { %9629 = vmatmul.mubr.msk.f32.vlgmr.msra.gmra.mrb[0].mxu1 %vm3882_vm3, %v12603_v26 }
 0x516   : > { %9631 = vmatprep.mubr.msk.f32.mxu1 %vm3882_vm3, %v12604_v1 }
 0x519   : > { %9632 = vmatmul.mubr.msk.f32.gmra.mrb[2].mxu1 %vm3882_vm3, %v12605_v39 }
 0x51a   : > { %9634 = vmatprep.mubr.msk.f32.mxu1 %vm3882_vm3, %v12606_v40 }
 0x51d   : > { %9635 = vmatmul.mubr.msk.f32.gmra.mrb[4].mxu1 %vm3882_vm3, %v12626_v20 }
 0x51e   : > { %9637 = vmatprep.mubr.msk.f32.mxu1 %vm3882_vm3, %v12627_v51 }
 0x521   : > { %9638 = vmatmul.mubr.msk.f32.gmra.mrb[6].mxu1 %vm3882_vm3, %v12628_v59 }
 0x522   : > { %9640 = vmatprep.mubr.msk.f32.mxu1 %vm3882_vm3, %v12629_v62 }
 0x525   : > { %9641 = vmatmul.mubr.msk.f32.gmra.mrb[8].mxu1 %vm3882_vm3, %v12630_v31 }
 0x526   : > { %9643 = vmatprep.mubr.msk.f32.mxu1 %vm3882_vm3, %v12631_v37 }
 0x529   : > { %9644 = vmatmul.mubr.msk.f32.gmra.mrb[10].mxu1 %vm3882_vm3, %v12632_v5 }
 0x52a   : > { %9646 = vmatprep.mubr.msk.f32.mxu1 %vm3882_vm3, %v12633_v30 }
 0x52d   : > { %9647 = vmatmul.mubr.msk.f32.gmra.mrb[12].mxu1 %vm3882_vm3, %v12634_v44 }
 0x52e   : > { %9649 = vmatprep.mubr.msk.f32.mxu1 %vm3882_vm3, %v12635_v3 }
 0x531   : > { %9650 = vmatmul.mubr.msk.f32.gmra.mrb[14].mxu1 %vm3882_vm3, %v12617_v47 }
 0x532   : > { %9652 = vmatprep.mubr.msk.f32.mxu1 %vm3882_vm3, %v12636_v24 }
 0x535   : > { %9653 = vmatmul.mubr.msk.f32.gmra.mrb[16].mxu1 %vm3882_vm3, %v12619_v45 }
 0x536   : > { %9655 = vmatprep.mubr.msk.f32.mxu1 %vm3882_vm3, %v12620_v50 }
 0x539   : > { %9656 = vmatmul.mubr.msk.f32.gmra.mrb[18].mxu1 %vm3882_vm3, %v12621_v22 }
 0x53a   : > { %9658 = vmatprep.mubr.msk.f32.mxu1 %vm3882_vm3, %v12637_v25 }
 0x53d   : > { %9659 = vmatmul.mubr.msk.f32.gmra.mrb[20].mxu1 %vm3882_vm3, %v12623_v29 }
 0x53e   : > { %9661 = vmatprep.mubr.msk.f32.mxu1 %vm3882_vm3, %v12638_v27 }
 0x541   : > { %9662 = vmatmul.mubr.msk.f32.gmra.mrb[22].mxu1 %vm3882_vm3, %v11857_v48  ;;  %v7052_v48 = vld [vmem:[#allocation3 + $0x231] sm:$0xff] }
 0x542   : > { %9664 = vmatprep.mubr.msk.f32.mxu1 %vm3882_vm3, %v12625_v49 }
 0x545   : > { %9665 = vmatmul.mubr.msk.f32.gmra.mrb[24].mxu1 %vm3882_vm3, %v11865_v34 }
 0x546   : > { %9667 = vmatprep.mubr.msk.f32.mxu1 %vm3882_vm3, %v12639_v0 }
 0x549   : > { %9668 = vmatmul.mubr.msk.f32.gmra.mrb[26].mxu1 %vm3882_vm3, %v11873_v63 }
 0x54a   : > { %9670 = vmatprep.mubr.msk.f32.mxu1 %vm3882_vm3, %v12083_v58 }
 0x54d   : > { %9671 = vmatmul.mubr.msk.f32.gmra.mrb[28].mxu1 %vm3882_vm3, %v12087_v33 }
 0x54e   : > { %9673 = vmatprep.mubr.msk.f32.mxu1 %vm3882_vm3, %v7051_v32 }
 0x551   : > { %9674 = vmatmul.mubr.msk.f32.gmra.mrb[30].mxu1 %vm3882_vm3, %v7052_v48 }
 0x5e8   : > { %v9630_v4 = vpop.f32.mrb[0].mxu1 }
 0x5e9   : > { %v7416_v41 = vadd.f32 %v9630_v4, %v12269_v38  ;;  %v7217_v6 = vpop.f32.mrb[1].mxu1 }
 0x5ea   : > { %v7415_v2 = vadd.f32 %v12269_v38, %v7217_v6 }
 0x5eb   : > { %v7448_v28 = vmax.f32 %v7416_v41, 0.0 }
 0x5ec   : > { %v7447_v36 = vmax.f32 %v7415_v2, 0.0  ;;  %v9633_v34 = vpop.f32.mrb[2].mxu1 }
 0x5ed   : > { %7480 = vst.msk [vmem:[%s12277_s22 + $0x8] sm:$0xff] %vm3882_vm3, %v7448_v28  ;;  %v7418_v46 = vadd.f32 %v9633_v34, %v12269_v38  ;;  %v7227_v63 = vpop.f32.mrb[3].mxu1 }
 0x5ee   : > { %7479 = vst.msk [vmem:[%s12277_s22] sm:$0xff] %vm3882_vm3, %v7447_v36  ;;  %v7417_v7 = vadd.f32 %v12269_v38, %v7227_v63 }
 0x5ef   : > { %v7450_v43 = vmax.f32 %v7418_v46, 0.0 }
 0x5f0   : > { %v7449_v35 = vmax.f32 %v7417_v7, 0.0  ;;  %v9636_v8 = vpop.f32.mrb[4].mxu1 }
 0x5f1   : > { %7482 = vst.msk [vmem:[%s12277_s22 + $0x18] sm:$0xff] %vm3882_vm3, %v7450_v43  ;;  %v7420_v14 = vadd.f32 %v9636_v8, %v12269_v38  ;;  %v7237_v16 = vpop.f32.mrb[5].mxu1 }
 0x5f2   : > { %7481 = vst.msk [vmem:[%s12277_s22 + $0x10] sm:$0xff] %vm3882_vm3, %v7449_v35  ;;  %v7419_v52 = vadd.f32 %v12269_v38, %v7237_v16 }
 0x5f3   : > { %v7452_v60 = vmax.f32 %v7420_v14, 0.0 }
 0x5f4   : > { %v7451_v26 = vmax.f32 %v7419_v52, 0.0  ;;  %v9639_v1 = vpop.f32.mrb[6].mxu1 }
 0x5f5   : > { %7484 = vst.msk [vmem:[%s12277_s22 + $0x28] sm:$0xff] %vm3882_vm3, %v7452_v60  ;;  %v7422_v39 = vadd.f32 %v9639_v1, %v12269_v38  ;;  %v7247_v40 = vpop.f32.mrb[7].mxu1 }
 0x5f6   : > { %7483 = vst.msk [vmem:[%s12277_s22 + $0x20] sm:$0xff] %vm3882_vm3, %v7451_v26  ;;  %v7421_v29 = vadd.f32 %v12269_v38, %v7247_v40 }
 0x5f7   : > { %v7454_v33 = vmax.f32 %v7422_v39, 0.0 }
 0x5f8   : > { %v7453_v47 = vmax.f32 %v7421_v29, 0.0  ;;  %v9642_v49 = vpop.f32.mrb[8].mxu1 }
 0x5f9   : > { %7486 = vst.msk [vmem:[%s12277_s22 + $0x38] sm:$0xff] %vm3882_vm3, %v7454_v33  ;;  %v7424_v45 = vadd.f32 %v9642_v49, %v12269_v38  ;;  %v7257_v50 = vpop.f32.mrb[9].mxu1 }
 0x5fa   : > { %7485 = vst.msk [vmem:[%s12277_s22 + $0x30] sm:$0xff] %vm3882_vm3, %v7453_v47  ;;  %v7423_v22 = vadd.f32 %v12269_v38, %v7257_v50 }
 0x5fb   : > { %v7456_v58 = vmax.f32 %v7424_v45, 0.0 }
 0x5fc   : > { %v7455_v10 = vmax.f32 %v7423_v22, 0.0  ;;  %v9645_v9 = vpop.f32.mrb[10].mxu1 }
 0x5fd   : > { %7488 = vst.msk [vmem:[%s12277_s22 + $0x48] sm:$0xff] %vm3882_vm3, %v7456_v58  ;;  %v7426_v42 = vadd.f32 %v9645_v9, %v12269_v38  ;;  %v7267_v13 = vpop.f32.mrb[11].mxu1 }
 0x5fe   : > { %7487 = vst.msk [vmem:[%s12277_s22 + $0x40] sm:$0xff] %vm3882_vm3, %v7455_v10  ;;  %v7425_v15 = vadd.f32 %v12269_v38, %v7267_v13 }
 0x5ff   : > { %v7458_v17 = vmax.f32 %v7426_v42, 0.0 }
 0x600   : > { %v7457_v18 = vmax.f32 %v7425_v15, 0.0  ;;  %v9648_v19 = vpop.f32.mrb[12].mxu1 }
 0x601   : > { %7490 = vst.msk [vmem:[%s12277_s22 + $0x58] sm:$0xff] %vm3882_vm3, %v7458_v17  ;;  %v7428_v21 = vadd.f32 %v9648_v19, %v12269_v38  ;;  %v7277_v53 = vpop.f32.mrb[13].mxu1 }
 0x602   : > { %7489 = vst.msk [vmem:[%s12277_s22 + $0x50] sm:$0xff] %vm3882_vm3, %v7457_v18  ;;  %v7427_v54 = vadd.f32 %v12269_v38, %v7277_v53 }
 0x603   : > { %v7460_v55 = vmax.f32 %v7428_v21, 0.0 }
 0x604   : > { %v7459_v56 = vmax.f32 %v7427_v54, 0.0  ;;  %v9651_v57 = vpop.f32.mrb[14].mxu1 }
 0x605   : > { %7492 = vst.msk [vmem:[%s12277_s22 + $0x68] sm:$0xff] %vm3882_vm3, %v7460_v55  ;;  %v7430_v61 = vadd.f32 %v9651_v57, %v12269_v38  ;;  %v7287_v23 = vpop.f32.mrb[15].mxu1 }
 0x606   : > { %7491 = vst.msk [vmem:[%s12277_s22 + $0x60] sm:$0xff] %vm3882_vm3, %v7459_v56  ;;  %v7429_v11 = vadd.f32 %v12269_v38, %v7287_v23 }
 0x607   : > { %v7462_v12 = vmax.f32 %v7430_v61, 0.0 }
 0x608   : > { %v7461_v20 = vmax.f32 %v7429_v11, 0.0  ;;  %v9654_v51 = vpop.f32.mrb[16].mxu1 }
 0x609   : > { %7494 = vst.msk [vmem:[%s12277_s22 + $0x78] sm:$0xff] %vm3882_vm3, %v7462_v12  ;;  %v7432_v59 = vadd.f32 %v9654_v51, %v12269_v38  ;;  %v7297_v62 = vpop.f32.mrb[17].mxu1 }
 0x60a   : > { %7493 = vst.msk [vmem:[%s12277_s22 + $0x70] sm:$0xff] %vm3882_vm3, %v7461_v20  ;;  %v7431_v31 = vadd.f32 %v12269_v38, %v7297_v62 }
 0x60b   : > { %v7464_v37 = vmax.f32 %v7432_v59, 0.0 }
 0x60c   : > { %v7463_v5 = vmax.f32 %v7431_v31, 0.0  ;;  %v9657_v30 = vpop.f32.mrb[18].mxu1 }
 0x60d   : > { %7496 = vst.msk [vmem:[%s12277_s22 + $0x88] sm:$0xff] %vm3882_vm3, %v7464_v37  ;;  %v7434_v44 = vadd.f32 %v9657_v30, %v12269_v38  ;;  %v7307_v3 = vpop.f32.mrb[19].mxu1 }
 0x60e   : > { %7495 = vst.msk [vmem:[%s12277_s22 + $0x80] sm:$0xff] %vm3882_vm3, %v7463_v5  ;;  %v7433_v24 = vadd.f32 %v12269_v38, %v7307_v3 }
 0x60f   : > { %v7466_v25 = vmax.f32 %v7434_v44, 0.0 }
 0x610   : > { %v7465_v27 = vmax.f32 %v7433_v24, 0.0  ;;  %v9660_v0 = vpop.f32.mrb[20].mxu1 }
 0x611   : > { %7498 = vst.msk [vmem:[%s12277_s22 + $0x98] sm:$0xff] %vm3882_vm3, %v7466_v25  ;;  %v7436_v32 = vadd.f32 %v9660_v0, %v12269_v38  ;;  %v7317_v48 = vpop.f32.mrb[21].mxu1 }
 0x612   : > { %7497 = vst.msk [vmem:[%s12277_s22 + $0x90] sm:$0xff] %vm3882_vm3, %v7465_v27  ;;  %v7435_v4 = vadd.f32 %v12269_v38, %v7317_v48 }
 0x613   : > { %v7468_v41 = vmax.f32 %v7436_v32, 0.0 }
 0x614   : > { %v7467_v6 = vmax.f32 %v7435_v4, 0.0  ;;  %v9663_v2 = vpop.f32.mrb[22].mxu1 }
 0x615   : > { %7500 = vst.msk [vmem:[%s12277_s22 + $0xa8] sm:$0xff] %vm3882_vm3, %v7468_v41  ;;  %v7438_v28 = vadd.f32 %v9663_v2, %v12269_v38  ;;  %v7327_v36 = vpop.f32.mrb[23].mxu1 }
 0x616   : > { %7499 = vst.msk [vmem:[%s12277_s22 + $0xa0] sm:$0xff] %vm3882_vm3, %v7467_v6  ;;  %v7437_v34 = vadd.f32 %v12269_v38, %v7327_v36 }
 0x617   : > { %v7470_v46 = vmax.f32 %v7438_v28, 0.0 }
 0x618   : > { %v7469_v63 = vmax.f32 %v7437_v34, 0.0  ;;  %v9666_v7 = vpop.f32.mrb[24].mxu1 }
 0x619   : > { %7502 = vst.msk [vmem:[%s12277_s22 + $0xb8] sm:$0xff] %vm3882_vm3, %v7470_v46  ;;  %v7440_v43 = vadd.f32 %v9666_v7, %v12269_v38  ;;  %v7337_v35 = vpop.f32.mrb[25].mxu1 }
 0x61a   : > { %7501 = vst.msk [vmem:[%s12277_s22 + $0xb0] sm:$0xff] %vm3882_vm3, %v7469_v63  ;;  %v7439_v8 = vadd.f32 %v12269_v38, %v7337_v35 }
 0x61b   : > { %v7472_v14 = vmax.f32 %v7440_v43, 0.0 }
 0x61c   : > { %v7471_v16 = vmax.f32 %v7439_v8, 0.0  ;;  %v9669_v52 = vpop.f32.mrb[26].mxu1 }
 0x61d   : > { %7504 = vst.msk [vmem:[%s12277_s22 + $0xc8] sm:$0xff] %vm3882_vm3, %v7472_v14  ;;  %v7442_v60 = vadd.f32 %v9669_v52, %v12269_v38  ;;  %v7347_v26 = vpop.f32.mrb[27].mxu1 }
 0x61e   : > { %7503 = vst.msk [vmem:[%s12277_s22 + $0xc0] sm:$0xff] %vm3882_vm3, %v7471_v16  ;;  %v7441_v1 = vadd.f32 %v12269_v38, %v7347_v26 }
 0x61f   : > { %v7474_v39 = vmax.f32 %v7442_v60, 0.0 }
 0x620   : > { %v7473_v40 = vmax.f32 %v7441_v1, 0.0  ;;  %v9672_v29 = vpop.f32.mrb[28].mxu1 }
 0x621   : > { %7506 = vst.msk [vmem:[%s12277_s22 + $0xd8] sm:$0xff] %vm3882_vm3, %v7474_v39  ;;  %v7444_v33 = vadd.f32 %v9672_v29, %v12269_v38  ;;  %v7357_v47 = vpop.f32.mrb[29].mxu1 }
 0x622   : > { %7505 = vst.msk [vmem:[%s12277_s22 + $0xd0] sm:$0xff] %vm3882_vm3, %v7473_v40  ;;  %v7443_v49 = vadd.f32 %v12269_v38, %v7357_v47 }
 0x623   : > { %v7476_v45 = vmax.f32 %v7444_v33, 0.0 }
 0x624   : > { %v7475_v50 = vmax.f32 %v7443_v49, 0.0  ;;  %v9675_v22 = vpop.f32.mrb[30].mxu1 }
 0x625   : > { %7508 = vst.msk [vmem:[%s12277_s22 + $0xe8] sm:$0xff] %vm3882_vm3, %v7476_v45  ;;  %v7446_v58 = vadd.f32 %v9675_v22, %v12269_v38  ;;  %v7367_v10 = vpop.f32.mrb[31].mxu1 }
 0x626   : > { %7507 = vst.msk [vmem:[%s12277_s22 + $0xe0] sm:$0xff] %vm3882_vm3, %v7475_v50  ;;  %v7445_v9 = vadd.f32 %v12269_v38, %v7367_v10 }
 0x627   : > { %v7478_v42 = vmax.f32 %v7446_v58, 0.0 }
 0x628   : > { %v7477_v13 = vmax.f32 %v7445_v9, 0.0 }
 0x629   : > { %7510 = vst.msk [vmem:[%s12277_s22 + $0xf8] sm:$0xff] %vm3882_vm3, %v7478_v42 }
 0x62a   : > { %7509 = vst.msk [vmem:[%s12277_s22 + $0xf0] sm:$0xff] %vm3882_vm3, %v7477_v13 }
 0x62b PF: > { %s15_s18 = sadd.s32 1, %s10203_s18  }
 0x62c   : > { %p12_p4 = scmp.ge.s32.totalorder %s15_s18, 4  }
 0x62e   :  { %14 = sbr.rel (!%p12_p4) target bundleno = 1 (0x1), region = 90 }

</bundles_post_ra>
